<compile_context>
chip_gen: v7x
topology: tpu7x:2x2x1
jax: 0.10.0
libtpu: 0.0.40
codegen_flags: <defaults>
</compile_context>

<pallas_src>
import jax
import jax.numpy as jnp
import numpy as np
from jax.experimental import pallas as pl
from jax.experimental.pallas import tpu as pltpu

_VMEM_LIMIT_BYTES = 48 * 1024 * 1024  # > 32MiB scoped default, < v7x 64MiB physical


# ---------------------------------------------------------------------------
# Primary kernel: writes the final dense [c_out, t_out, H, W] layout directly.
# ---------------------------------------------------------------------------
def _dense_kernel(block_size, c_out, t, h, w):
    t_bs, h_bs, w_bs = block_size

    def kernel(x_ref, o_ref):
        # x_ref: (c, t, h, w)                              one batch sample
        # o_ref: (c_out, t*t_bs-(t_bs-1), h*h_bs, w*w_bs)  final (trimmed) layout
        for tt in range(t):
            for tb in range(t_bs):
                t_out = tt * t_bs + tb - (t_bs - 1)
                if t_out < 0:  # folded time trim: first t_bs-1 sub-frames dropped
                    continue
                for hb in range(h_bs):
                    for wb in range(w_bs):
                        off = ((tb * h_bs + hb) * w_bs + wb) * c_out
                        # Scatter the (c_out, h, w) channel-group into the
                        # interleaved (H, W) plane with strided stores; the
                        # output lane dim is the full merged width w*w_bs.
                        o_ref[:, t_out,
                              pl.ds(hb, h, stride=h_bs),
                              pl.ds(wb, w, stride=w_bs)] = (
                                  x_ref[off:off + c_out, tt, :, :])

    return kernel


def _call_dense(x, block_size):
    b, c, t, h, w = x.shape
    t_bs, h_bs, w_bs = block_size
    c_out = c // (t_bs * h_bs * w_bs)
    t_out = t * t_bs - (t_bs - 1)
    h_out, w_out = h * h_bs, w * w_bs
    return pl.pallas_call(
        _dense_kernel(block_size, c_out, t, h, w),
        out_shape=jax.ShapeDtypeStruct((b, c_out, t_out, h_out, w_out), x.dtype),
        grid=(b,),
        in_specs=[pl.BlockSpec((None, c, t, h, w),
                               lambda ib: (ib, 0, 0, 0, 0))],
        out_specs=pl.BlockSpec((None, c_out, t_out, h_out, w_out),
                               lambda ib: (ib, 0, 0, 0, 0)),
        compiler_params=pltpu.CompilerParams(
            dimension_semantics=("parallel",),
            vmem_limit_bytes=_VMEM_LIMIT_BYTES),
    )(x)


# ---------------------------------------------------------------------------
# Fallback kernel: proven scalar-indexed store layout (trim still folded in),
# followed by a free row-major merge of (h, h_bs) and (w, w_bs) in glue.
# ---------------------------------------------------------------------------
def _blocked_kernel(block_size, c_out, t, h, w):
    t_bs, h_bs, w_bs = block_size

    def kernel(x_ref, o_ref):
        # x_ref: (c, t, h, w)
        # o_ref: (c_out, t*t_bs-(t_bs-1), h, h_bs, w, w_bs)
        for tt in range(t):
            for tb in range(t_bs):
                t_out = tt * t_bs + tb - (t_bs - 1)
                if t_out < 0:
                    continue
                for hb in range(h_bs):
                    for wb in range(w_bs):
                        off = ((tb * h_bs + hb) * w_bs + wb) * c_out
                        o_ref[:, t_out, :, hb, :, wb] = x_ref[off:off + c_out, tt, :, :]

    return kernel


def _call_blocked(x, block_size):
    b, c, t, h, w = x.shape
    t_bs, h_bs, w_bs = block_size
    c_out = c // (t_bs * h_bs * w_bs)
    t_out = t * t_bs - (t_bs - 1)
    out6 = pl.pallas_call(
        _blocked_kernel(block_size, c_out, t, h, w),
        out_shape=jax.ShapeDtypeStruct((b, c_out, t_out, h, h_bs, w, w_bs), x.dtype),
        grid=(b,),
        in_specs=[pl.BlockSpec((None, c, t, h, w),
                               lambda ib: (ib, 0, 0, 0, 0))],
        out_specs=pl.BlockSpec((None, c_out, t_out, h, h_bs, w, w_bs),
                               lambda ib: (ib, 0, 0, 0, 0, 0, 0)),
        compiler_params=pltpu.CompilerParams(
            dimension_semantics=("parallel",),
            vmem_limit_bytes=_VMEM_LIMIT_BYTES),
    )(x)
    # Free row-major merges of adjacent dims (metadata only, no extra HBM pass).
    return out6.reshape(b, c_out, t_out, h * h_bs, w * w_bs)


# ---------------------------------------------------------------------------
# Public entry point.
# ---------------------------------------------------------------------------
def depth2space3d(x, block_size):
    b, c, t, h, w = x.shape
    t_bs, h_bs, w_bs = block_size
    assert c % (t_bs * h_bs * w_bs) == 0, "Channels must be divisible by block_size"
    try:
        out = _call_dense(x, block_size)
        return jax.block_until_ready(out)
    except Exception:
        # Toolchain capability fallback (e.g. strided VMEM stores unsupported).
        out = _call_blocked(x, block_size)
        return jax.block_until_ready(out)


def depth2space3d_ref(x, block_size):
    """Pure-JAX reference mirroring the PyTorch forward exactly."""
    b, c, t, h, w = x.shape
    t_bs, h_bs, w_bs = block_size
    c_out = c // (t_bs * h_bs * w_bs)
    y = x.reshape(b, t_bs, h_bs, w_bs, c_out, t, h, w)
    y = jnp.transpose(y, (0, 4, 5, 1, 6, 2, 7, 3))
    y = y.reshape(b, c_out, t * t_bs, h * h_bs, w * w_bs)
    if t_bs > 1:
        y = y[:, :, t_bs - 1:, :, :]
    return y


if __name__ == "__main__":
    key = jax.random.PRNGKey(0)
    # [b, c, t, h, w] with c divisible by prod(block_size)
    b, c, t, h, w = 2, 16, 5, 8, 8
    block_size = (2, 2, 2)
    x = jax.random.normal(key, (b, c, t, h, w), dtype=jnp.float32)

    out = depth2space3d(x, block_size)
    out = jax.block_until_ready(out)

    ref = depth2space3d_ref(x, block_size)
    assert out.shape == ref.shape, (out.shape, ref.shape)
    np.testing.assert_allclose(np.asarray(out), np.asarray(ref), rtol=0, atol=0)
    print("KERNEL_OK")
</pallas_src>

<mosaic_0001>
module attributes {stable_mosaic.version = 11 : i64} {
  func.func @kernel(%arg0: i32, %arg1: memref<1x16x5x8x8xf32, #tpu.memory_space<vmem>>, %arg2: memref<1x2x9x16x16xf32, #tpu.memory_space<vmem>>) attributes {dimension_semantics = [#tpu.dimension_semantics<parallel>], iteration_bounds = array<i64: 2>, scalar_prefetch = 0 : i64, scratch_operands = 0 : i64, tpu.core_type = #tpu.core_type<tc>, window_params = [{transform_indices = @transform_0, window_bounds = array<i64: 1, 16, 5, 8, 8>}, {transform_indices = @transform_1, window_bounds = array<i64: 1, 2, 9, 16, 16>}]} {
    %c0 = arith.constant 0 : index
    %c8 = arith.constant 8 : index
    %c0_0 = arith.constant 0 : index
    %c0_1 = arith.constant 0 : index
    %c0_2 = arith.constant 0 : index
    %0 = vector.load %arg1[%c0, %c8, %c0_0, %c0_1, %c0_2] : memref<1x16x5x8x8xf32, #tpu.memory_space<vmem>>, vector<1x2x1x8x8xf32>
    %1 = vector.shape_cast %0 : vector<1x2x1x8x8xf32> to vector<2x8x8xf32>
    %c0_3 = arith.constant 0 : index
    %c0_4 = arith.constant 0 : index
    %c0_5 = arith.constant 0 : index
    %c0_6 = arith.constant 0 : index
    %c0_7 = arith.constant 0 : index
    %2 = tpu.strided_load %arg2[%c0_3, %c0_4, %c0_5, %c0_6, %c0_7] {strides = array<i32: 1, 1, 1, 2, 2>} : memref<1x2x9x16x16xf32, #tpu.memory_space<vmem>>, vector<1x2x1x8x8xf32>
    %3 = vector.shape_cast %2 : vector<1x2x1x8x8xf32> to vector<2x8x8xf32>
    %4 = vector.shape_cast %1 : vector<2x8x8xf32> to vector<1x2x1x8x8xf32>
    tpu.strided_store %arg2[%c0_3, %c0_4, %c0_5, %c0_6, %c0_7], %4 {strides = array<i32: 1, 1, 1, 2, 2>} : memref<1x2x9x16x16xf32, #tpu.memory_space<vmem>>, vector<1x2x1x8x8xf32>
    %c0_8 = arith.constant 0 : index
    %c10 = arith.constant 10 : index
    %c0_9 = arith.constant 0 : index
    %c0_10 = arith.constant 0 : index
    %c0_11 = arith.constant 0 : index
    %5 = vector.load %arg1[%c0_8, %c10, %c0_9, %c0_10, %c0_11] : memref<1x16x5x8x8xf32, #tpu.memory_space<vmem>>, vector<1x2x1x8x8xf32>
    %6 = vector.shape_cast %5 : vector<1x2x1x8x8xf32> to vector<2x8x8xf32>
    %c0_12 = arith.constant 0 : index
    %c0_13 = arith.constant 0 : index
    %c0_14 = arith.constant 0 : index
    %c0_15 = arith.constant 0 : index
    %c1 = arith.constant 1 : index
    %7 = tpu.strided_load %arg2[%c0_12, %c0_13, %c0_14, %c0_15, %c1] {strides = array<i32: 1, 1, 1, 2, 2>} : memref<1x2x9x16x16xf32, #tpu.memory_space<vmem>>, vector<1x2x1x8x8xf32>
    %8 = vector.shape_cast %7 : vector<1x2x1x8x8xf32> to vector<2x8x8xf32>
    %9 = vector.shape_cast %6 : vector<2x8x8xf32> to vector<1x2x1x8x8xf32>
    tpu.strided_store %arg2[%c0_12, %c0_13, %c0_14, %c0_15, %c1], %9 {strides = array<i32: 1, 1, 1, 2, 2>} : memref<1x2x9x16x16xf32, #tpu.memory_space<vmem>>, vector<1x2x1x8x8xf32>
    %c0_16 = arith.constant 0 : index
    %c12 = arith.constant 12 : index
    %c0_17 = arith.constant 0 : index
    %c0_18 = arith.constant 0 : index
    %c0_19 = arith.constant 0 : index
    %10 = vector.load %arg1[%c0_16, %c12, %c0_17, %c0_18, %c0_19] : memref<1x16x5x8x8xf32, #tpu.memory_space<vmem>>, vector<1x2x1x8x8xf32>
    %11 = vector.shape_cast %10 : vector<1x2x1x8x8xf32> to vector<2x8x8xf32>
    %c0_20 = arith.constant 0 : index
    %c0_21 = arith.constant 0 : index
    %c0_22 = arith.constant 0 : index
    %c1_23 = arith.constant 1 : index
    %c0_24 = arith.constant 0 : index
    %12 = tpu.strided_load %arg2[%c0_20, %c0_21, %c0_22, %c1_23, %c0_24] {strides = array<i32: 1, 1, 1, 2, 2>} : memref<1x2x9x16x16xf32, #tpu.memory_space<vmem>>, vector<1x2x1x8x8xf32>
    %13 = vector.shape_cast %12 : vector<1x2x1x8x8xf32> to vector<2x8x8xf32>
    %14 = vector.shape_cast %11 : vector<2x8x8xf32> to vector<1x2x1x8x8xf32>
    tpu.strided_store %arg2[%c0_20, %c0_21, %c0_22, %c1_23, %c0_24], %14 {strides = array<i32: 1, 1, 1, 2, 2>} : memref<1x2x9x16x16xf32, #tpu.memory_space<vmem>>, vector<1x2x1x8x8xf32>
    %c0_25 = arith.constant 0 : index
    %c14 = arith.constant 14 : index
    %c0_26 = arith.constant 0 : index
    %c0_27 = arith.constant 0 : index
    %c0_28 = arith.constant 0 : index
    %15 = vector.load %arg1[%c0_25, %c14, %c0_26, %c0_27, %c0_28] : memref<1x16x5x8x8xf32, #tpu.memory_space<vmem>>, vector<1x2x1x8x8xf32>
    %16 = vector.shape_cast %15 : vector<1x2x1x8x8xf32> to vector<2x8x8xf32>
    %c0_29 = arith.constant 0 : index
    %c0_30 = arith.constant 0 : index
    %c0_31 = arith.constant 0 : index
    %c1_32 = arith.constant 1 : index
    %c1_33 = arith.constant 1 : index
    %17 = tpu.strided_load %arg2[%c0_29, %c0_30, %c0_31, %c1_32, %c1_33] {strides = array<i32: 1, 1, 1, 2, 2>} : memref<1x2x9x16x16xf32, #tpu.memory_space<vmem>>, vector<1x2x1x8x8xf32>
    %18 = vector.shape_cast %17 : vector<1x2x1x8x8xf32> to vector<2x8x8xf32>
    %19 = vector.shape_cast %16 : vector<2x8x8xf32> to vector<1x2x1x8x8xf32>
    tpu.strided_store %arg2[%c0_29, %c0_30, %c0_31, %c1_32, %c1_33], %19 {strides = array<i32: 1, 1, 1, 2, 2>} : memref<1x2x9x16x16xf32, #tpu.memory_space<vmem>>, vector<1x2x1x8x8xf32>
    %c0_34 = arith.constant 0 : index
    %c0_35 = arith.constant 0 : index
    %c1_36 = arith.constant 1 : index
    %c0_37 = arith.constant 0 : index
    %c0_38 = arith.constant 0 : index
    %20 = vector.load %arg1[%c0_34, %c0_35, %c1_36, %c0_37, %c0_38] : memref<1x16x5x8x8xf32, #tpu.memory_space<vmem>>, vector<1x2x1x8x8xf32>
    %21 = vector.shape_cast %20 : vector<1x2x1x8x8xf32> to vector<2x8x8xf32>
    %c0_39 = arith.constant 0 : index
    %c0_40 = arith.constant 0 : index
    %c1_41 = arith.constant 1 : index
    %c0_42 = arith.constant 0 : index
    %c0_43 = arith.constant 0 : index
    %22 = tpu.strided_load %arg2[%c0_39, %c0_40, %c1_41, %c0_42, %c0_43] {strides = array<i32: 1, 1, 1, 2, 2>} : memref<1x2x9x16x16xf32, #tpu.memory_space<vmem>>, vector<1x2x1x8x8xf32>
    %23 = vector.shape_cast %22 : vector<1x2x1x8x8xf32> to vector<2x8x8xf32>
    %24 = vector.shape_cast %21 : vector<2x8x8xf32> to vector<1x2x1x8x8xf32>
    tpu.strided_store %arg2[%c0_39, %c0_40, %c1_41, %c0_42, %c0_43], %24 {strides = array<i32: 1, 1, 1, 2, 2>} : memref<1x2x9x16x16xf32, #tpu.memory_space<vmem>>, vector<1x2x1x8x8xf32>
    %c0_44 = arith.constant 0 : index
    %c2 = arith.constant 2 : index
    %c1_45 = arith.constant 1 : index
    %c0_46 = arith.constant 0 : index
    %c0_47 = arith.constant 0 : index
    %25 = vector.load %arg1[%c0_44, %c2, %c1_45, %c0_46, %c0_47] : memref<1x16x5x8x8xf32, #tpu.memory_space<vmem>>, vector<1x2x1x8x8xf32>
    %26 = vector.shape_cast %25 : vector<1x2x1x8x8xf32> to vector<2x8x8xf32>
    %c0_48 = arith.constant 0 : index
    %c0_49 = arith.constant 0 : index
    %c1_50 = arith.constant 1 : index
    %c0_51 = arith.constant 0 : index
    %c1_52 = arith.constant 1 : index
    %27 = tpu.strided_load %arg2[%c0_48, %c0_49, %c1_50, %c0_51, %c1_52] {strides = array<i32: 1, 1, 1, 2, 2>} : memref<1x2x9x16x16xf32, #tpu.memory_space<vmem>>, vector<1x2x1x8x8xf32>
    %28 = vector.shape_cast %27 : vector<1x2x1x8x8xf32> to vector<2x8x8xf32>
    %29 = vector.shape_cast %26 : vector<2x8x8xf32> to vector<1x2x1x8x8xf32>
    tpu.strided_store %arg2[%c0_48, %c0_49, %c1_50, %c0_51, %c1_52], %29 {strides = array<i32: 1, 1, 1, 2, 2>} : memref<1x2x9x16x16xf32, #tpu.memory_space<vmem>>, vector<1x2x1x8x8xf32>
    %c0_53 = arith.constant 0 : index
    %c4 = arith.constant 4 : index
    %c1_54 = arith.constant 1 : index
    %c0_55 = arith.constant 0 : index
    %c0_56 = arith.constant 0 : index
    %30 = vector.load %arg1[%c0_53, %c4, %c1_54, %c0_55, %c0_56] : memref<1x16x5x8x8xf32, #tpu.memory_space<vmem>>, vector<1x2x1x8x8xf32>
    %31 = vector.shape_cast %30 : vector<1x2x1x8x8xf32> to vector<2x8x8xf32>
    %c0_57 = arith.constant 0 : index
    %c0_58 = arith.constant 0 : index
    %c1_59 = arith.constant 1 : index
    %c1_60 = arith.constant 1 : index
    %c0_61 = arith.constant 0 : index
    %32 = tpu.strided_load %arg2[%c0_57, %c0_58, %c1_59, %c1_60, %c0_61] {strides = array<i32: 1, 1, 1, 2, 2>} : memref<1x2x9x16x16xf32, #tpu.memory_space<vmem>>, vector<1x2x1x8x8xf32>
    %33 = vector.shape_cast %32 : vector<1x2x1x8x8xf32> to vector<2x8x8xf32>
    %34 = vector.shape_cast %31 : vector<2x8x8xf32> to vector<1x2x1x8x8xf32>
    tpu.strided_store %arg2[%c0_57, %c0_58, %c1_59, %c1_60, %c0_61], %34 {strides = array<i32: 1, 1, 1, 2, 2>} : memref<1x2x9x16x16xf32, #tpu.memory_space<vmem>>, vector<1x2x1x8x8xf32>
    %c0_62 = arith.constant 0 : index
    %c6 = arith.constant 6 : index
    %c1_63 = arith.constant 1 : index
    %c0_64 = arith.constant 0 : index
    %c0_65 = arith.constant 0 : index
    %35 = vector.load %arg1[%c0_62, %c6, %c1_63, %c0_64, %c0_65] : memref<1x16x5x8x8xf32, #tpu.memory_space<vmem>>, vector<1x2x1x8x8xf32>
    %36 = vector.shape_cast %35 : vector<1x2x1x8x8xf32> to vector<2x8x8xf32>
    %c0_66 = arith.constant 0 : index
    %c0_67 = arith.constant 0 : index
    %c1_68 = arith.constant 1 : index
    %c1_69 = arith.constant 1 : index
    %c1_70 = arith.constant 1 : index
    %37 = tpu.strided_load %arg2[%c0_66, %c0_67, %c1_68, %c1_69, %c1_70] {strides = array<i32: 1, 1, 1, 2, 2>} : memref<1x2x9x16x16xf32, #tpu.memory_space<vmem>>, vector<1x2x1x8x8xf32>
    %38 = vector.shape_cast %37 : vector<1x2x1x8x8xf32> to vector<2x8x8xf32>
    %39 = vector.shape_cast %36 : vector<2x8x8xf32> to vector<1x2x1x8x8xf32>
    tpu.strided_store %arg2[%c0_66, %c0_67, %c1_68, %c1_69, %c1_70], %39 {strides = array<i32: 1, 1, 1, 2, 2>} : memref<1x2x9x16x16xf32, #tpu.memory_space<vmem>>, vector<1x2x1x8x8xf32>
    %c0_71 = arith.constant 0 : index
    %c8_72 = arith.constant 8 : index
    %c1_73 = arith.constant 1 : index
    %c0_74 = arith.constant 0 : index
    %c0_75 = arith.constant 0 : index
    %40 = vector.load %arg1[%c0_71, %c8_72, %c1_73, %c0_74, %c0_75] : memref<1x16x5x8x8xf32, #tpu.memory_space<vmem>>, vector<1x2x1x8x8xf32>
    %41 = vector.shape_cast %40 : vector<1x2x1x8x8xf32> to vector<2x8x8xf32>
    %c0_76 = arith.constant 0 : index
    %c0_77 = arith.constant 0 : index
    %c2_78 = arith.constant 2 : index
    %c0_79 = arith.constant 0 : index
    %c0_80 = arith.constant 0 : index
    %42 = tpu.strided_load %arg2[%c0_76, %c0_77, %c2_78, %c0_79, %c0_80] {strides = array<i32: 1, 1, 1, 2, 2>} : memref<1x2x9x16x16xf32, #tpu.memory_space<vmem>>, vector<1x2x1x8x8xf32>
    %43 = vector.shape_cast %42 : vector<1x2x1x8x8xf32> to vector<2x8x8xf32>
    %44 = vector.shape_cast %41 : vector<2x8x8xf32> to vector<1x2x1x8x8xf32>
    tpu.strided_store %arg2[%c0_76, %c0_77, %c2_78, %c0_79, %c0_80], %44 {strides = array<i32: 1, 1, 1, 2, 2>} : memref<1x2x9x16x16xf32, #tpu.memory_space<vmem>>, vector<1x2x1x8x8xf32>
    %c0_81 = arith.constant 0 : index
    %c10_82 = arith.constant 10 : index
    %c1_83 = arith.constant 1 : index
    %c0_84 = arith.constant 0 : index
    %c0_85 = arith.constant 0 : index
    %45 = vector.load %arg1[%c0_81, %c10_82, %c1_83, %c0_84, %c0_85] : memref<1x16x5x8x8xf32, #tpu.memory_space<vmem>>, vector<1x2x1x8x8xf32>
    %46 = vector.shape_cast %45 : vector<1x2x1x8x8xf32> to vector<2x8x8xf32>
    %c0_86 = arith.constant 0 : index
    %c0_87 = arith.constant 0 : index
    %c2_88 = arith.constant 2 : index
    %c0_89 = arith.constant 0 : index
    %c1_90 = arith.constant 1 : index
    %47 = tpu.strided_load %arg2[%c0_86, %c0_87, %c2_88, %c0_89, %c1_90] {strides = array<i32: 1, 1, 1, 2, 2>} : memref<1x2x9x16x16xf32, #tpu.memory_space<vmem>>, vector<1x2x1x8x8xf32>
    %48 = vector.shape_cast %47 : vector<1x2x1x8x8xf32> to vector<2x8x8xf32>
    %49 = vector.shape_cast %46 : vector<2x8x8xf32> to vector<1x2x1x8x8xf32>
    tpu.strided_store %arg2[%c0_86, %c0_87, %c2_88, %c0_89, %c1_90], %49 {strides = array<i32: 1, 1, 1, 2, 2>} : memref<1x2x9x16x16xf32, #tpu.memory_space<vmem>>, vector<1x2x1x8x8xf32>
    %c0_91 = arith.constant 0 : index
    %c12_92 = arith.constant 12 : index
    %c1_93 = arith.constant 1 : index
    %c0_94 = arith.constant 0 : index
    %c0_95 = arith.constant 0 : index
    %50 = vector.load %arg1[%c0_91, %c12_92, %c1_93, %c0_94, %c0_95] : memref<1x16x5x8x8xf32, #tpu.memory_space<vmem>>, vector<1x2x1x8x8xf32>
    %51 = vector.shape_cast %50 : vector<1x2x1x8x8xf32> to vector<2x8x8xf32>
    %c0_96 = arith.constant 0 : index
    %c0_97 = arith.constant 0 : index
    %c2_98 = arith.constant 2 : index
    %c1_99 = arith.constant 1 : index
    %c0_100 = arith.constant 0 : index
    %52 = tpu.strided_load %arg2[%c0_96, %c0_97, %c2_98, %c1_99, %c0_100] {strides = array<i32: 1, 1, 1, 2, 2>} : memref<1x2x9x16x16xf32, #tpu.memory_space<vmem>>, vector<1x2x1x8x8xf32>
    %53 = vector.shape_cast %52 : vector<1x2x1x8x8xf32> to vector<2x8x8xf32>
    %54 = vector.shape_cast %51 : vector<2x8x8xf32> to vector<1x2x1x8x8xf32>
    tpu.strided_store %arg2[%c0_96, %c0_97, %c2_98, %c1_99, %c0_100], %54 {strides = array<i32: 1, 1, 1, 2, 2>} : memref<1x2x9x16x16xf32, #tpu.memory_space<vmem>>, vector<1x2x1x8x8xf32>
    %c0_101 = arith.constant 0 : index
    %c14_102 = arith.constant 14 : index
    %c1_103 = arith.constant 1 : index
    %c0_104 = arith.constant 0 : index
    %c0_105 = arith.constant 0 : index
    %55 = vector.load %arg1[%c0_101, %c14_102, %c1_103, %c0_104, %c0_105] : memref<1x16x5x8x8xf32, #tpu.memory_space<vmem>>, vector<1x2x1x8x8xf32>
    %56 = vector.shape_cast %55 : vector<1x2x1x8x8xf32> to vector<2x8x8xf32>
    %c0_106 = arith.constant 0 : index
    %c0_107 = arith.constant 0 : index
    %c2_108 = arith.constant 2 : index
    %c1_109 = arith.constant 1 : index
    %c1_110 = arith.constant 1 : index
    %57 = tpu.strided_load %arg2[%c0_106, %c0_107, %c2_108, %c1_109, %c1_110] {strides = array<i32: 1, 1, 1, 2, 2>} : memref<1x2x9x16x16xf32, #tpu.memory_space<vmem>>, vector<1x2x1x8x8xf32>
    %58 = vector.shape_cast %57 : vector<1x2x1x8x8xf32> to vector<2x8x8xf32>
    %59 = vector.shape_cast %56 : vector<2x8x8xf32> to vector<1x2x1x8x8xf32>
    tpu.strided_store %arg2[%c0_106, %c0_107, %c2_108, %c1_109, %c1_110], %59 {strides = array<i32: 1, 1, 1, 2, 2>} : memref<1x2x9x16x16xf32, #tpu.memory_space<vmem>>, vector<1x2x1x8x8xf32>
    %c0_111 = arith.constant 0 : index
    %c0_112 = arith.constant 0 : index
    %c2_113 = arith.constant 2 : index
    %c0_114 = arith.constant 0 : index
    %c0_115 = arith.constant 0 : index
    %60 = vector.load %arg1[%c0_111, %c0_112, %c2_113, %c0_114, %c0_115] : memref<1x16x5x8x8xf32, #tpu.memory_space<vmem>>, vector<1x2x1x8x8xf32>
    %61 = vector.shape_cast %60 : vector<1x2x1x8x8xf32> to vector<2x8x8xf32>
    %c0_116 = arith.constant 0 : index
    %c0_117 = arith.constant 0 : index
    %c3 = arith.constant 3 : index
    %c0_118 = arith.constant 0 : index
    %c0_119 = arith.constant 0 : index
    %62 = tpu.strided_load %arg2[%c0_116, %c0_117, %c3, %c0_118, %c0_119] {strides = array<i32: 1, 1, 1, 2, 2>} : memref<1x2x9x16x16xf32, #tpu.memory_space<vmem>>, vector<1x2x1x8x8xf32>
    %63 = vector.shape_cast %62 : vector<1x2x1x8x8xf32> to vector<2x8x8xf32>
    %64 = vector.shape_cast %61 : vector<2x8x8xf32> to vector<1x2x1x8x8xf32>
    tpu.strided_store %arg2[%c0_116, %c0_117, %c3, %c0_118, %c0_119], %64 {strides = array<i32: 1, 1, 1, 2, 2>} : memref<1x2x9x16x16xf32, #tpu.memory_space<vmem>>, vector<1x2x1x8x8xf32>
    %c0_120 = arith.constant 0 : index
    %c2_121 = arith.constant 2 : index
    %c2_122 = arith.constant 2 : index
    %c0_123 = arith.constant 0 : index
    %c0_124 = arith.constant 0 : index
    %65 = vector.load %arg1[%c0_120, %c2_121, %c2_122, %c0_123, %c0_124] : memref<1x16x5x8x8xf32, #tpu.memory_space<vmem>>, vector<1x2x1x8x8xf32>
    %66 = vector.shape_cast %65 : vector<1x2x1x8x8xf32> to vector<2x8x8xf32>
    %c0_125 = arith.constant 0 : index
    %c0_126 = arith.constant 0 : index
    %c3_127 = arith.constant 3 : index
    %c0_128 = arith.constant 0 : index
    %c1_129 = arith.constant 1 : index
    %67 = tpu.strided_load %arg2[%c0_125, %c0_126, %c3_127, %c0_128, %c1_129] {strides = array<i32: 1, 1, 1, 2, 2>} : memref<1x2x9x16x16xf32, #tpu.memory_space<vmem>>, vector<1x2x1x8x8xf32>
    %68 = vector.shape_cast %67 : vector<1x2x1x8x8xf32> to vector<2x8x8xf32>
    %69 = vector.shape_cast %66 : vector<2x8x8xf32> to vector<1x2x1x8x8xf32>
    tpu.strided_store %arg2[%c0_125, %c0_126, %c3_127, %c0_128, %c1_129], %69 {strides = array<i32: 1, 1, 1, 2, 2>} : memref<1x2x9x16x16xf32, #tpu.memory_space<vmem>>, vector<1x2x1x8x8xf32>
    %c0_130 = arith.constant 0 : index
    %c4_131 = arith.constant 4 : index
    %c2_132 = arith.constant 2 : index
    %c0_133 = arith.constant 0 : index
    %c0_134 = arith.constant 0 : index
    %70 = vector.load %arg1[%c0_130, %c4_131, %c2_132, %c0_133, %c0_134] : memref<1x16x5x8x8xf32, #tpu.memory_space<vmem>>, vector<1x2x1x8x8xf32>
    %71 = vector.shape_cast %70 : vector<1x2x1x8x8xf32> to vector<2x8x8xf32>
    %c0_135 = arith.constant 0 : index
    %c0_136 = arith.constant 0 : index
    %c3_137 = arith.constant 3 : index
    %c1_138 = arith.constant 1 : index
    %c0_139 = arith.constant 0 : index
    %72 = tpu.strided_load %arg2[%c0_135, %c0_136, %c3_137, %c1_138, %c0_139] {strides = array<i32: 1, 1, 1, 2, 2>} : memref<1x2x9x16x16xf32, #tpu.memory_space<vmem>>, vector<1x2x1x8x8xf32>
    %73 = vector.shape_cast %72 : vector<1x2x1x8x8xf32> to vector<2x8x8xf32>
    %74 = vector.shape_cast %71 : vector<2x8x8xf32> to vector<1x2x1x8x8xf32>
    tpu.strided_store %arg2[%c0_135, %c0_136, %c3_137, %c1_138, %c0_139], %74 {strides = array<i32: 1, 1, 1, 2, 2>} : memref<1x2x9x16x16xf32, #tpu.memory_space<vmem>>, vector<1x2x1x8x8xf32>
    %c0_140 = arith.constant 0 : index
    %c6_141 = arith.constant 6 : index
    %c2_142 = arith.constant 2 : index
    %c0_143 = arith.constant 0 : index
    %c0_144 = arith.constant 0 : index
    %75 = vector.load %arg1[%c0_140, %c6_141, %c2_142, %c0_143, %c0_144] : memref<1x16x5x8x8xf32, #tpu.memory_space<vmem>>, vector<1x2x1x8x8xf32>
    %76 = vector.shape_cast %75 : vector<1x2x1x8x8xf32> to vector<2x8x8xf32>
    %c0_145 = arith.constant 0 : index
    %c0_146 = arith.constant 0 : index
    %c3_147 = arith.constant 3 : index
    %c1_148 = arith.constant 1 : index
    %c1_149 = arith.constant 1 : index
    %77 = tpu.strided_load %arg2[%c0_145, %c0_146, %c3_147, %c1_148, %c1_149] {strides = array<i32: 1, 1, 1, 2, 2>} : memref<1x2x9x16x16xf32, #tpu.memory_space<vmem>>, vector<1x2x1x8x8xf32>
    %78 = vector.shape_cast %77 : vector<1x2x1x8x8xf32> to vector<2x8x8xf32>
    %79 = vector.shape_cast %76 : vector<2x8x8xf32> to vector<1x2x1x8x8xf32>
    tpu.strided_store %arg2[%c0_145, %c0_146, %c3_147, %c1_148, %c1_149], %79 {strides = array<i32: 1, 1, 1, 2, 2>} : memref<1x2x9x16x16xf32, #tpu.memory_space<vmem>>, vector<1x2x1x8x8xf32>
    %c0_150 = arith.constant 0 : index
    %c8_151 = arith.constant 8 : index
    %c2_152 = arith.constant 2 : index
    %c0_153 = arith.constant 0 : index
    %c0_154 = arith.constant 0 : index
    %80 = vector.load %arg1[%c0_150, %c8_151, %c2_152, %c0_153, %c0_154] : memref<1x16x5x8x8xf32, #tpu.memory_space<vmem>>, vector<1x2x1x8x8xf32>
    %81 = vector.shape_cast %80 : vector<1x2x1x8x8xf32> to vector<2x8x8xf32>
    %c0_155 = arith.constant 0 : index
    %c0_156 = arith.constant 0 : index
    %c4_157 = arith.constant 4 : index
    %c0_158 = arith.constant 0 : index
    %c0_159 = arith.constant 0 : index
    %82 = tpu.strided_load %arg2[%c0_155, %c0_156, %c4_157, %c0_158, %c0_159] {strides = array<i32: 1, 1, 1, 2, 2>} : memref<1x2x9x16x16xf32, #tpu.memory_space<vmem>>, vector<1x2x1x8x8xf32>
    %83 = vector.shape_cast %82 : vector<1x2x1x8x8xf32> to vector<2x8x8xf32>
    %84 = vector.shape_cast %81 : vector<2x8x8xf32> to vector<1x2x1x8x8xf32>
    tpu.strided_store %arg2[%c0_155, %c0_156, %c4_157, %c0_158, %c0_159], %84 {strides = array<i32: 1, 1, 1, 2, 2>} : memref<1x2x9x16x16xf32, #tpu.memory_space<vmem>>, vector<1x2x1x8x8xf32>
    %c0_160 = arith.constant 0 : index
    %c10_161 = arith.constant 10 : index
    %c2_162 = arith.constant 2 : index
    %c0_163 = arith.constant 0 : index
    %c0_164 = arith.constant 0 : index
    %85 = vector.load %arg1[%c0_160, %c10_161, %c2_162, %c0_163, %c0_164] : memref<1x16x5x8x8xf32, #tpu.memory_space<vmem>>, vector<1x2x1x8x8xf32>
    %86 = vector.shape_cast %85 : vector<1x2x1x8x8xf32> to vector<2x8x8xf32>
    %c0_165 = arith.constant 0 : index
    %c0_166 = arith.constant 0 : index
    %c4_167 = arith.constant 4 : index
    %c0_168 = arith.constant 0 : index
    %c1_169 = arith.constant 1 : index
    %87 = tpu.strided_load %arg2[%c0_165, %c0_166, %c4_167, %c0_168, %c1_169] {strides = array<i32: 1, 1, 1, 2, 2>} : memref<1x2x9x16x16xf32, #tpu.memory_space<vmem>>, vector<1x2x1x8x8xf32>
    %88 = vector.shape_cast %87 : vector<1x2x1x8x8xf32> to vector<2x8x8xf32>
    %89 = vector.shape_cast %86 : vector<2x8x8xf32> to vector<1x2x1x8x8xf32>
    tpu.strided_store %arg2[%c0_165, %c0_166, %c4_167, %c0_168, %c1_169], %89 {strides = array<i32: 1, 1, 1, 2, 2>} : memref<1x2x9x16x16xf32, #tpu.memory_space<vmem>>, vector<1x2x1x8x8xf32>
    %c0_170 = arith.constant 0 : index
    %c12_171 = arith.constant 12 : index
    %c2_172 = arith.constant 2 : index
    %c0_173 = arith.constant 0 : index
    %c0_174 = arith.constant 0 : index
    %90 = vector.load %arg1[%c0_170, %c12_171, %c2_172, %c0_173, %c0_174] : memref<1x16x5x8x8xf32, #tpu.memory_space<vmem>>, vector<1x2x1x8x8xf32>
    %91 = vector.shape_cast %90 : vector<1x2x1x8x8xf32> to vector<2x8x8xf32>
    %c0_175 = arith.constant 0 : index
    %c0_176 = arith.constant 0 : index
    %c4_177 = arith.constant 4 : index
    %c1_178 = arith.constant 1 : index
    %c0_179 = arith.constant 0 : index
    %92 = tpu.strided_load %arg2[%c0_175, %c0_176, %c4_177, %c1_178, %c0_179] {strides = array<i32: 1, 1, 1, 2, 2>} : memref<1x2x9x16x16xf32, #tpu.memory_space<vmem>>, vector<1x2x1x8x8xf32>
    %93 = vector.shape_cast %92 : vector<1x2x1x8x8xf32> to vector<2x8x8xf32>
    %94 = vector.shape_cast %91 : vector<2x8x8xf32> to vector<1x2x1x8x8xf32>
    tpu.strided_store %arg2[%c0_175, %c0_176, %c4_177, %c1_178, %c0_179], %94 {strides = array<i32: 1, 1, 1, 2, 2>} : memref<1x2x9x16x16xf32, #tpu.memory_space<vmem>>, vector<1x2x1x8x8xf32>
    %c0_180 = arith.constant 0 : index
    %c14_181 = arith.constant 14 : index
    %c2_182 = arith.constant 2 : index
    %c0_183 = arith.constant 0 : index
    %c0_184 = arith.constant 0 : index
    %95 = vector.load %arg1[%c0_180, %c14_181, %c2_182, %c0_183, %c0_184] : memref<1x16x5x8x8xf32, #tpu.memory_space<vmem>>, vector<1x2x1x8x8xf32>
    %96 = vector.shape_cast %95 : vector<1x2x1x8x8xf32> to vector<2x8x8xf32>
    %c0_185 = arith.constant 0 : index
    %c0_186 = arith.constant 0 : index
    %c4_187 = arith.constant 4 : index
    %c1_188 = arith.constant 1 : index
    %c1_189 = arith.constant 1 : index
    %97 = tpu.strided_load %arg2[%c0_185, %c0_186, %c4_187, %c1_188, %c1_189] {strides = array<i32: 1, 1, 1, 2, 2>} : memref<1x2x9x16x16xf32, #tpu.memory_space<vmem>>, vector<1x2x1x8x8xf32>
    %98 = vector.shape_cast %97 : vector<1x2x1x8x8xf32> to vector<2x8x8xf32>
    %99 = vector.shape_cast %96 : vector<2x8x8xf32> to vector<1x2x1x8x8xf32>
    tpu.strided_store %arg2[%c0_185, %c0_186, %c4_187, %c1_188, %c1_189], %99 {strides = array<i32: 1, 1, 1, 2, 2>} : memref<1x2x9x16x16xf32, #tpu.memory_space<vmem>>, vector<1x2x1x8x8xf32>
    %c0_190 = arith.constant 0 : index
    %c0_191 = arith.constant 0 : index
    %c3_192 = arith.constant 3 : index
    %c0_193 = arith.constant 0 : index
    %c0_194 = arith.constant 0 : index
    %100 = vector.load %arg1[%c0_190, %c0_191, %c3_192, %c0_193, %c0_194] : memref<1x16x5x8x8xf32, #tpu.memory_space<vmem>>, vector<1x2x1x8x8xf32>
    %101 = vector.shape_cast %100 : vector<1x2x1x8x8xf32> to vector<2x8x8xf32>
    %c0_195 = arith.constant 0 : index
    %c0_196 = arith.constant 0 : index
    %c5 = arith.constant 5 : index
    %c0_197 = arith.constant 0 : index
    %c0_198 = arith.constant 0 : index
    %102 = tpu.strided_load %arg2[%c0_195, %c0_196, %c5, %c0_197, %c0_198] {strides = array<i32: 1, 1, 1, 2, 2>} : memref<1x2x9x16x16xf32, #tpu.memory_space<vmem>>, vector<1x2x1x8x8xf32>
    %103 = vector.shape_cast %102 : vector<1x2x1x8x8xf32> to vector<2x8x8xf32>
    %104 = vector.shape_cast %101 : vector<2x8x8xf32> to vector<1x2x1x8x8xf32>
    tpu.strided_store %arg2[%c0_195, %c0_196, %c5, %c0_197, %c0_198], %104 {strides = array<i32: 1, 1, 1, 2, 2>} : memref<1x2x9x16x16xf32, #tpu.memory_space<vmem>>, vector<1x2x1x8x8xf32>
    %c0_199 = arith.constant 0 : index
    %c2_200 = arith.constant 2 : index
    %c3_201 = arith.constant 3 : index
    %c0_202 = arith.constant 0 : index
    %c0_203 = arith.constant 0 : index
    %105 = vector.load %arg1[%c0_199, %c2_200, %c3_201, %c0_202, %c0_203] : memref<1x16x5x8x8xf32, #tpu.memory_space<vmem>>, vector<1x2x1x8x8xf32>
    %106 = vector.shape_cast %105 : vector<1x2x1x8x8xf32> to vector<2x8x8xf32>
    %c0_204 = arith.constant 0 : index
    %c0_205 = arith.constant 0 : index
    %c5_206 = arith.constant 5 : index
    %c0_207 = arith.constant 0 : index
    %c1_208 = arith.constant 1 : index
    %107 = tpu.strided_load %arg2[%c0_204, %c0_205, %c5_206, %c0_207, %c1_208] {strides = array<i32: 1, 1, 1, 2, 2>} : memref<1x2x9x16x16xf32, #tpu.memory_space<vmem>>, vector<1x2x1x8x8xf32>
    %108 = vector.shape_cast %107 : vector<1x2x1x8x8xf32> to vector<2x8x8xf32>
    %109 = vector.shape_cast %106 : vector<2x8x8xf32> to vector<1x2x1x8x8xf32>
    tpu.strided_store %arg2[%c0_204, %c0_205, %c5_206, %c0_207, %c1_208], %109 {strides = array<i32: 1, 1, 1, 2, 2>} : memref<1x2x9x16x16xf32, #tpu.memory_space<vmem>>, vector<1x2x1x8x8xf32>
    %c0_209 = arith.constant 0 : index
    %c4_210 = arith.constant 4 : index
    %c3_211 = arith.constant 3 : index
    %c0_212 = arith.constant 0 : index
    %c0_213 = arith.constant 0 : index
    %110 = vector.load %arg1[%c0_209, %c4_210, %c3_211, %c0_212, %c0_213] : memref<1x16x5x8x8xf32, #tpu.memory_space<vmem>>, vector<1x2x1x8x8xf32>
    %111 = vector.shape_cast %110 : vector<1x2x1x8x8xf32> to vector<2x8x8xf32>
    %c0_214 = arith.constant 0 : index
    %c0_215 = arith.constant 0 : index
    %c5_216 = arith.constant 5 : index
    %c1_217 = arith.constant 1 : index
    %c0_218 = arith.constant 0 : index
    %112 = tpu.strided_load %arg2[%c0_214, %c0_215, %c5_216, %c1_217, %c0_218] {strides = array<i32: 1, 1, 1, 2, 2>} : memref<1x2x9x16x16xf32, #tpu.memory_space<vmem>>, vector<1x2x1x8x8xf32>
    %113 = vector.shape_cast %112 : vector<1x2x1x8x8xf32> to vector<2x8x8xf32>
    %114 = vector.shape_cast %111 : vector<2x8x8xf32> to vector<1x2x1x8x8xf32>
    tpu.strided_store %arg2[%c0_214, %c0_215, %c5_216, %c1_217, %c0_218], %114 {strides = array<i32: 1, 1, 1, 2, 2>} : memref<1x2x9x16x16xf32, #tpu.memory_space<vmem>>, vector<1x2x1x8x8xf32>
    %c0_219 = arith.constant 0 : index
    %c6_220 = arith.constant 6 : index
    %c3_221 = arith.constant 3 : index
    %c0_222 = arith.constant 0 : index
    %c0_223 = arith.constant 0 : index
    %115 = vector.load %arg1[%c0_219, %c6_220, %c3_221, %c0_222, %c0_223] : memref<1x16x5x8x8xf32, #tpu.memory_space<vmem>>, vector<1x2x1x8x8xf32>
    %116 = vector.shape_cast %115 : vector<1x2x1x8x8xf32> to vector<2x8x8xf32>
    %c0_224 = arith.constant 0 : index
    %c0_225 = arith.constant 0 : index
    %c5_226 = arith.constant 5 : index
    %c1_227 = arith.constant 1 : index
    %c1_228 = arith.constant 1 : index
    %117 = tpu.strided_load %arg2[%c0_224, %c0_225, %c5_226, %c1_227, %c1_228] {strides = array<i32: 1, 1, 1, 2, 2>} : memref<1x2x9x16x16xf32, #tpu.memory_space<vmem>>, vector<1x2x1x8x8xf32>
    %118 = vector.shape_cast %117 : vector<1x2x1x8x8xf32> to vector<2x8x8xf32>
    %119 = vector.shape_cast %116 : vector<2x8x8xf32> to vector<1x2x1x8x8xf32>
    tpu.strided_store %arg2[%c0_224, %c0_225, %c5_226, %c1_227, %c1_228], %119 {strides = array<i32: 1, 1, 1, 2, 2>} : memref<1x2x9x16x16xf32, #tpu.memory_space<vmem>>, vector<1x2x1x8x8xf32>
    %c0_229 = arith.constant 0 : index
    %c8_230 = arith.constant 8 : index
    %c3_231 = arith.constant 3 : index
    %c0_232 = arith.constant 0 : index
    %c0_233 = arith.constant 0 : index
    %120 = vector.load %arg1[%c0_229, %c8_230, %c3_231, %c0_232, %c0_233] : memref<1x16x5x8x8xf32, #tpu.memory_space<vmem>>, vector<1x2x1x8x8xf32>
    %121 = vector.shape_cast %120 : vector<1x2x1x8x8xf32> to vector<2x8x8xf32>
    %c0_234 = arith.constant 0 : index
    %c0_235 = arith.constant 0 : index
    %c6_236 = arith.constant 6 : index
    %c0_237 = arith.constant 0 : index
    %c0_238 = arith.constant 0 : index
    %122 = tpu.strided_load %arg2[%c0_234, %c0_235, %c6_236, %c0_237, %c0_238] {strides = array<i32: 1, 1, 1, 2, 2>} : memref<1x2x9x16x16xf32, #tpu.memory_space<vmem>>, vector<1x2x1x8x8xf32>
    %123 = vector.shape_cast %122 : vector<1x2x1x8x8xf32> to vector<2x8x8xf32>
    %124 = vector.shape_cast %121 : vector<2x8x8xf32> to vector<1x2x1x8x8xf32>
    tpu.strided_store %arg2[%c0_234, %c0_235, %c6_236, %c0_237, %c0_238], %124 {strides = array<i32: 1, 1, 1, 2, 2>} : memref<1x2x9x16x16xf32, #tpu.memory_space<vmem>>, vector<1x2x1x8x8xf32>
    %c0_239 = arith.constant 0 : index
    %c10_240 = arith.constant 10 : index
    %c3_241 = arith.constant 3 : index
    %c0_242 = arith.constant 0 : index
    %c0_243 = arith.constant 0 : index
    %125 = vector.load %arg1[%c0_239, %c10_240, %c3_241, %c0_242, %c0_243] : memref<1x16x5x8x8xf32, #tpu.memory_space<vmem>>, vector<1x2x1x8x8xf32>
    %126 = vector.shape_cast %125 : vector<1x2x1x8x8xf32> to vector<2x8x8xf32>
    %c0_244 = arith.constant 0 : index
    %c0_245 = arith.constant 0 : index
    %c6_246 = arith.constant 6 : index
    %c0_247 = arith.constant 0 : index
    %c1_248 = arith.constant 1 : index
    %127 = tpu.strided_load %arg2[%c0_244, %c0_245, %c6_246, %c0_247, %c1_248] {strides = array<i32: 1, 1, 1, 2, 2>} : memref<1x2x9x16x16xf32, #tpu.memory_space<vmem>>, vector<1x2x1x8x8xf32>
    %128 = vector.shape_cast %127 : vector<1x2x1x8x8xf32> to vector<2x8x8xf32>
    %129 = vector.shape_cast %126 : vector<2x8x8xf32> to vector<1x2x1x8x8xf32>
    tpu.strided_store %arg2[%c0_244, %c0_245, %c6_246, %c0_247, %c1_248], %129 {strides = array<i32: 1, 1, 1, 2, 2>} : memref<1x2x9x16x16xf32, #tpu.memory_space<vmem>>, vector<1x2x1x8x8xf32>
    %c0_249 = arith.constant 0 : index
    %c12_250 = arith.constant 12 : index
    %c3_251 = arith.constant 3 : index
    %c0_252 = arith.constant 0 : index
    %c0_253 = arith.constant 0 : index
    %130 = vector.load %arg1[%c0_249, %c12_250, %c3_251, %c0_252, %c0_253] : memref<1x16x5x8x8xf32, #tpu.memory_space<vmem>>, vector<1x2x1x8x8xf32>
    %131 = vector.shape_cast %130 : vector<1x2x1x8x8xf32> to vector<2x8x8xf32>
    %c0_254 = arith.constant 0 : index
    %c0_255 = arith.constant 0 : index
    %c6_256 = arith.constant 6 : index
    %c1_257 = arith.constant 1 : index
    %c0_258 = arith.constant 0 : index
    %132 = tpu.strided_load %arg2[%c0_254, %c0_255, %c6_256, %c1_257, %c0_258] {strides = array<i32: 1, 1, 1, 2, 2>} : memref<1x2x9x16x16xf32, #tpu.memory_space<vmem>>, vector<1x2x1x8x8xf32>
    %133 = vector.shape_cast %132 : vector<1x2x1x8x8xf32> to vector<2x8x8xf32>
    %134 = vector.shape_cast %131 : vector<2x8x8xf32> to vector<1x2x1x8x8xf32>
    tpu.strided_store %arg2[%c0_254, %c0_255, %c6_256, %c1_257, %c0_258], %134 {strides = array<i32: 1, 1, 1, 2, 2>} : memref<1x2x9x16x16xf32, #tpu.memory_space<vmem>>, vector<1x2x1x8x8xf32>
    %c0_259 = arith.constant 0 : index
    %c14_260 = arith.constant 14 : index
    %c3_261 = arith.constant 3 : index
    %c0_262 = arith.constant 0 : index
    %c0_263 = arith.constant 0 : index
    %135 = vector.load %arg1[%c0_259, %c14_260, %c3_261, %c0_262, %c0_263] : memref<1x16x5x8x8xf32, #tpu.memory_space<vmem>>, vector<1x2x1x8x8xf32>
    %136 = vector.shape_cast %135 : vector<1x2x1x8x8xf32> to vector<2x8x8xf32>
    %c0_264 = arith.constant 0 : index
    %c0_265 = arith.constant 0 : index
    %c6_266 = arith.constant 6 : index
    %c1_267 = arith.constant 1 : index
    %c1_268 = arith.constant 1 : index
    %137 = tpu.strided_load %arg2[%c0_264, %c0_265, %c6_266, %c1_267, %c1_268] {strides = array<i32: 1, 1, 1, 2, 2>} : memref<1x2x9x16x16xf32, #tpu.memory_space<vmem>>, vector<1x2x1x8x8xf32>
    %138 = vector.shape_cast %137 : vector<1x2x1x8x8xf32> to vector<2x8x8xf32>
    %139 = vector.shape_cast %136 : vector<2x8x8xf32> to vector<1x2x1x8x8xf32>
    tpu.strided_store %arg2[%c0_264, %c0_265, %c6_266, %c1_267, %c1_268], %139 {strides = array<i32: 1, 1, 1, 2, 2>} : memref<1x2x9x16x16xf32, #tpu.memory_space<vmem>>, vector<1x2x1x8x8xf32>
    %c0_269 = arith.constant 0 : index
    %c0_270 = arith.constant 0 : index
    %c4_271 = arith.constant 4 : index
    %c0_272 = arith.constant 0 : index
    %c0_273 = arith.constant 0 : index
    %140 = vector.load %arg1[%c0_269, %c0_270, %c4_271, %c0_272, %c0_273] : memref<1x16x5x8x8xf32, #tpu.memory_space<vmem>>, vector<1x2x1x8x8xf32>
    %141 = vector.shape_cast %140 : vector<1x2x1x8x8xf32> to vector<2x8x8xf32>
    %c0_274 = arith.constant 0 : index
    %c0_275 = arith.constant 0 : index
    %c7 = arith.constant 7 : index
    %c0_276 = arith.constant 0 : index
    %c0_277 = arith.constant 0 : index
    %142 = tpu.strided_load %arg2[%c0_274, %c0_275, %c7, %c0_276, %c0_277] {strides = array<i32: 1, 1, 1, 2, 2>} : memref<1x2x9x16x16xf32, #tpu.memory_space<vmem>>, vector<1x2x1x8x8xf32>
    %143 = vector.shape_cast %142 : vector<1x2x1x8x8xf32> to vector<2x8x8xf32>
    %144 = vector.shape_cast %141 : vector<2x8x8xf32> to vector<1x2x1x8x8xf32>
    tpu.strided_store %arg2[%c0_274, %c0_275, %c7, %c0_276, %c0_277], %144 {strides = array<i32: 1, 1, 1, 2, 2>} : memref<1x2x9x16x16xf32, #tpu.memory_space<vmem>>, vector<1x2x1x8x8xf32>
    %c0_278 = arith.constant 0 : index
    %c2_279 = arith.constant 2 : index
    %c4_280 = arith.constant 4 : index
    %c0_281 = arith.constant 0 : index
    %c0_282 = arith.constant 0 : index
    %145 = vector.load %arg1[%c0_278, %c2_279, %c4_280, %c0_281, %c0_282] : memref<1x16x5x8x8xf32, #tpu.memory_space<vmem>>, vector<1x2x1x8x8xf32>
    %146 = vector.shape_cast %145 : vector<1x2x1x8x8xf32> to vector<2x8x8xf32>
    %c0_283 = arith.constant 0 : index
    %c0_284 = arith.constant 0 : index
    %c7_285 = arith.constant 7 : index
    %c0_286 = arith.constant 0 : index
    %c1_287 = arith.constant 1 : index
    %147 = tpu.strided_load %arg2[%c0_283, %c0_284, %c7_285, %c0_286, %c1_287] {strides = array<i32: 1, 1, 1, 2, 2>} : memref<1x2x9x16x16xf32, #tpu.memory_space<vmem>>, vector<1x2x1x8x8xf32>
    %148 = vector.shape_cast %147 : vector<1x2x1x8x8xf32> to vector<2x8x8xf32>
    %149 = vector.shape_cast %146 : vector<2x8x8xf32> to vector<1x2x1x8x8xf32>
    tpu.strided_store %arg2[%c0_283, %c0_284, %c7_285, %c0_286, %c1_287], %149 {strides = array<i32: 1, 1, 1, 2, 2>} : memref<1x2x9x16x16xf32, #tpu.memory_space<vmem>>, vector<1x2x1x8x8xf32>
    %c0_288 = arith.constant 0 : index
    %c4_289 = arith.constant 4 : index
    %c4_290 = arith.constant 4 : index
    %c0_291 = arith.constant 0 : index
    %c0_292 = arith.constant 0 : index
    %150 = vector.load %arg1[%c0_288, %c4_289, %c4_290, %c0_291, %c0_292] : memref<1x16x5x8x8xf32, #tpu.memory_space<vmem>>, vector<1x2x1x8x8xf32>
    %151 = vector.shape_cast %150 : vector<1x2x1x8x8xf32> to vector<2x8x8xf32>
    %c0_293 = arith.constant 0 : index
    %c0_294 = arith.constant 0 : index
    %c7_295 = arith.constant 7 : index
    %c1_296 = arith.constant 1 : index
    %c0_297 = arith.constant 0 : index
    %152 = tpu.strided_load %arg2[%c0_293, %c0_294, %c7_295, %c1_296, %c0_297] {strides = array<i32: 1, 1, 1, 2, 2>} : memref<1x2x9x16x16xf32, #tpu.memory_space<vmem>>, vector<1x2x1x8x8xf32>
    %153 = vector.shape_cast %152 : vector<1x2x1x8x8xf32> to vector<2x8x8xf32>
    %154 = vector.shape_cast %151 : vector<2x8x8xf32> to vector<1x2x1x8x8xf32>
    tpu.strided_store %arg2[%c0_293, %c0_294, %c7_295, %c1_296, %c0_297], %154 {strides = array<i32: 1, 1, 1, 2, 2>} : memref<1x2x9x16x16xf32, #tpu.memory_space<vmem>>, vector<1x2x1x8x8xf32>
    %c0_298 = arith.constant 0 : index
    %c6_299 = arith.constant 6 : index
    %c4_300 = arith.constant 4 : index
    %c0_301 = arith.constant 0 : index
    %c0_302 = arith.constant 0 : index
    %155 = vector.load %arg1[%c0_298, %c6_299, %c4_300, %c0_301, %c0_302] : memref<1x16x5x8x8xf32, #tpu.memory_space<vmem>>, vector<1x2x1x8x8xf32>
    %156 = vector.shape_cast %155 : vector<1x2x1x8x8xf32> to vector<2x8x8xf32>
    %c0_303 = arith.constant 0 : index
    %c0_304 = arith.constant 0 : index
    %c7_305 = arith.constant 7 : index
    %c1_306 = arith.constant 1 : index
    %c1_307 = arith.constant 1 : index
    %157 = tpu.strided_load %arg2[%c0_303, %c0_304, %c7_305, %c1_306, %c1_307] {strides = array<i32: 1, 1, 1, 2, 2>} : memref<1x2x9x16x16xf32, #tpu.memory_space<vmem>>, vector<1x2x1x8x8xf32>
    %158 = vector.shape_cast %157 : vector<1x2x1x8x8xf32> to vector<2x8x8xf32>
    %159 = vector.shape_cast %156 : vector<2x8x8xf32> to vector<1x2x1x8x8xf32>
    tpu.strided_store %arg2[%c0_303, %c0_304, %c7_305, %c1_306, %c1_307], %159 {strides = array<i32: 1, 1, 1, 2, 2>} : memref<1x2x9x16x16xf32, #tpu.memory_space<vmem>>, vector<1x2x1x8x8xf32>
    %c0_308 = arith.constant 0 : index
    %c8_309 = arith.constant 8 : index
    %c4_310 = arith.constant 4 : index
    %c0_311 = arith.constant 0 : index
    %c0_312 = arith.constant 0 : index
    %160 = vector.load %arg1[%c0_308, %c8_309, %c4_310, %c0_311, %c0_312] : memref<1x16x5x8x8xf32, #tpu.memory_space<vmem>>, vector<1x2x1x8x8xf32>
    %161 = vector.shape_cast %160 : vector<1x2x1x8x8xf32> to vector<2x8x8xf32>
    %c0_313 = arith.constant 0 : index
    %c0_314 = arith.constant 0 : index
    %c8_315 = arith.constant 8 : index
    %c0_316 = arith.constant 0 : index
    %c0_317 = arith.constant 0 : index
    %162 = tpu.strided_load %arg2[%c0_313, %c0_314, %c8_315, %c0_316, %c0_317] {strides = array<i32: 1, 1, 1, 2, 2>} : memref<1x2x9x16x16xf32, #tpu.memory_space<vmem>>, vector<1x2x1x8x8xf32>
    %163 = vector.shape_cast %162 : vector<1x2x1x8x8xf32> to vector<2x8x8xf32>
    %164 = vector.shape_cast %161 : vector<2x8x8xf32> to vector<1x2x1x8x8xf32>
    tpu.strided_store %arg2[%c0_313, %c0_314, %c8_315, %c0_316, %c0_317], %164 {strides = array<i32: 1, 1, 1, 2, 2>} : memref<1x2x9x16x16xf32, #tpu.memory_space<vmem>>, vector<1x2x1x8x8xf32>
    %c0_318 = arith.constant 0 : index
    %c10_319 = arith.constant 10 : index
    %c4_320 = arith.constant 4 : index
    %c0_321 = arith.constant 0 : index
    %c0_322 = arith.constant 0 : index
    %165 = vector.load %arg1[%c0_318, %c10_319, %c4_320, %c0_321, %c0_322] : memref<1x16x5x8x8xf32, #tpu.memory_space<vmem>>, vector<1x2x1x8x8xf32>
    %166 = vector.shape_cast %165 : vector<1x2x1x8x8xf32> to vector<2x8x8xf32>
    %c0_323 = arith.constant 0 : index
    %c0_324 = arith.constant 0 : index
    %c8_325 = arith.constant 8 : index
    %c0_326 = arith.constant 0 : index
    %c1_327 = arith.constant 1 : index
    %167 = tpu.strided_load %arg2[%c0_323, %c0_324, %c8_325, %c0_326, %c1_327] {strides = array<i32: 1, 1, 1, 2, 2>} : memref<1x2x9x16x16xf32, #tpu.memory_space<vmem>>, vector<1x2x1x8x8xf32>
    %168 = vector.shape_cast %167 : vector<1x2x1x8x8xf32> to vector<2x8x8xf32>
    %169 = vector.shape_cast %166 : vector<2x8x8xf32> to vector<1x2x1x8x8xf32>
    tpu.strided_store %arg2[%c0_323, %c0_324, %c8_325, %c0_326, %c1_327], %169 {strides = array<i32: 1, 1, 1, 2, 2>} : memref<1x2x9x16x16xf32, #tpu.memory_space<vmem>>, vector<1x2x1x8x8xf32>
    %c0_328 = arith.constant 0 : index
    %c12_329 = arith.constant 12 : index
    %c4_330 = arith.constant 4 : index
    %c0_331 = arith.constant 0 : index
    %c0_332 = arith.constant 0 : index
    %170 = vector.load %arg1[%c0_328, %c12_329, %c4_330, %c0_331, %c0_332] : memref<1x16x5x8x8xf32, #tpu.memory_space<vmem>>, vector<1x2x1x8x8xf32>
    %171 = vector.shape_cast %170 : vector<1x2x1x8x8xf32> to vector<2x8x8xf32>
    %c0_333 = arith.constant 0 : index
    %c0_334 = arith.constant 0 : index
    %c8_335 = arith.constant 8 : index
    %c1_336 = arith.constant 1 : index
    %c0_337 = arith.constant 0 : index
    %172 = tpu.strided_load %arg2[%c0_333, %c0_334, %c8_335, %c1_336, %c0_337] {strides = array<i32: 1, 1, 1, 2, 2>} : memref<1x2x9x16x16xf32, #tpu.memory_space<vmem>>, vector<1x2x1x8x8xf32>
    %173 = vector.shape_cast %172 : vector<1x2x1x8x8xf32> to vector<2x8x8xf32>
    %174 = vector.shape_cast %171 : vector<2x8x8xf32> to vector<1x2x1x8x8xf32>
    tpu.strided_store %arg2[%c0_333, %c0_334, %c8_335, %c1_336, %c0_337], %174 {strides = array<i32: 1, 1, 1, 2, 2>} : memref<1x2x9x16x16xf32, #tpu.memory_space<vmem>>, vector<1x2x1x8x8xf32>
    %c0_338 = arith.constant 0 : index
    %c14_339 = arith.constant 14 : index
    %c4_340 = arith.constant 4 : index
    %c0_341 = arith.constant 0 : index
    %c0_342 = arith.constant 0 : index
    %175 = vector.load %arg1[%c0_338, %c14_339, %c4_340, %c0_341, %c0_342] : memref<1x16x5x8x8xf32, #tpu.memory_space<vmem>>, vector<1x2x1x8x8xf32>
    %176 = vector.shape_cast %175 : vector<1x2x1x8x8xf32> to vector<2x8x8xf32>
    %c0_343 = arith.constant 0 : index
    %c0_344 = arith.constant 0 : index
    %c8_345 = arith.constant 8 : index
    %c1_346 = arith.constant 1 : index
    %c1_347 = arith.constant 1 : index
    %177 = tpu.strided_load %arg2[%c0_343, %c0_344, %c8_345, %c1_346, %c1_347] {strides = array<i32: 1, 1, 1, 2, 2>} : memref<1x2x9x16x16xf32, #tpu.memory_space<vmem>>, vector<1x2x1x8x8xf32>
    %178 = vector.shape_cast %177 : vector<1x2x1x8x8xf32> to vector<2x8x8xf32>
    %179 = vector.shape_cast %176 : vector<2x8x8xf32> to vector<1x2x1x8x8xf32>
    tpu.strided_store %arg2[%c0_343, %c0_344, %c8_345, %c1_346, %c1_347], %179 {strides = array<i32: 1, 1, 1, 2, 2>} : memref<1x2x9x16x16xf32, #tpu.memory_space<vmem>>, vector<1x2x1x8x8xf32>
    return
  }
  func.func @transform_0(%arg0: i32) -> (i32, i32, i32, i32, i32) {
    %c0_i32 = arith.constant 0 : i32
    %c0_i32_0 = arith.constant 0 : i32
    %c0_i32_1 = arith.constant 0 : i32
    %c0_i32_2 = arith.constant 0 : i32
    %c0_i32_3 = arith.constant 0 : i32
    return %arg0, %c0_i32, %c0_i32_0, %c0_i32_1, %c0_i32_2 : i32, i32, i32, i32, i32
  }
  func.func @transform_1(%arg0: i32) -> (i32, i32, i32, i32, i32) {
    %c0_i32 = arith.constant 0 : i32
    %c0_i32_0 = arith.constant 0 : i32
    %c0_i32_1 = arith.constant 0 : i32
    %c0_i32_2 = arith.constant 0 : i32
    %c0_i32_3 = arith.constant 0 : i32
    return %arg0, %c0_i32, %c0_i32_0, %c0_i32_1, %c0_i32_2 : i32, i32, i32, i32, i32
  }
}

module attributes {stable_mosaic.version = 11 : i64} {
  func.func @kernel(%arg0: i32, %arg1: memref<1x16x5x8x8xf32, #tpu.memory_space<vmem>>, %arg2: memref<1x2x9x8x2x8x2xf32, #tpu.memory_space<vmem>>) attributes {dimension_semantics = [#tpu.dimension_semantics<parallel>], iteration_bounds = array<i64: 2>, scalar_prefetch = 0 : i64, scratch_operands = 0 : i64, tpu.core_type = #tpu.core_type<tc>, window_params = [{transform_indices = @transform_0, window_bounds = array<i64: 1, 16, 5, 8, 8>}, {transform_indices = @transform_1, window_bounds = array<i64: 1, 2, 9, 8, 2, 8, 2>}]} {
    %c0 = arith.constant 0 : index
    %c8 = arith.constant 8 : index
    %c0_0 = arith.constant 0 : index
    %c0_1 = arith.constant 0 : index
    %c0_2 = arith.constant 0 : index
    %0 = vector.load %arg1[%c0, %c8, %c0_0, %c0_1, %c0_2] : memref<1x16x5x8x8xf32, #tpu.memory_space<vmem>>, vector<1x2x1x8x8xf32>
    %1 = vector.shape_cast %0 : vector<1x2x1x8x8xf32> to vector<2x8x8xf32>
    %c0_3 = arith.constant 0 : index
    %c0_4 = arith.constant 0 : index
    %c0_5 = arith.constant 0 : index
    %c0_6 = arith.constant 0 : index
    %c0_7 = arith.constant 0 : index
    %c0_8 = arith.constant 0 : index
    %c0_9 = arith.constant 0 : index
    %2 = vector.load %arg2[%c0_3, %c0_4, %c0_5, %c0_6, %c0_7, %c0_8, %c0_9] : memref<1x2x9x8x2x8x2xf32, #tpu.memory_space<vmem>>, vector<1x2x1x8x1x8x1xf32>
    %3 = vector.shape_cast %2 : vector<1x2x1x8x1x8x1xf32> to vector<2x8x8xf32>
    %4 = vector.shape_cast %1 : vector<2x8x8xf32> to vector<1x2x1x8x1x8x1xf32>
    tpu.vector_store %arg2[%c0_3, %c0_4, %c0_5, %c0_6, %c0_7, %c0_8, %c0_9], %4 {strides = array<i32>} : memref<1x2x9x8x2x8x2xf32, #tpu.memory_space<vmem>>, vector<1x2x1x8x1x8x1xf32>,
    %c0_10 = arith.constant 0 : index
    %c10 = arith.constant 10 : index
    %c0_11 = arith.constant 0 : index
    %c0_12 = arith.constant 0 : index
    %c0_13 = arith.constant 0 : index
    %5 = vector.load %arg1[%c0_10, %c10, %c0_11, %c0_12, %c0_13] : memref<1x16x5x8x8xf32, #tpu.memory_space<vmem>>, vector<1x2x1x8x8xf32>
    %6 = vector.shape_cast %5 : vector<1x2x1x8x8xf32> to vector<2x8x8xf32>
    %c0_14 = arith.constant 0 : index
    %c0_15 = arith.constant 0 : index
    %c0_16 = arith.constant 0 : index
    %c0_17 = arith.constant 0 : index
    %c0_18 = arith.constant 0 : index
    %c0_19 = arith.constant 0 : index
    %c1 = arith.constant 1 : index
    %7 = vector.load %arg2[%c0_14, %c0_15, %c0_16, %c0_17, %c0_18, %c0_19, %c1] : memref<1x2x9x8x2x8x2xf32, #tpu.memory_space<vmem>>, vector<1x2x1x8x1x8x1xf32>
    %8 = vector.shape_cast %7 : vector<1x2x1x8x1x8x1xf32> to vector<2x8x8xf32>
    %9 = vector.shape_cast %6 : vector<2x8x8xf32> to vector<1x2x1x8x1x8x1xf32>
    tpu.vector_store %arg2[%c0_14, %c0_15, %c0_16, %c0_17, %c0_18, %c0_19, %c1], %9 {strides = array<i32>} : memref<1x2x9x8x2x8x2xf32, #tpu.memory_space<vmem>>, vector<1x2x1x8x1x8x1xf32>,
    %c0_20 = arith.constant 0 : index
    %c12 = arith.constant 12 : index
    %c0_21 = arith.constant 0 : index
    %c0_22 = arith.constant 0 : index
    %c0_23 = arith.constant 0 : index
    %10 = vector.load %arg1[%c0_20, %c12, %c0_21, %c0_22, %c0_23] : memref<1x16x5x8x8xf32, #tpu.memory_space<vmem>>, vector<1x2x1x8x8xf32>
    %11 = vector.shape_cast %10 : vector<1x2x1x8x8xf32> to vector<2x8x8xf32>
    %c0_24 = arith.constant 0 : index
    %c0_25 = arith.constant 0 : index
    %c0_26 = arith.constant 0 : index
    %c0_27 = arith.constant 0 : index
    %c1_28 = arith.constant 1 : index
    %c0_29 = arith.constant 0 : index
    %c0_30 = arith.constant 0 : index
    %12 = vector.load %arg2[%c0_24, %c0_25, %c0_26, %c0_27, %c1_28, %c0_29, %c0_30] : memref<1x2x9x8x2x8x2xf32, #tpu.memory_space<vmem>>, vector<1x2x1x8x1x8x1xf32>
    %13 = vector.shape_cast %12 : vector<1x2x1x8x1x8x1xf32> to vector<2x8x8xf32>
    %14 = vector.shape_cast %11 : vector<2x8x8xf32> to vector<1x2x1x8x1x8x1xf32>
    tpu.vector_store %arg2[%c0_24, %c0_25, %c0_26, %c0_27, %c1_28, %c0_29, %c0_30], %14 {strides = array<i32>} : memref<1x2x9x8x2x8x2xf32, #tpu.memory_space<vmem>>, vector<1x2x1x8x1x8x1xf32>,
    %c0_31 = arith.constant 0 : index
    %c14 = arith.constant 14 : index
    %c0_32 = arith.constant 0 : index
    %c0_33 = arith.constant 0 : index
    %c0_34 = arith.constant 0 : index
    %15 = vector.load %arg1[%c0_31, %c14, %c0_32, %c0_33, %c0_34] : memref<1x16x5x8x8xf32, #tpu.memory_space<vmem>>, vector<1x2x1x8x8xf32>
    %16 = vector.shape_cast %15 : vector<1x2x1x8x8xf32> to vector<2x8x8xf32>
    %c0_35 = arith.constant 0 : index
    %c0_36 = arith.constant 0 : index
    %c0_37 = arith.constant 0 : index
    %c0_38 = arith.constant 0 : index
    %c1_39 = arith.constant 1 : index
    %c0_40 = arith.constant 0 : index
    %c1_41 = arith.constant 1 : index
    %17 = vector.load %arg2[%c0_35, %c0_36, %c0_37, %c0_38, %c1_39, %c0_40, %c1_41] : memref<1x2x9x8x2x8x2xf32, #tpu.memory_space<vmem>>, vector<1x2x1x8x1x8x1xf32>
    %18 = vector.shape_cast %17 : vector<1x2x1x8x1x8x1xf32> to vector<2x8x8xf32>
    %19 = vector.shape_cast %16 : vector<2x8x8xf32> to vector<1x2x1x8x1x8x1xf32>
    tpu.vector_store %arg2[%c0_35, %c0_36, %c0_37, %c0_38, %c1_39, %c0_40, %c1_41], %19 {strides = array<i32>} : memref<1x2x9x8x2x8x2xf32, #tpu.memory_space<vmem>>, vector<1x2x1x8x1x8x1xf32>,
    %c0_42 = arith.constant 0 : index
    %c0_43 = arith.constant 0 : index
    %c1_44 = arith.constant 1 : index
    %c0_45 = arith.constant 0 : index
    %c0_46 = arith.constant 0 : index
    %20 = vector.load %arg1[%c0_42, %c0_43, %c1_44, %c0_45, %c0_46] : memref<1x16x5x8x8xf32, #tpu.memory_space<vmem>>, vector<1x2x1x8x8xf32>
    %21 = vector.shape_cast %20 : vector<1x2x1x8x8xf32> to vector<2x8x8xf32>
    %c0_47 = arith.constant 0 : index
    %c0_48 = arith.constant 0 : index
    %c1_49 = arith.constant 1 : index
    %c0_50 = arith.constant 0 : index
    %c0_51 = arith.constant 0 : index
    %c0_52 = arith.constant 0 : index
    %c0_53 = arith.constant 0 : index
    %22 = vector.load %arg2[%c0_47, %c0_48, %c1_49, %c0_50, %c0_51, %c0_52, %c0_53] : memref<1x2x9x8x2x8x2xf32, #tpu.memory_space<vmem>>, vector<1x2x1x8x1x8x1xf32>
    %23 = vector.shape_cast %22 : vector<1x2x1x8x1x8x1xf32> to vector<2x8x8xf32>
    %24 = vector.shape_cast %21 : vector<2x8x8xf32> to vector<1x2x1x8x1x8x1xf32>
    tpu.vector_store %arg2[%c0_47, %c0_48, %c1_49, %c0_50, %c0_51, %c0_52, %c0_53], %24 {strides = array<i32>} : memref<1x2x9x8x2x8x2xf32, #tpu.memory_space<vmem>>, vector<1x2x1x8x1x8x1xf32>,
    %c0_54 = arith.constant 0 : index
    %c2 = arith.constant 2 : index
    %c1_55 = arith.constant 1 : index
    %c0_56 = arith.constant 0 : index
    %c0_57 = arith.constant 0 : index
    %25 = vector.load %arg1[%c0_54, %c2, %c1_55, %c0_56, %c0_57] : memref<1x16x5x8x8xf32, #tpu.memory_space<vmem>>, vector<1x2x1x8x8xf32>
    %26 = vector.shape_cast %25 : vector<1x2x1x8x8xf32> to vector<2x8x8xf32>
    %c0_58 = arith.constant 0 : index
    %c0_59 = arith.constant 0 : index
    %c1_60 = arith.constant 1 : index
    %c0_61 = arith.constant 0 : index
    %c0_62 = arith.constant 0 : index
    %c0_63 = arith.constant 0 : index
    %c1_64 = arith.constant 1 : index
    %27 = vector.load %arg2[%c0_58, %c0_59, %c1_60, %c0_61, %c0_62, %c0_63, %c1_64] : memref<1x2x9x8x2x8x2xf32, #tpu.memory_space<vmem>>, vector<1x2x1x8x1x8x1xf32>
    %28 = vector.shape_cast %27 : vector<1x2x1x8x1x8x1xf32> to vector<2x8x8xf32>
    %29 = vector.shape_cast %26 : vector<2x8x8xf32> to vector<1x2x1x8x1x8x1xf32>
    tpu.vector_store %arg2[%c0_58, %c0_59, %c1_60, %c0_61, %c0_62, %c0_63, %c1_64], %29 {strides = array<i32>} : memref<1x2x9x8x2x8x2xf32, #tpu.memory_space<vmem>>, vector<1x2x1x8x1x8x1xf32>,
    %c0_65 = arith.constant 0 : index
    %c4 = arith.constant 4 : index
    %c1_66 = arith.constant 1 : index
    %c0_67 = arith.constant 0 : index
    %c0_68 = arith.constant 0 : index
    %30 = vector.load %arg1[%c0_65, %c4, %c1_66, %c0_67, %c0_68] : memref<1x16x5x8x8xf32, #tpu.memory_space<vmem>>, vector<1x2x1x8x8xf32>
    %31 = vector.shape_cast %30 : vector<1x2x1x8x8xf32> to vector<2x8x8xf32>
    %c0_69 = arith.constant 0 : index
    %c0_70 = arith.constant 0 : index
    %c1_71 = arith.constant 1 : index
    %c0_72 = arith.constant 0 : index
    %c1_73 = arith.constant 1 : index
    %c0_74 = arith.constant 0 : index
    %c0_75 = arith.constant 0 : index
    %32 = vector.load %arg2[%c0_69, %c0_70, %c1_71, %c0_72, %c1_73, %c0_74, %c0_75] : memref<1x2x9x8x2x8x2xf32, #tpu.memory_space<vmem>>, vector<1x2x1x8x1x8x1xf32>
    %33 = vector.shape_cast %32 : vector<1x2x1x8x1x8x1xf32> to vector<2x8x8xf32>
    %34 = vector.shape_cast %31 : vector<2x8x8xf32> to vector<1x2x1x8x1x8x1xf32>
    tpu.vector_store %arg2[%c0_69, %c0_70, %c1_71, %c0_72, %c1_73, %c0_74, %c0_75], %34 {strides = array<i32>} : memref<1x2x9x8x2x8x2xf32, #tpu.memory_space<vmem>>, vector<1x2x1x8x1x8x1xf32>,
    %c0_76 = arith.constant 0 : index
    %c6 = arith.constant 6 : index
    %c1_77 = arith.constant 1 : index
    %c0_78 = arith.constant 0 : index
    %c0_79 = arith.constant 0 : index
    %35 = vector.load %arg1[%c0_76, %c6, %c1_77, %c0_78, %c0_79] : memref<1x16x5x8x8xf32, #tpu.memory_space<vmem>>, vector<1x2x1x8x8xf32>
    %36 = vector.shape_cast %35 : vector<1x2x1x8x8xf32> to vector<2x8x8xf32>
    %c0_80 = arith.constant 0 : index
    %c0_81 = arith.constant 0 : index
    %c1_82 = arith.constant 1 : index
    %c0_83 = arith.constant 0 : index
    %c1_84 = arith.constant 1 : index
    %c0_85 = arith.constant 0 : index
    %c1_86 = arith.constant 1 : index
    %37 = vector.load %arg2[%c0_80, %c0_81, %c1_82, %c0_83, %c1_84, %c0_85, %c1_86] : memref<1x2x9x8x2x8x2xf32, #tpu.memory_space<vmem>>, vector<1x2x1x8x1x8x1xf32>
    %38 = vector.shape_cast %37 : vector<1x2x1x8x1x8x1xf32> to vector<2x8x8xf32>
    %39 = vector.shape_cast %36 : vector<2x8x8xf32> to vector<1x2x1x8x1x8x1xf32>
    tpu.vector_store %arg2[%c0_80, %c0_81, %c1_82, %c0_83, %c1_84, %c0_85, %c1_86], %39 {strides = array<i32>} : memref<1x2x9x8x2x8x2xf32, #tpu.memory_space<vmem>>, vector<1x2x1x8x1x8x1xf32>,
    %c0_87 = arith.constant 0 : index
    %c8_88 = arith.constant 8 : index
    %c1_89 = arith.constant 1 : index
    %c0_90 = arith.constant 0 : index
    %c0_91 = arith.constant 0 : index
    %40 = vector.load %arg1[%c0_87, %c8_88, %c1_89, %c0_90, %c0_91] : memref<1x16x5x8x8xf32, #tpu.memory_space<vmem>>, vector<1x2x1x8x8xf32>
    %41 = vector.shape_cast %40 : vector<1x2x1x8x8xf32> to vector<2x8x8xf32>
    %c0_92 = arith.constant 0 : index
    %c0_93 = arith.constant 0 : index
    %c2_94 = arith.constant 2 : index
    %c0_95 = arith.constant 0 : index
    %c0_96 = arith.constant 0 : index
    %c0_97 = arith.constant 0 : index
    %c0_98 = arith.constant 0 : index
    %42 = vector.load %arg2[%c0_92, %c0_93, %c2_94, %c0_95, %c0_96, %c0_97, %c0_98] : memref<1x2x9x8x2x8x2xf32, #tpu.memory_space<vmem>>, vector<1x2x1x8x1x8x1xf32>
    %43 = vector.shape_cast %42 : vector<1x2x1x8x1x8x1xf32> to vector<2x8x8xf32>
    %44 = vector.shape_cast %41 : vector<2x8x8xf32> to vector<1x2x1x8x1x8x1xf32>
    tpu.vector_store %arg2[%c0_92, %c0_93, %c2_94, %c0_95, %c0_96, %c0_97, %c0_98], %44 {strides = array<i32>} : memref<1x2x9x8x2x8x2xf32, #tpu.memory_space<vmem>>, vector<1x2x1x8x1x8x1xf32>,
    %c0_99 = arith.constant 0 : index
    %c10_100 = arith.constant 10 : index
    %c1_101 = arith.constant 1 : index
    %c0_102 = arith.constant 0 : index
    %c0_103 = arith.constant 0 : index
    %45 = vector.load %arg1[%c0_99, %c10_100, %c1_101, %c0_102, %c0_103] : memref<1x16x5x8x8xf32, #tpu.memory_space<vmem>>, vector<1x2x1x8x8xf32>
    %46 = vector.shape_cast %45 : vector<1x2x1x8x8xf32> to vector<2x8x8xf32>
    %c0_104 = arith.constant 0 : index
    %c0_105 = arith.constant 0 : index
    %c2_106 = arith.constant 2 : index
    %c0_107 = arith.constant 0 : index
    %c0_108 = arith.constant 0 : index
    %c0_109 = arith.constant 0 : index
    %c1_110 = arith.constant 1 : index
    %47 = vector.load %arg2[%c0_104, %c0_105, %c2_106, %c0_107, %c0_108, %c0_109, %c1_110] : memref<1x2x9x8x2x8x2xf32, #tpu.memory_space<vmem>>, vector<1x2x1x8x1x8x1xf32>
    %48 = vector.shape_cast %47 : vector<1x2x1x8x1x8x1xf32> to vector<2x8x8xf32>
    %49 = vector.shape_cast %46 : vector<2x8x8xf32> to vector<1x2x1x8x1x8x1xf32>
    tpu.vector_store %arg2[%c0_104, %c0_105, %c2_106, %c0_107, %c0_108, %c0_109, %c1_110], %49 {strides = array<i32>} : memref<1x2x9x8x2x8x2xf32, #tpu.memory_space<vmem>>, vector<1x2x1x8x1x8x1xf32>,
    %c0_111 = arith.constant 0 : index
    %c12_112 = arith.constant 12 : index
    %c1_113 = arith.constant 1 : index
    %c0_114 = arith.constant 0 : index
    %c0_115 = arith.constant 0 : index
    %50 = vector.load %arg1[%c0_111, %c12_112, %c1_113, %c0_114, %c0_115] : memref<1x16x5x8x8xf32, #tpu.memory_space<vmem>>, vector<1x2x1x8x8xf32>
    %51 = vector.shape_cast %50 : vector<1x2x1x8x8xf32> to vector<2x8x8xf32>
    %c0_116 = arith.constant 0 : index
    %c0_117 = arith.constant 0 : index
    %c2_118 = arith.constant 2 : index
    %c0_119 = arith.constant 0 : index
    %c1_120 = arith.constant 1 : index
    %c0_121 = arith.constant 0 : index
    %c0_122 = arith.constant 0 : index
    %52 = vector.load %arg2[%c0_116, %c0_117, %c2_118, %c0_119, %c1_120, %c0_121, %c0_122] : memref<1x2x9x8x2x8x2xf32, #tpu.memory_space<vmem>>, vector<1x2x1x8x1x8x1xf32>
    %53 = vector.shape_cast %52 : vector<1x2x1x8x1x8x1xf32> to vector<2x8x8xf32>
    %54 = vector.shape_cast %51 : vector<2x8x8xf32> to vector<1x2x1x8x1x8x1xf32>
    tpu.vector_store %arg2[%c0_116, %c0_117, %c2_118, %c0_119, %c1_120, %c0_121, %c0_122], %54 {strides = array<i32>} : memref<1x2x9x8x2x8x2xf32, #tpu.memory_space<vmem>>, vector<1x2x1x8x1x8x1xf32>,
    %c0_123 = arith.constant 0 : index
    %c14_124 = arith.constant 14 : index
    %c1_125 = arith.constant 1 : index
    %c0_126 = arith.constant 0 : index
    %c0_127 = arith.constant 0 : index
    %55 = vector.load %arg1[%c0_123, %c14_124, %c1_125, %c0_126, %c0_127] : memref<1x16x5x8x8xf32, #tpu.memory_space<vmem>>, vector<1x2x1x8x8xf32>
    %56 = vector.shape_cast %55 : vector<1x2x1x8x8xf32> to vector<2x8x8xf32>
    %c0_128 = arith.constant 0 : index
    %c0_129 = arith.constant 0 : index
    %c2_130 = arith.constant 2 : index
    %c0_131 = arith.constant 0 : index
    %c1_132 = arith.constant 1 : index
    %c0_133 = arith.constant 0 : index
    %c1_134 = arith.constant 1 : index
    %57 = vector.load %arg2[%c0_128, %c0_129, %c2_130, %c0_131, %c1_132, %c0_133, %c1_134] : memref<1x2x9x8x2x8x2xf32, #tpu.memory_space<vmem>>, vector<1x2x1x8x1x8x1xf32>
    %58 = vector.shape_cast %57 : vector<1x2x1x8x1x8x1xf32> to vector<2x8x8xf32>
    %59 = vector.shape_cast %56 : vector<2x8x8xf32> to vector<1x2x1x8x1x8x1xf32>
    tpu.vector_store %arg2[%c0_128, %c0_129, %c2_130, %c0_131, %c1_132, %c0_133, %c1_134], %59 {strides = array<i32>} : memref<1x2x9x8x2x8x2xf32, #tpu.memory_space<vmem>>, vector<1x2x1x8x1x8x1xf32>,
    %c0_135 = arith.constant 0 : index
    %c0_136 = arith.constant 0 : index
    %c2_137 = arith.constant 2 : index
    %c0_138 = arith.constant 0 : index
    %c0_139 = arith.constant 0 : index
    %60 = vector.load %arg1[%c0_135, %c0_136, %c2_137, %c0_138, %c0_139] : memref<1x16x5x8x8xf32, #tpu.memory_space<vmem>>, vector<1x2x1x8x8xf32>
    %61 = vector.shape_cast %60 : vector<1x2x1x8x8xf32> to vector<2x8x8xf32>
    %c0_140 = arith.constant 0 : index
    %c0_141 = arith.constant 0 : index
    %c3 = arith.constant 3 : index
    %c0_142 = arith.constant 0 : index
    %c0_143 = arith.constant 0 : index
    %c0_144 = arith.constant 0 : index
    %c0_145 = arith.constant 0 : index
    %62 = vector.load %arg2[%c0_140, %c0_141, %c3, %c0_142, %c0_143, %c0_144, %c0_145] : memref<1x2x9x8x2x8x2xf32, #tpu.memory_space<vmem>>, vector<1x2x1x8x1x8x1xf32>
    %63 = vector.shape_cast %62 : vector<1x2x1x8x1x8x1xf32> to vector<2x8x8xf32>
    %64 = vector.shape_cast %61 : vector<2x8x8xf32> to vector<1x2x1x8x1x8x1xf32>
    tpu.vector_store %arg2[%c0_140, %c0_141, %c3, %c0_142, %c0_143, %c0_144, %c0_145], %64 {strides = array<i32>} : memref<1x2x9x8x2x8x2xf32, #tpu.memory_space<vmem>>, vector<1x2x1x8x1x8x1xf32>,
    %c0_146 = arith.constant 0 : index
    %c2_147 = arith.constant 2 : index
    %c2_148 = arith.constant 2 : index
    %c0_149 = arith.constant 0 : index
    %c0_150 = arith.constant 0 : index
    %65 = vector.load %arg1[%c0_146, %c2_147, %c2_148, %c0_149, %c0_150] : memref<1x16x5x8x8xf32, #tpu.memory_space<vmem>>, vector<1x2x1x8x8xf32>
    %66 = vector.shape_cast %65 : vector<1x2x1x8x8xf32> to vector<2x8x8xf32>
    %c0_151 = arith.constant 0 : index
    %c0_152 = arith.constant 0 : index
    %c3_153 = arith.constant 3 : index
    %c0_154 = arith.constant 0 : index
    %c0_155 = arith.constant 0 : index
    %c0_156 = arith.constant 0 : index
    %c1_157 = arith.constant 1 : index
    %67 = vector.load %arg2[%c0_151, %c0_152, %c3_153, %c0_154, %c0_155, %c0_156, %c1_157] : memref<1x2x9x8x2x8x2xf32, #tpu.memory_space<vmem>>, vector<1x2x1x8x1x8x1xf32>
    %68 = vector.shape_cast %67 : vector<1x2x1x8x1x8x1xf32> to vector<2x8x8xf32>
    %69 = vector.shape_cast %66 : vector<2x8x8xf32> to vector<1x2x1x8x1x8x1xf32>
    tpu.vector_store %arg2[%c0_151, %c0_152, %c3_153, %c0_154, %c0_155, %c0_156, %c1_157], %69 {strides = array<i32>} : memref<1x2x9x8x2x8x2xf32, #tpu.memory_space<vmem>>, vector<1x2x1x8x1x8x1xf32>,
    %c0_158 = arith.constant 0 : index
    %c4_159 = arith.constant 4 : index
    %c2_160 = arith.constant 2 : index
    %c0_161 = arith.constant 0 : index
    %c0_162 = arith.constant 0 : index
    %70 = vector.load %arg1[%c0_158, %c4_159, %c2_160, %c0_161, %c0_162] : memref<1x16x5x8x8xf32, #tpu.memory_space<vmem>>, vector<1x2x1x8x8xf32>
    %71 = vector.shape_cast %70 : vector<1x2x1x8x8xf32> to vector<2x8x8xf32>
    %c0_163 = arith.constant 0 : index
    %c0_164 = arith.constant 0 : index
    %c3_165 = arith.constant 3 : index
    %c0_166 = arith.constant 0 : index
    %c1_167 = arith.constant 1 : index
    %c0_168 = arith.constant 0 : index
    %c0_169 = arith.constant 0 : index
    %72 = vector.load %arg2[%c0_163, %c0_164, %c3_165, %c0_166, %c1_167, %c0_168, %c0_169] : memref<1x2x9x8x2x8x2xf32, #tpu.memory_space<vmem>>, vector<1x2x1x8x1x8x1xf32>
    %73 = vector.shape_cast %72 : vector<1x2x1x8x1x8x1xf32> to vector<2x8x8xf32>
    %74 = vector.shape_cast %71 : vector<2x8x8xf32> to vector<1x2x1x8x1x8x1xf32>
    tpu.vector_store %arg2[%c0_163, %c0_164, %c3_165, %c0_166, %c1_167, %c0_168, %c0_169], %74 {strides = array<i32>} : memref<1x2x9x8x2x8x2xf32, #tpu.memory_space<vmem>>, vector<1x2x1x8x1x8x1xf32>,
    %c0_170 = arith.constant 0 : index
    %c6_171 = arith.constant 6 : index
    %c2_172 = arith.constant 2 : index
    %c0_173 = arith.constant 0 : index
    %c0_174 = arith.constant 0 : index
    %75 = vector.load %arg1[%c0_170, %c6_171, %c2_172, %c0_173, %c0_174] : memref<1x16x5x8x8xf32, #tpu.memory_space<vmem>>, vector<1x2x1x8x8xf32>
    %76 = vector.shape_cast %75 : vector<1x2x1x8x8xf32> to vector<2x8x8xf32>
    %c0_175 = arith.constant 0 : index
    %c0_176 = arith.constant 0 : index
    %c3_177 = arith.constant 3 : index
    %c0_178 = arith.constant 0 : index
    %c1_179 = arith.constant 1 : index
    %c0_180 = arith.constant 0 : index
    %c1_181 = arith.constant 1 : index
    %77 = vector.load %arg2[%c0_175, %c0_176, %c3_177, %c0_178, %c1_179, %c0_180, %c1_181] : memref<1x2x9x8x2x8x2xf32, #tpu.memory_space<vmem>>, vector<1x2x1x8x1x8x1xf32>
    %78 = vector.shape_cast %77 : vector<1x2x1x8x1x8x1xf32> to vector<2x8x8xf32>
    %79 = vector.shape_cast %76 : vector<2x8x8xf32> to vector<1x2x1x8x1x8x1xf32>
    tpu.vector_store %arg2[%c0_175, %c0_176, %c3_177, %c0_178, %c1_179, %c0_180, %c1_181], %79 {strides = array<i32>} : memref<1x2x9x8x2x8x2xf32, #tpu.memory_space<vmem>>, vector<1x2x1x8x1x8x1xf32>,
    %c0_182 = arith.constant 0 : index
    %c8_183 = arith.constant 8 : index
    %c2_184 = arith.constant 2 : index
    %c0_185 = arith.constant 0 : index
    %c0_186 = arith.constant 0 : index
    %80 = vector.load %arg1[%c0_182, %c8_183, %c2_184, %c0_185, %c0_186] : memref<1x16x5x8x8xf32, #tpu.memory_space<vmem>>, vector<1x2x1x8x8xf32>
    %81 = vector.shape_cast %80 : vector<1x2x1x8x8xf32> to vector<2x8x8xf32>
    %c0_187 = arith.constant 0 : index
    %c0_188 = arith.constant 0 : index
    %c4_189 = arith.constant 4 : index
    %c0_190 = arith.constant 0 : index
    %c0_191 = arith.constant 0 : index
    %c0_192 = arith.constant 0 : index
    %c0_193 = arith.constant 0 : index
    %82 = vector.load %arg2[%c0_187, %c0_188, %c4_189, %c0_190, %c0_191, %c0_192, %c0_193] : memref<1x2x9x8x2x8x2xf32, #tpu.memory_space<vmem>>, vector<1x2x1x8x1x8x1xf32>
    %83 = vector.shape_cast %82 : vector<1x2x1x8x1x8x1xf32> to vector<2x8x8xf32>
    %84 = vector.shape_cast %81 : vector<2x8x8xf32> to vector<1x2x1x8x1x8x1xf32>
    tpu.vector_store %arg2[%c0_187, %c0_188, %c4_189, %c0_190, %c0_191, %c0_192, %c0_193], %84 {strides = array<i32>} : memref<1x2x9x8x2x8x2xf32, #tpu.memory_space<vmem>>, vector<1x2x1x8x1x8x1xf32>,
    %c0_194 = arith.constant 0 : index
    %c10_195 = arith.constant 10 : index
    %c2_196 = arith.constant 2 : index
    %c0_197 = arith.constant 0 : index
    %c0_198 = arith.constant 0 : index
    %85 = vector.load %arg1[%c0_194, %c10_195, %c2_196, %c0_197, %c0_198] : memref<1x16x5x8x8xf32, #tpu.memory_space<vmem>>, vector<1x2x1x8x8xf32>
    %86 = vector.shape_cast %85 : vector<1x2x1x8x8xf32> to vector<2x8x8xf32>
    %c0_199 = arith.constant 0 : index
    %c0_200 = arith.constant 0 : index
    %c4_201 = arith.constant 4 : index
    %c0_202 = arith.constant 0 : index
    %c0_203 = arith.constant 0 : index
    %c0_204 = arith.constant 0 : index
    %c1_205 = arith.constant 1 : index
    %87 = vector.load %arg2[%c0_199, %c0_200, %c4_201, %c0_202, %c0_203, %c0_204, %c1_205] : memref<1x2x9x8x2x8x2xf32, #tpu.memory_space<vmem>>, vector<1x2x1x8x1x8x1xf32>
    %88 = vector.shape_cast %87 : vector<1x2x1x8x1x8x1xf32> to vector<2x8x8xf32>
    %89 = vector.shape_cast %86 : vector<2x8x8xf32> to vector<1x2x1x8x1x8x1xf32>
    tpu.vector_store %arg2[%c0_199, %c0_200, %c4_201, %c0_202, %c0_203, %c0_204, %c1_205], %89 {strides = array<i32>} : memref<1x2x9x8x2x8x2xf32, #tpu.memory_space<vmem>>, vector<1x2x1x8x1x8x1xf32>,
    %c0_206 = arith.constant 0 : index
    %c12_207 = arith.constant 12 : index
    %c2_208 = arith.constant 2 : index
    %c0_209 = arith.constant 0 : index
    %c0_210 = arith.constant 0 : index
    %90 = vector.load %arg1[%c0_206, %c12_207, %c2_208, %c0_209, %c0_210] : memref<1x16x5x8x8xf32, #tpu.memory_space<vmem>>, vector<1x2x1x8x8xf32>
    %91 = vector.shape_cast %90 : vector<1x2x1x8x8xf32> to vector<2x8x8xf32>
    %c0_211 = arith.constant 0 : index
    %c0_212 = arith.constant 0 : index
    %c4_213 = arith.constant 4 : index
    %c0_214 = arith.constant 0 : index
    %c1_215 = arith.constant 1 : index
    %c0_216 = arith.constant 0 : index
    %c0_217 = arith.constant 0 : index
    %92 = vector.load %arg2[%c0_211, %c0_212, %c4_213, %c0_214, %c1_215, %c0_216, %c0_217] : memref<1x2x9x8x2x8x2xf32, #tpu.memory_space<vmem>>, vector<1x2x1x8x1x8x1xf32>
    %93 = vector.shape_cast %92 : vector<1x2x1x8x1x8x1xf32> to vector<2x8x8xf32>
    %94 = vector.shape_cast %91 : vector<2x8x8xf32> to vector<1x2x1x8x1x8x1xf32>
    tpu.vector_store %arg2[%c0_211, %c0_212, %c4_213, %c0_214, %c1_215, %c0_216, %c0_217], %94 {strides = array<i32>} : memref<1x2x9x8x2x8x2xf32, #tpu.memory_space<vmem>>, vector<1x2x1x8x1x8x1xf32>,
    %c0_218 = arith.constant 0 : index
    %c14_219 = arith.constant 14 : index
    %c2_220 = arith.constant 2 : index
    %c0_221 = arith.constant 0 : index
    %c0_222 = arith.constant 0 : index
    %95 = vector.load %arg1[%c0_218, %c14_219, %c2_220, %c0_221, %c0_222] : memref<1x16x5x8x8xf32, #tpu.memory_space<vmem>>, vector<1x2x1x8x8xf32>
    %96 = vector.shape_cast %95 : vector<1x2x1x8x8xf32> to vector<2x8x8xf32>
    %c0_223 = arith.constant 0 : index
    %c0_224 = arith.constant 0 : index
    %c4_225 = arith.constant 4 : index
    %c0_226 = arith.constant 0 : index
    %c1_227 = arith.constant 1 : index
    %c0_228 = arith.constant 0 : index
    %c1_229 = arith.constant 1 : index
    %97 = vector.load %arg2[%c0_223, %c0_224, %c4_225, %c0_226, %c1_227, %c0_228, %c1_229] : memref<1x2x9x8x2x8x2xf32, #tpu.memory_space<vmem>>, vector<1x2x1x8x1x8x1xf32>
    %98 = vector.shape_cast %97 : vector<1x2x1x8x1x8x1xf32> to vector<2x8x8xf32>
    %99 = vector.shape_cast %96 : vector<2x8x8xf32> to vector<1x2x1x8x1x8x1xf32>
    tpu.vector_store %arg2[%c0_223, %c0_224, %c4_225, %c0_226, %c1_227, %c0_228, %c1_229], %99 {strides = array<i32>} : memref<1x2x9x8x2x8x2xf32, #tpu.memory_space<vmem>>, vector<1x2x1x8x1x8x1xf32>,
    %c0_230 = arith.constant 0 : index
    %c0_231 = arith.constant 0 : index
    %c3_232 = arith.constant 3 : index
    %c0_233 = arith.constant 0 : index
    %c0_234 = arith.constant 0 : index
    %100 = vector.load %arg1[%c0_230, %c0_231, %c3_232, %c0_233, %c0_234] : memref<1x16x5x8x8xf32, #tpu.memory_space<vmem>>, vector<1x2x1x8x8xf32>
    %101 = vector.shape_cast %100 : vector<1x2x1x8x8xf32> to vector<2x8x8xf32>
    %c0_235 = arith.constant 0 : index
    %c0_236 = arith.constant 0 : index
    %c5 = arith.constant 5 : index
    %c0_237 = arith.constant 0 : index
    %c0_238 = arith.constant 0 : index
    %c0_239 = arith.constant 0 : index
    %c0_240 = arith.constant 0 : index
    %102 = vector.load %arg2[%c0_235, %c0_236, %c5, %c0_237, %c0_238, %c0_239, %c0_240] : memref<1x2x9x8x2x8x2xf32, #tpu.memory_space<vmem>>, vector<1x2x1x8x1x8x1xf32>
    %103 = vector.shape_cast %102 : vector<1x2x1x8x1x8x1xf32> to vector<2x8x8xf32>
    %104 = vector.shape_cast %101 : vector<2x8x8xf32> to vector<1x2x1x8x1x8x1xf32>
    tpu.vector_store %arg2[%c0_235, %c0_236, %c5, %c0_237, %c0_238, %c0_239, %c0_240], %104 {strides = array<i32>} : memref<1x2x9x8x2x8x2xf32, #tpu.memory_space<vmem>>, vector<1x2x1x8x1x8x1xf32>,
    %c0_241 = arith.constant 0 : index
    %c2_242 = arith.constant 2 : index
    %c3_243 = arith.constant 3 : index
    %c0_244 = arith.constant 0 : index
    %c0_245 = arith.constant 0 : index
    %105 = vector.load %arg1[%c0_241, %c2_242, %c3_243, %c0_244, %c0_245] : memref<1x16x5x8x8xf32, #tpu.memory_space<vmem>>, vector<1x2x1x8x8xf32>
    %106 = vector.shape_cast %105 : vector<1x2x1x8x8xf32> to vector<2x8x8xf32>
    %c0_246 = arith.constant 0 : index
    %c0_247 = arith.constant 0 : index
    %c5_248 = arith.constant 5 : index
    %c0_249 = arith.constant 0 : index
    %c0_250 = arith.constant 0 : index
    %c0_251 = arith.constant 0 : index
    %c1_252 = arith.constant 1 : index
    %107 = vector.load %arg2[%c0_246, %c0_247, %c5_248, %c0_249, %c0_250, %c0_251, %c1_252] : memref<1x2x9x8x2x8x2xf32, #tpu.memory_space<vmem>>, vector<1x2x1x8x1x8x1xf32>
    %108 = vector.shape_cast %107 : vector<1x2x1x8x1x8x1xf32> to vector<2x8x8xf32>
    %109 = vector.shape_cast %106 : vector<2x8x8xf32> to vector<1x2x1x8x1x8x1xf32>
    tpu.vector_store %arg2[%c0_246, %c0_247, %c5_248, %c0_249, %c0_250, %c0_251, %c1_252], %109 {strides = array<i32>} : memref<1x2x9x8x2x8x2xf32, #tpu.memory_space<vmem>>, vector<1x2x1x8x1x8x1xf32>,
    %c0_253 = arith.constant 0 : index
    %c4_254 = arith.constant 4 : index
    %c3_255 = arith.constant 3 : index
    %c0_256 = arith.constant 0 : index
    %c0_257 = arith.constant 0 : index
    %110 = vector.load %arg1[%c0_253, %c4_254, %c3_255, %c0_256, %c0_257] : memref<1x16x5x8x8xf32, #tpu.memory_space<vmem>>, vector<1x2x1x8x8xf32>
    %111 = vector.shape_cast %110 : vector<1x2x1x8x8xf32> to vector<2x8x8xf32>
    %c0_258 = arith.constant 0 : index
    %c0_259 = arith.constant 0 : index
    %c5_260 = arith.constant 5 : index
    %c0_261 = arith.constant 0 : index
    %c1_262 = arith.constant 1 : index
    %c0_263 = arith.constant 0 : index
    %c0_264 = arith.constant 0 : index
    %112 = vector.load %arg2[%c0_258, %c0_259, %c5_260, %c0_261, %c1_262, %c0_263, %c0_264] : memref<1x2x9x8x2x8x2xf32, #tpu.memory_space<vmem>>, vector<1x2x1x8x1x8x1xf32>
    %113 = vector.shape_cast %112 : vector<1x2x1x8x1x8x1xf32> to vector<2x8x8xf32>
    %114 = vector.shape_cast %111 : vector<2x8x8xf32> to vector<1x2x1x8x1x8x1xf32>
    tpu.vector_store %arg2[%c0_258, %c0_259, %c5_260, %c0_261, %c1_262, %c0_263, %c0_264], %114 {strides = array<i32>} : memref<1x2x9x8x2x8x2xf32, #tpu.memory_space<vmem>>, vector<1x2x1x8x1x8x1xf32>,
    %c0_265 = arith.constant 0 : index
    %c6_266 = arith.constant 6 : index
    %c3_267 = arith.constant 3 : index
    %c0_268 = arith.constant 0 : index
    %c0_269 = arith.constant 0 : index
    %115 = vector.load %arg1[%c0_265, %c6_266, %c3_267, %c0_268, %c0_269] : memref<1x16x5x8x8xf32, #tpu.memory_space<vmem>>, vector<1x2x1x8x8xf32>
    %116 = vector.shape_cast %115 : vector<1x2x1x8x8xf32> to vector<2x8x8xf32>
    %c0_270 = arith.constant 0 : index
    %c0_271 = arith.constant 0 : index
    %c5_272 = arith.constant 5 : index
    %c0_273 = arith.constant 0 : index
    %c1_274 = arith.constant 1 : index
    %c0_275 = arith.constant 0 : index
    %c1_276 = arith.constant 1 : index
    %117 = vector.load %arg2[%c0_270, %c0_271, %c5_272, %c0_273, %c1_274, %c0_275, %c1_276] : memref<1x2x9x8x2x8x2xf32, #tpu.memory_space<vmem>>, vector<1x2x1x8x1x8x1xf32>
    %118 = vector.shape_cast %117 : vector<1x2x1x8x1x8x1xf32> to vector<2x8x8xf32>
    %119 = vector.shape_cast %116 : vector<2x8x8xf32> to vector<1x2x1x8x1x8x1xf32>
    tpu.vector_store %arg2[%c0_270, %c0_271, %c5_272, %c0_273, %c1_274, %c0_275, %c1_276], %119 {strides = array<i32>} : memref<1x2x9x8x2x8x2xf32, #tpu.memory_space<vmem>>, vector<1x2x1x8x1x8x1xf32>,
    %c0_277 = arith.constant 0 : index
    %c8_278 = arith.constant 8 : index
    %c3_279 = arith.constant 3 : index
    %c0_280 = arith.constant 0 : index
    %c0_281 = arith.constant 0 : index
    %120 = vector.load %arg1[%c0_277, %c8_278, %c3_279, %c0_280, %c0_281] : memref<1x16x5x8x8xf32, #tpu.memory_space<vmem>>, vector<1x2x1x8x8xf32>
    %121 = vector.shape_cast %120 : vector<1x2x1x8x8xf32> to vector<2x8x8xf32>
    %c0_282 = arith.constant 0 : index
    %c0_283 = arith.constant 0 : index
    %c6_284 = arith.constant 6 : index
    %c0_285 = arith.constant 0 : index
    %c0_286 = arith.constant 0 : index
    %c0_287 = arith.constant 0 : index
    %c0_288 = arith.constant 0 : index
    %122 = vector.load %arg2[%c0_282, %c0_283, %c6_284, %c0_285, %c0_286, %c0_287, %c0_288] : memref<1x2x9x8x2x8x2xf32, #tpu.memory_space<vmem>>, vector<1x2x1x8x1x8x1xf32>
    %123 = vector.shape_cast %122 : vector<1x2x1x8x1x8x1xf32> to vector<2x8x8xf32>
    %124 = vector.shape_cast %121 : vector<2x8x8xf32> to vector<1x2x1x8x1x8x1xf32>
    tpu.vector_store %arg2[%c0_282, %c0_283, %c6_284, %c0_285, %c0_286, %c0_287, %c0_288], %124 {strides = array<i32>} : memref<1x2x9x8x2x8x2xf32, #tpu.memory_space<vmem>>, vector<1x2x1x8x1x8x1xf32>,
    %c0_289 = arith.constant 0 : index
    %c10_290 = arith.constant 10 : index
    %c3_291 = arith.constant 3 : index
    %c0_292 = arith.constant 0 : index
    %c0_293 = arith.constant 0 : index
    %125 = vector.load %arg1[%c0_289, %c10_290, %c3_291, %c0_292, %c0_293] : memref<1x16x5x8x8xf32, #tpu.memory_space<vmem>>, vector<1x2x1x8x8xf32>
    %126 = vector.shape_cast %125 : vector<1x2x1x8x8xf32> to vector<2x8x8xf32>
    %c0_294 = arith.constant 0 : index
    %c0_295 = arith.constant 0 : index
    %c6_296 = arith.constant 6 : index
    %c0_297 = arith.constant 0 : index
    %c0_298 = arith.constant 0 : index
    %c0_299 = arith.constant 0 : index
    %c1_300 = arith.constant 1 : index
    %127 = vector.load %arg2[%c0_294, %c0_295, %c6_296, %c0_297, %c0_298, %c0_299, %c1_300] : memref<1x2x9x8x2x8x2xf32, #tpu.memory_space<vmem>>, vector<1x2x1x8x1x8x1xf32>
    %128 = vector.shape_cast %127 : vector<1x2x1x8x1x8x1xf32> to vector<2x8x8xf32>
    %129 = vector.shape_cast %126 : vector<2x8x8xf32> to vector<1x2x1x8x1x8x1xf32>
    tpu.vector_store %arg2[%c0_294, %c0_295, %c6_296, %c0_297, %c0_298, %c0_299, %c1_300], %129 {strides = array<i32>} : memref<1x2x9x8x2x8x2xf32, #tpu.memory_space<vmem>>, vector<1x2x1x8x1x8x1xf32>,
    %c0_301 = arith.constant 0 : index
    %c12_302 = arith.constant 12 : index
    %c3_303 = arith.constant 3 : index
    %c0_304 = arith.constant 0 : index
    %c0_305 = arith.constant 0 : index
    %130 = vector.load %arg1[%c0_301, %c12_302, %c3_303, %c0_304, %c0_305] : memref<1x16x5x8x8xf32, #tpu.memory_space<vmem>>, vector<1x2x1x8x8xf32>
    %131 = vector.shape_cast %130 : vector<1x2x1x8x8xf32> to vector<2x8x8xf32>
    %c0_306 = arith.constant 0 : index
    %c0_307 = arith.constant 0 : index
    %c6_308 = arith.constant 6 : index
    %c0_309 = arith.constant 0 : index
    %c1_310 = arith.constant 1 : index
    %c0_311 = arith.constant 0 : index
    %c0_312 = arith.constant 0 : index
    %132 = vector.load %arg2[%c0_306, %c0_307, %c6_308, %c0_309, %c1_310, %c0_311, %c0_312] : memref<1x2x9x8x2x8x2xf32, #tpu.memory_space<vmem>>, vector<1x2x1x8x1x8x1xf32>
    %133 = vector.shape_cast %132 : vector<1x2x1x8x1x8x1xf32> to vector<2x8x8xf32>
    %134 = vector.shape_cast %131 : vector<2x8x8xf32> to vector<1x2x1x8x1x8x1xf32>
    tpu.vector_store %arg2[%c0_306, %c0_307, %c6_308, %c0_309, %c1_310, %c0_311, %c0_312], %134 {strides = array<i32>} : memref<1x2x9x8x2x8x2xf32, #tpu.memory_space<vmem>>, vector<1x2x1x8x1x8x1xf32>,
    %c0_313 = arith.constant 0 : index
    %c14_314 = arith.constant 14 : index
    %c3_315 = arith.constant 3 : index
    %c0_316 = arith.constant 0 : index
    %c0_317 = arith.constant 0 : index
    %135 = vector.load %arg1[%c0_313, %c14_314, %c3_315, %c0_316, %c0_317] : memref<1x16x5x8x8xf32, #tpu.memory_space<vmem>>, vector<1x2x1x8x8xf32>
    %136 = vector.shape_cast %135 : vector<1x2x1x8x8xf32> to vector<2x8x8xf32>
    %c0_318 = arith.constant 0 : index
    %c0_319 = arith.constant 0 : index
    %c6_320 = arith.constant 6 : index
    %c0_321 = arith.constant 0 : index
    %c1_322 = arith.constant 1 : index
    %c0_323 = arith.constant 0 : index
    %c1_324 = arith.constant 1 : index
    %137 = vector.load %arg2[%c0_318, %c0_319, %c6_320, %c0_321, %c1_322, %c0_323, %c1_324] : memref<1x2x9x8x2x8x2xf32, #tpu.memory_space<vmem>>, vector<1x2x1x8x1x8x1xf32>
    %138 = vector.shape_cast %137 : vector<1x2x1x8x1x8x1xf32> to vector<2x8x8xf32>
    %139 = vector.shape_cast %136 : vector<2x8x8xf32> to vector<1x2x1x8x1x8x1xf32>
    tpu.vector_store %arg2[%c0_318, %c0_319, %c6_320, %c0_321, %c1_322, %c0_323, %c1_324], %139 {strides = array<i32>} : memref<1x2x9x8x2x8x2xf32, #tpu.memory_space<vmem>>, vector<1x2x1x8x1x8x1xf32>,
    %c0_325 = arith.constant 0 : index
    %c0_326 = arith.constant 0 : index
    %c4_327 = arith.constant 4 : index
    %c0_328 = arith.constant 0 : index
    %c0_329 = arith.constant 0 : index
    %140 = vector.load %arg1[%c0_325, %c0_326, %c4_327, %c0_328, %c0_329] : memref<1x16x5x8x8xf32, #tpu.memory_space<vmem>>, vector<1x2x1x8x8xf32>
    %141 = vector.shape_cast %140 : vector<1x2x1x8x8xf32> to vector<2x8x8xf32>
    %c0_330 = arith.constant 0 : index
    %c0_331 = arith.constant 0 : index
    %c7 = arith.constant 7 : index
    %c0_332 = arith.constant 0 : index
    %c0_333 = arith.constant 0 : index
    %c0_334 = arith.constant 0 : index
    %c0_335 = arith.constant 0 : index
    %142 = vector.load %arg2[%c0_330, %c0_331, %c7, %c0_332, %c0_333, %c0_334, %c0_335] : memref<1x2x9x8x2x8x2xf32, #tpu.memory_space<vmem>>, vector<1x2x1x8x1x8x1xf32>
    %143 = vector.shape_cast %142 : vector<1x2x1x8x1x8x1xf32> to vector<2x8x8xf32>
    %144 = vector.shape_cast %141 : vector<2x8x8xf32> to vector<1x2x1x8x1x8x1xf32>
    tpu.vector_store %arg2[%c0_330, %c0_331, %c7, %c0_332, %c0_333, %c0_334, %c0_335], %144 {strides = array<i32>} : memref<1x2x9x8x2x8x2xf32, #tpu.memory_space<vmem>>, vector<1x2x1x8x1x8x1xf32>,
    %c0_336 = arith.constant 0 : index
    %c2_337 = arith.constant 2 : index
    %c4_338 = arith.constant 4 : index
    %c0_339 = arith.constant 0 : index
    %c0_340 = arith.constant 0 : index
    %145 = vector.load %arg1[%c0_336, %c2_337, %c4_338, %c0_339, %c0_340] : memref<1x16x5x8x8xf32, #tpu.memory_space<vmem>>, vector<1x2x1x8x8xf32>
    %146 = vector.shape_cast %145 : vector<1x2x1x8x8xf32> to vector<2x8x8xf32>
    %c0_341 = arith.constant 0 : index
    %c0_342 = arith.constant 0 : index
    %c7_343 = arith.constant 7 : index
    %c0_344 = arith.constant 0 : index
    %c0_345 = arith.constant 0 : index
    %c0_346 = arith.constant 0 : index
    %c1_347 = arith.constant 1 : index
    %147 = vector.load %arg2[%c0_341, %c0_342, %c7_343, %c0_344, %c0_345, %c0_346, %c1_347] : memref<1x2x9x8x2x8x2xf32, #tpu.memory_space<vmem>>, vector<1x2x1x8x1x8x1xf32>
    %148 = vector.shape_cast %147 : vector<1x2x1x8x1x8x1xf32> to vector<2x8x8xf32>
    %149 = vector.shape_cast %146 : vector<2x8x8xf32> to vector<1x2x1x8x1x8x1xf32>
    tpu.vector_store %arg2[%c0_341, %c0_342, %c7_343, %c0_344, %c0_345, %c0_346, %c1_347], %149 {strides = array<i32>} : memref<1x2x9x8x2x8x2xf32, #tpu.memory_space<vmem>>, vector<1x2x1x8x1x8x1xf32>,
    %c0_348 = arith.constant 0 : index
    %c4_349 = arith.constant 4 : index
    %c4_350 = arith.constant 4 : index
    %c0_351 = arith.constant 0 : index
    %c0_352 = arith.constant 0 : index
    %150 = vector.load %arg1[%c0_348, %c4_349, %c4_350, %c0_351, %c0_352] : memref<1x16x5x8x8xf32, #tpu.memory_space<vmem>>, vector<1x2x1x8x8xf32>
    %151 = vector.shape_cast %150 : vector<1x2x1x8x8xf32> to vector<2x8x8xf32>
    %c0_353 = arith.constant 0 : index
    %c0_354 = arith.constant 0 : index
    %c7_355 = arith.constant 7 : index
    %c0_356 = arith.constant 0 : index
    %c1_357 = arith.constant 1 : index
    %c0_358 = arith.constant 0 : index
    %c0_359 = arith.constant 0 : index
    %152 = vector.load %arg2[%c0_353, %c0_354, %c7_355, %c0_356, %c1_357, %c0_358, %c0_359] : memref<1x2x9x8x2x8x2xf32, #tpu.memory_space<vmem>>, vector<1x2x1x8x1x8x1xf32>
    %153 = vector.shape_cast %152 : vector<1x2x1x8x1x8x1xf32> to vector<2x8x8xf32>
    %154 = vector.shape_cast %151 : vector<2x8x8xf32> to vector<1x2x1x8x1x8x1xf32>
    tpu.vector_store %arg2[%c0_353, %c0_354, %c7_355, %c0_356, %c1_357, %c0_358, %c0_359], %154 {strides = array<i32>} : memref<1x2x9x8x2x8x2xf32, #tpu.memory_space<vmem>>, vector<1x2x1x8x1x8x1xf32>,
    %c0_360 = arith.constant 0 : index
    %c6_361 = arith.constant 6 : index
    %c4_362 = arith.constant 4 : index
    %c0_363 = arith.constant 0 : index
    %c0_364 = arith.constant 0 : index
    %155 = vector.load %arg1[%c0_360, %c6_361, %c4_362, %c0_363, %c0_364] : memref<1x16x5x8x8xf32, #tpu.memory_space<vmem>>, vector<1x2x1x8x8xf32>
    %156 = vector.shape_cast %155 : vector<1x2x1x8x8xf32> to vector<2x8x8xf32>
    %c0_365 = arith.constant 0 : index
    %c0_366 = arith.constant 0 : index
    %c7_367 = arith.constant 7 : index
    %c0_368 = arith.constant 0 : index
    %c1_369 = arith.constant 1 : index
    %c0_370 = arith.constant 0 : index
    %c1_371 = arith.constant 1 : index
    %157 = vector.load %arg2[%c0_365, %c0_366, %c7_367, %c0_368, %c1_369, %c0_370, %c1_371] : memref<1x2x9x8x2x8x2xf32, #tpu.memory_space<vmem>>, vector<1x2x1x8x1x8x1xf32>
    %158 = vector.shape_cast %157 : vector<1x2x1x8x1x8x1xf32> to vector<2x8x8xf32>
    %159 = vector.shape_cast %156 : vector<2x8x8xf32> to vector<1x2x1x8x1x8x1xf32>
    tpu.vector_store %arg2[%c0_365, %c0_366, %c7_367, %c0_368, %c1_369, %c0_370, %c1_371], %159 {strides = array<i32>} : memref<1x2x9x8x2x8x2xf32, #tpu.memory_space<vmem>>, vector<1x2x1x8x1x8x1xf32>,
    %c0_372 = arith.constant 0 : index
    %c8_373 = arith.constant 8 : index
    %c4_374 = arith.constant 4 : index
    %c0_375 = arith.constant 0 : index
    %c0_376 = arith.constant 0 : index
    %160 = vector.load %arg1[%c0_372, %c8_373, %c4_374, %c0_375, %c0_376] : memref<1x16x5x8x8xf32, #tpu.memory_space<vmem>>, vector<1x2x1x8x8xf32>
    %161 = vector.shape_cast %160 : vector<1x2x1x8x8xf32> to vector<2x8x8xf32>
    %c0_377 = arith.constant 0 : index
    %c0_378 = arith.constant 0 : index
    %c8_379 = arith.constant 8 : index
    %c0_380 = arith.constant 0 : index
    %c0_381 = arith.constant 0 : index
    %c0_382 = arith.constant 0 : index
    %c0_383 = arith.constant 0 : index
    %162 = vector.load %arg2[%c0_377, %c0_378, %c8_379, %c0_380, %c0_381, %c0_382, %c0_383] : memref<1x2x9x8x2x8x2xf32, #tpu.memory_space<vmem>>, vector<1x2x1x8x1x8x1xf32>
    %163 = vector.shape_cast %162 : vector<1x2x1x8x1x8x1xf32> to vector<2x8x8xf32>
    %164 = vector.shape_cast %161 : vector<2x8x8xf32> to vector<1x2x1x8x1x8x1xf32>
    tpu.vector_store %arg2[%c0_377, %c0_378, %c8_379, %c0_380, %c0_381, %c0_382, %c0_383], %164 {strides = array<i32>} : memref<1x2x9x8x2x8x2xf32, #tpu.memory_space<vmem>>, vector<1x2x1x8x1x8x1xf32>,
    %c0_384 = arith.constant 0 : index
    %c10_385 = arith.constant 10 : index
    %c4_386 = arith.constant 4 : index
    %c0_387 = arith.constant 0 : index
    %c0_388 = arith.constant 0 : index
    %165 = vector.load %arg1[%c0_384, %c10_385, %c4_386, %c0_387, %c0_388] : memref<1x16x5x8x8xf32, #tpu.memory_space<vmem>>, vector<1x2x1x8x8xf32>
    %166 = vector.shape_cast %165 : vector<1x2x1x8x8xf32> to vector<2x8x8xf32>
    %c0_389 = arith.constant 0 : index
    %c0_390 = arith.constant 0 : index
    %c8_391 = arith.constant 8 : index
    %c0_392 = arith.constant 0 : index
    %c0_393 = arith.constant 0 : index
    %c0_394 = arith.constant 0 : index
    %c1_395 = arith.constant 1 : index
    %167 = vector.load %arg2[%c0_389, %c0_390, %c8_391, %c0_392, %c0_393, %c0_394, %c1_395] : memref<1x2x9x8x2x8x2xf32, #tpu.memory_space<vmem>>, vector<1x2x1x8x1x8x1xf32>
    %168 = vector.shape_cast %167 : vector<1x2x1x8x1x8x1xf32> to vector<2x8x8xf32>
    %169 = vector.shape_cast %166 : vector<2x8x8xf32> to vector<1x2x1x8x1x8x1xf32>
    tpu.vector_store %arg2[%c0_389, %c0_390, %c8_391, %c0_392, %c0_393, %c0_394, %c1_395], %169 {strides = array<i32>} : memref<1x2x9x8x2x8x2xf32, #tpu.memory_space<vmem>>, vector<1x2x1x8x1x8x1xf32>,
    %c0_396 = arith.constant 0 : index
    %c12_397 = arith.constant 12 : index
    %c4_398 = arith.constant 4 : index
    %c0_399 = arith.constant 0 : index
    %c0_400 = arith.constant 0 : index
    %170 = vector.load %arg1[%c0_396, %c12_397, %c4_398, %c0_399, %c0_400] : memref<1x16x5x8x8xf32, #tpu.memory_space<vmem>>, vector<1x2x1x8x8xf32>
    %171 = vector.shape_cast %170 : vector<1x2x1x8x8xf32> to vector<2x8x8xf32>
    %c0_401 = arith.constant 0 : index
    %c0_402 = arith.constant 0 : index
    %c8_403 = arith.constant 8 : index
    %c0_404 = arith.constant 0 : index
    %c1_405 = arith.constant 1 : index
    %c0_406 = arith.constant 0 : index
    %c0_407 = arith.constant 0 : index
    %172 = vector.load %arg2[%c0_401, %c0_402, %c8_403, %c0_404, %c1_405, %c0_406, %c0_407] : memref<1x2x9x8x2x8x2xf32, #tpu.memory_space<vmem>>, vector<1x2x1x8x1x8x1xf32>
    %173 = vector.shape_cast %172 : vector<1x2x1x8x1x8x1xf32> to vector<2x8x8xf32>
    %174 = vector.shape_cast %171 : vector<2x8x8xf32> to vector<1x2x1x8x1x8x1xf32>
    tpu.vector_store %arg2[%c0_401, %c0_402, %c8_403, %c0_404, %c1_405, %c0_406, %c0_407], %174 {strides = array<i32>} : memref<1x2x9x8x2x8x2xf32, #tpu.memory_space<vmem>>, vector<1x2x1x8x1x8x1xf32>,
    %c0_408 = arith.constant 0 : index
    %c14_409 = arith.constant 14 : index
    %c4_410 = arith.constant 4 : index
    %c0_411 = arith.constant 0 : index
    %c0_412 = arith.constant 0 : index
    %175 = vector.load %arg1[%c0_408, %c14_409, %c4_410, %c0_411, %c0_412] : memref<1x16x5x8x8xf32, #tpu.memory_space<vmem>>, vector<1x2x1x8x8xf32>
    %176 = vector.shape_cast %175 : vector<1x2x1x8x8xf32> to vector<2x8x8xf32>
    %c0_413 = arith.constant 0 : index
    %c0_414 = arith.constant 0 : index
    %c8_415 = arith.constant 8 : index
    %c0_416 = arith.constant 0 : index
    %c1_417 = arith.constant 1 : index
    %c0_418 = arith.constant 0 : index
    %c1_419 = arith.constant 1 : index
    %177 = vector.load %arg2[%c0_413, %c0_414, %c8_415, %c0_416, %c1_417, %c0_418, %c1_419] : memref<1x2x9x8x2x8x2xf32, #tpu.memory_space<vmem>>, vector<1x2x1x8x1x8x1xf32>
    %178 = vector.shape_cast %177 : vector<1x2x1x8x1x8x1xf32> to vector<2x8x8xf32>
    %179 = vector.shape_cast %176 : vector<2x8x8xf32> to vector<1x2x1x8x1x8x1xf32>
    tpu.vector_store %arg2[%c0_413, %c0_414, %c8_415, %c0_416, %c1_417, %c0_418, %c1_419], %179 {strides = array<i32>} : memref<1x2x9x8x2x8x2xf32, #tpu.memory_space<vmem>>, vector<1x2x1x8x1x8x1xf32>,
    return
  }
  func.func @transform_0(%arg0: i32) -> (i32, i32, i32, i32, i32) {
    %c0_i32 = arith.constant 0 : i32
    %c0_i32_0 = arith.constant 0 : i32
    %c0_i32_1 = arith.constant 0 : i32
    %c0_i32_2 = arith.constant 0 : i32
    %c0_i32_3 = arith.constant 0 : i32
    return %arg0, %c0_i32, %c0_i32_0, %c0_i32_1, %c0_i32_2 : i32, i32, i32, i32, i32
  }
  func.func @transform_1(%arg0: i32) -> (i32, i32, i32, i32, i32, i32, i32) {
    %c0_i32 = arith.constant 0 : i32
    %c0_i32_0 = arith.constant 0 : i32
    %c0_i32_1 = arith.constant 0 : i32
    %c0_i32_2 = arith.constant 0 : i32
    %c0_i32_3 = arith.constant 0 : i32
    %c0_i32_4 = arith.constant 0 : i32
    %c0_i32_5 = arith.constant 0 : i32
    return %arg0, %c0_i32, %c0_i32_0, %c0_i32_1, %c0_i32_2, %c0_i32_3, %c0_i32_4 : i32, i32, i32, i32, i32, i32, i32
  }
}

</mosaic_0001>

<bundles_post_ra>
// kernel: tpu_custom_call.1
= control target key start
LH: loop header
LB: loop body
LE: loop exit
PB: predicated region body
PF: predicated region fallthrough
CT: control target
= control target key end

     0   :  { %s5560_s6 = smov 0   ;;  %s7401_s0 = inlined_call_operand.vmem [shape: f32[2,16,5,8,8], index: 0, kind: input, shape index: {}]   ;;  %s7402_s1 = inlined_call_operand.vmem [shape: f32[2,2,9,8,2,8,2], index: 1, kind: output, shape index: {}]  }
   0x1 LB: > { %s4907_s7 = sadd.s32 4294967295, %s5548_s6   ;;  %p4911_p0 = scmp.ge.s32.totalorder %s5548_s6, 1  ;;  %s5548_s6 = sphi %s5560_s6, %s11_s6  }
   0x2   : > { %p87_p1 = scmp.lt.s32.totalorder %s5548_s6, 3 }
   0x4   : > { %p88_p2 = pnand %p4911_p0, %p87_p1 }
   0x5   : > { %p107_p3 = scmp.lt.s32.totalorder (!%p88_p2), %s4907_s7, 1  ;;  %v120_v0 = vlaneseq (!%p88_p2)  ;;  %vm232_vm0 = vcmask (!%p88_p2), 7168   ;;  %vm364_vm1 = vcmask (!%p88_p2), 15368  }
   0x6   : > { %91 = sbr.rel (%p88_p2) target bundleno = 1284 (0x504), region = 24 }
   0x7   : > { %v121_v1 = vshrl.u32 (!%p88_p2), %v120_v0, 7 }
   0x9   : > { %v5571_v2 = vsub.s32 (!%p88_p2), 2, %v121_v1  ;;  %v5573_v3 = vsub.s32 (!%p88_p2), 0, %v121_v1  ;;  %v5580_v4 = vsub.s32 (!%p88_p2), 3, %v121_v1  ;;  %v5582_v5 = vsub.s32 (!%p88_p2), 1, %v121_v1 }
   0xa   : > { %v5589_v11 = vsub.s32 (!%p88_p2), 5, %v121_v1  ;;  %v5591_v12 = vsub.s32 (!%p88_p2), 4, %v121_v1  ;;  %v5595_v15 = vsub.s32 (!%p88_p2), 7, %v121_v1  ;;  %v5597_v16 = vsub.s32 (!%p88_p2), 6, %v121_v1 }
   0xd   : > { %s7404_s7 = smov (!%p107_p3, %s4907_s7), 1 }
   0xe   : > { %s5532_s8 = smul.u32 640, %s7404_s7 }
   0xf   : > { %s5533_s12 = smul.u32 2304, %s7404_s7 }
  0x10   : > { %s5578_s11 = scalar_lea.vmem %s7401_s0, %s5532_s8 }
  0x11   : > { %v4914_v6 = vld [vmem:[%s5578_s11 + $0x140] sm:$0xff]  ;;  %v4915_v19 = vld [vmem:[%s5578_s11 + $0x168] sm:$0xff]  ;;  %v4916_v28 = vld [vmem:[%s5578_s11 + $0x190] sm:$0xff]  ;;  %s5662_s15 = scalar_lea.vmem %s7402_s1, %s5533_s12 }
  0x12   : > { %v137_v7 = vrot.slane %v4914_v6, %v5571_v2  ;;  %v123_v8 = vrot.slane %v4914_v6, %v5573_v3  ;;  %v144_v9 = vrot.slane %v4914_v6, %v5580_v4  ;;  %v130_v10 = vrot.slane %v4914_v6, %v5582_v5  ;;  %v4917_v37 = vld [vmem:[%s5578_s11 + $0x1b8] sm:$0xff]  ;;  %v4918_v46 = vld [vmem:[%s5578_s11 + $0x1e0] sm:$0xff]  ;;  %v4919_v55 = vld [vmem:[%s5578_s11 + $0x208] sm:$0xff] }
  0x13   : > { %v158_v13 = vrot.slane %v4914_v6, %v5589_v11  ;;  %v151_v14 = vrot.slane %v4914_v6, %v5591_v12  ;;  %v172_v17 = vrot.slane %v4914_v6, %v5595_v15  ;;  %v165_v18 = vrot.slane %v4914_v6, %v5597_v16  ;;  %v4936_v0 = vld [vmem:[%s5578_s11 + $0x230] sm:$0xff] }
  0x14   : > { %139 = vbcast.lane.b32.xlu1 %v137_v7, 256  ;;  %125 = vbcast.lane.b32.xlu0 %v123_v8, 256  ;;  %v186_v20 = vrot.slane %v4915_v19, %v5582_v5  ;;  %v179_v21 = vrot.slane %v4915_v19, %v5573_v3  ;;  %v200_v22 = vrot.slane %v4915_v19, %v5580_v4 }
  0x15   : > { %v193_v23 = vrot.slane %v4915_v19, %v5571_v2  ;;  %v214_v24 = vrot.slane %v4915_v19, %v5589_v11  ;;  %v207_v25 = vrot.slane %v4915_v19, %v5591_v12  ;;  %v228_v26 = vrot.slane %v4915_v19, %v5595_v15 }
  0x16   : > { %v221_v27 = vrot.slane %v4915_v19, %v5597_v16  ;;  %v262_v29 = vrot.slane %v4916_v28, %v5582_v5  ;;  %v255_v30 = vrot.slane %v4916_v28, %v5573_v3  ;;  %v276_v31 = vrot.slane %v4916_v28, %v5580_v4 }
  0x17   : > { %v269_v32 = vrot.slane %v4916_v28, %v5571_v2  ;;  %v290_v33 = vrot.slane %v4916_v28, %v5589_v11  ;;  %v283_v34 = vrot.slane %v4916_v28, %v5591_v12  ;;  %v304_v35 = vrot.slane %v4916_v28, %v5595_v15 }
  0x18   : > { %146 = vbcast.lane.b32.xlu1 %v144_v9, 256  ;;  %132 = vbcast.lane.b32.xlu0 %v130_v10, 256  ;;  %v297_v36 = vrot.slane %v4916_v28, %v5597_v16  ;;  %v318_v38 = vrot.slane %v4917_v37, %v5582_v5  ;;  %v311_v39 = vrot.slane %v4917_v37, %v5573_v3 }
  0x19   : > { %v332_v40 = vrot.slane %v4917_v37, %v5580_v4  ;;  %v325_v41 = vrot.slane %v4917_v37, %v5571_v2  ;;  %v346_v42 = vrot.slane %v4917_v37, %v5589_v11  ;;  %v339_v43 = vrot.slane %v4917_v37, %v5591_v12 }
  0x1a   : > { %v360_v44 = vrot.slane %v4917_v37, %v5595_v15  ;;  %v353_v45 = vrot.slane %v4917_v37, %v5597_v16  ;;  %v394_v47 = vrot.slane %v4918_v46, %v5582_v5  ;;  %v387_v48 = vrot.slane %v4918_v46, %v5573_v3 }
  0x1b   : > { %v408_v49 = vrot.slane %v4918_v46, %v5580_v4  ;;  %v401_v50 = vrot.slane %v4918_v46, %v5571_v2  ;;  %v422_v51 = vrot.slane %v4918_v46, %v5589_v11  ;;  %v415_v52 = vrot.slane %v4918_v46, %v5591_v12 }
  0x1c   : > { %160 = vbcast.lane.b32.xlu1 %v158_v13, 256  ;;  %153 = vbcast.lane.b32.xlu0 %v151_v14, 256  ;;  %v436_v53 = vrot.slane %v4918_v46, %v5595_v15  ;;  %v429_v54 = vrot.slane %v4918_v46, %v5597_v16  ;;  %v450_v56 = vrot.slane %v4919_v55, %v5582_v5 }
  0x1d   : > { %v443_v57 = vrot.slane %v4919_v55, %v5573_v3  ;;  %v464_v58 = vrot.slane %v4919_v55, %v5580_v4  ;;  %v457_v59 = vrot.slane %v4919_v55, %v5571_v2  ;;  %v478_v60 = vrot.slane %v4919_v55, %v5589_v11 }
  0x1e   : > { %v471_v61 = vrot.slane %v4919_v55, %v5591_v12  ;;  %v492_v62 = vrot.slane %v4919_v55, %v5595_v15  ;;  %v485_v63 = vrot.slane %v4919_v55, %v5597_v16  ;;  %v526_v1 = vrot.slane %v4936_v0, %v5582_v5 }
  0x1f   : > { %v519_v6 = vrot.slane %v4936_v0, %v5573_v3  ;;  %v540_v7 = vrot.slane %v4936_v0, %v5580_v4  ;;  %v533_v8 = vrot.slane %v4936_v0, %v5571_v2  ;;  %v554_v9 = vrot.slane %v4936_v0, %v5589_v11 }
  0x20   : > { %174 = vbcast.lane.b32.xlu1 %v172_v17, 256  ;;  %167 = vbcast.lane.b32.xlu0 %v165_v18, 256  ;;  %v547_v10 = vrot.slane %v4936_v0, %v5591_v12  ;;  %v568_v13 = vrot.slane %v4936_v0, %v5595_v15  ;;  %v561_v14 = vrot.slane %v4936_v0, %v5597_v16  ;;  %v4937_v17 = vld [vmem:[%s5578_s11 + $0x258] sm:$0xff] }
  0x21   : > { %v582_v18 = vrot.slane %v4937_v17, %v5582_v5  ;;  %v575_v19 = vrot.slane %v4937_v17, %v5573_v3  ;;  %v624_v28 = vrot.slane %v4937_v17, %v5595_v15  ;;  %v4972_v0 = vld [vmem:[%s5578_s11 + $0x58] sm:$0xff] }
  0x24   : > { %188 = vbcast.lane.b32.xlu1 %v186_v20, 256  ;;  %181 = vbcast.lane.b32.xlu0 %v179_v21, 256  ;;  %v596_v20 = vrot.slane %v4937_v17, %v5580_v4  ;;  %v589_v21 = vrot.slane %v4937_v17, %v5571_v2 }
  0x28   : > { %202 = vbcast.lane.b32.xlu1 %v200_v22, 256  ;;  %195 = vbcast.lane.b32.xlu0 %v193_v23, 256 }
  0x2c   : > { %216 = vbcast.lane.b32.xlu1 %v214_v24, 256  ;;  %209 = vbcast.lane.b32.xlu0 %v207_v25, 256  ;;  %v610_v24 = vrot.slane %v4937_v17, %v5589_v11  ;;  %v603_v25 = vrot.slane %v4937_v17, %v5591_v12 }
  0x30   : > { %230 = vbcast.lane.b32.xlu1 %v228_v26, 256  ;;  %223 = vbcast.lane.b32.xlu0 %v221_v27, 256 }
  0x34   : > { %264 = vbcast.lane.b32.xlu1 %v262_v29, 256  ;;  %257 = vbcast.lane.b32.xlu0 %v255_v30, 256  ;;  %v617_v29 = vrot.slane %v4937_v17, %v5597_v16  ;;  %v4954_v30 = vld [vmem:[%s5578_s11 + $0x8] sm:$0xff] }
  0x35   : > { %v671_v37 = vrot.slane %v4954_v30, %v5580_v4  ;;  %v692_v46 = vrot.slane %v4954_v30, %v5597_v16 }
  0x38   : > { %278 = vbcast.lane.b32.xlu1 %v276_v31, 256  ;;  %271 = vbcast.lane.b32.xlu0 %v269_v32, 256 }
  0x3c   : > { %292 = vbcast.lane.b32.xlu1 %v290_v33, 256  ;;  %285 = vbcast.lane.b32.xlu0 %v283_v34, 256  ;;  %v657_v33 = vrot.slane %v4954_v30, %v5582_v5  ;;  %v650_v34 = vrot.slane %v4954_v30, %v5573_v3 }
  0x40   : > { %306 = vbcast.lane.b32.xlu1 %v304_v35, 256  ;;  %299 = vbcast.lane.b32.xlu0 %v297_v36, 256 }
  0x44   : > { %320 = vbcast.lane.b32.xlu1 %v318_v38, 256  ;;  %313 = vbcast.lane.b32.xlu0 %v311_v39, 256  ;;  %v664_v38 = vrot.slane %v4954_v30, %v5571_v2 }
  0x48   : > { %334 = vbcast.lane.b32.xlu1 %v332_v40, 256  ;;  %327 = vbcast.lane.b32.xlu0 %v325_v41, 256  ;;  %v685_v41 = vrot.slane %v4954_v30, %v5589_v11 }
  0x4c   : > { %348 = vbcast.lane.b32.xlu1 %v346_v42, 256  ;;  %341 = vbcast.lane.b32.xlu0 %v339_v43, 256  ;;  %v678_v42 = vrot.slane %v4954_v30, %v5591_v12 }
  0x50   : > { %362 = vbcast.lane.b32.xlu1 %v360_v44, 256  ;;  %355 = vbcast.lane.b32.xlu0 %v353_v45, 256  ;;  %v699_v45 = vrot.slane %v4954_v30, %v5595_v15 }
  0x54   : > { %396 = vbcast.lane.b32.xlu1 %v394_v47, 256  ;;  %389 = vbcast.lane.b32.xlu0 %v387_v48, 256  ;;  %v4955_v47 = vld [vmem:[%s5578_s11 + $0x30] sm:$0xff] }
  0x55   : > { %v720_v55 = vrot.slane %v4955_v47, %v5571_v2 }
  0x58   : > { %410 = vbcast.lane.b32.xlu1 %v408_v49, 256  ;;  %403 = vbcast.lane.b32.xlu0 %v401_v50, 256  ;;  %v713_v50 = vrot.slane %v4955_v47, %v5582_v5 }
  0x5c   : > { %424 = vbcast.lane.b32.xlu1 %v422_v51, 256  ;;  %417 = vbcast.lane.b32.xlu0 %v415_v52, 256  ;;  %v706_v51 = vrot.slane %v4955_v47, %v5573_v3 }
  0x60   : > { %438 = vbcast.lane.b32.xlu1 %v436_v53, 256  ;;  %431 = vbcast.lane.b32.xlu0 %v429_v54, 256  ;;  %v727_v54 = vrot.slane %v4955_v47, %v5580_v4 }
  0x64   : > { %452 = vbcast.lane.b32.xlu1 %v450_v56, 256  ;;  %445 = vbcast.lane.b32.xlu0 %v443_v57, 256 }
  0x68   : > { %466 = vbcast.lane.b32.xlu1 %v464_v58, 256  ;;  %459 = vbcast.lane.b32.xlu0 %v457_v59, 256  ;;  %v741_v58 = vrot.slane %v4955_v47, %v5589_v11  ;;  %v734_v59 = vrot.slane %v4955_v47, %v5591_v12 }
  0x6c   : > { %480 = vbcast.lane.b32.xlu1 %v478_v60, 256  ;;  %473 = vbcast.lane.b32.xlu0 %v471_v61, 256 }
  0x70   : > { %494 = vbcast.lane.b32.xlu1 %v492_v62, 256  ;;  %487 = vbcast.lane.b32.xlu0 %v485_v63, 256  ;;  %v755_v62 = vrot.slane %v4955_v47, %v5595_v15  ;;  %v748_v63 = vrot.slane %v4955_v47, %v5597_v16 }
  0x74   : > { %528 = vbcast.lane.b32.xlu1 %v526_v1, 256  ;;  %521 = vbcast.lane.b32.xlu0 %v519_v6, 256 }
  0x78   : > { %542 = vbcast.lane.b32.xlu1 %v540_v7, 256  ;;  %535 = vbcast.lane.b32.xlu0 %v533_v8, 256  ;;  %v789_v7 = vrot.slane %v4972_v0, %v5582_v5  ;;  %v782_v8 = vrot.slane %v4972_v0, %v5573_v3 }
  0x7c   : > { %556 = vbcast.lane.b32.xlu1 %v554_v9, 256  ;;  %549 = vbcast.lane.b32.xlu0 %v547_v10, 256 }
  0x80   : > { %570 = vbcast.lane.b32.xlu1 %v568_v13, 256  ;;  %563 = vbcast.lane.b32.xlu0 %v561_v14, 256  ;;  %v803_v13 = vrot.slane %v4972_v0, %v5580_v4  ;;  %v796_v14 = vrot.slane %v4972_v0, %v5571_v2 }
  0x84   : > { %584 = vbcast.lane.b32.xlu1 %v582_v18, 256  ;;  %577 = vbcast.lane.b32.xlu0 %v575_v19, 256  ;;  %v817_v19 = vrot.slane %v4972_v0, %v5589_v11 }
  0x86   : > { %v140_v22 = vpop.permute.xlu1 %139  ;;  %v126_v23 = vpop.permute.xlu0 %125 }
  0x87   : > { %235 = vst.msk [vmem:[%s5662_s15 + $0x20] sm:$0xff] %vm232_vm0, %v140_v22  ;;  %233 = vst.msk [vmem:[%s5662_s15] sm:$0xff] %vm232_vm0, %v126_v23  ;;  %v831_v23 = vrot.slane %v4972_v0, %v5595_v15 }
  0x88   : > { %598 = vbcast.lane.b32.xlu1 %v596_v20, 256  ;;  %591 = vbcast.lane.b32.xlu0 %v589_v21, 256  ;;  %v810_v20 = vrot.slane %v4972_v0, %v5591_v12 }
  0x8a   : > { %v147_v26 = vpop.permute.xlu1 %146  ;;  %v133_v27 = vpop.permute.xlu0 %132 }
  0x8b   : > { %236 = vst.msk [vmem:[%s5662_s15 + $0x30] sm:$0xff] %vm232_vm0, %v147_v26  ;;  %234 = vst.msk [vmem:[%s5662_s15 + $0x10] sm:$0xff] %vm232_vm0, %v133_v27 }
  0x8c   : > { %612 = vbcast.lane.b32.xlu1 %v610_v24, 256  ;;  %605 = vbcast.lane.b32.xlu0 %v603_v25, 256  ;;  %v824_v24 = vrot.slane %v4972_v0, %v5597_v16  ;;  %v4973_v25 = vld [vmem:[%s5578_s11 + $0x80] sm:$0xff] }
  0x8e   : > { %v161_v31 = vpop.permute.xlu1 %160  ;;  %v154_v32 = vpop.permute.xlu0 %153 }
  0x8f   : > { %238 = vst.msk [vmem:[%s5662_s15 + $0x50] sm:$0xff] %vm232_vm0, %v161_v31  ;;  %237 = vst.msk [vmem:[%s5662_s15 + $0x40] sm:$0xff] %vm232_vm0, %v154_v32  ;;  %v859_v32 = vrot.slane %v4973_v25, %v5580_v4 }
  0x90   : > { %626 = vbcast.lane.b32.xlu1 %v624_v28, 256  ;;  %619 = vbcast.lane.b32.xlu0 %v617_v29, 256  ;;  %v845_v28 = vrot.slane %v4973_v25, %v5582_v5  ;;  %v838_v29 = vrot.slane %v4973_v25, %v5573_v3 }
  0x92   : > { %v175_v35 = vpop.permute.xlu1 %174  ;;  %v168_v36 = vpop.permute.xlu0 %167 }
  0x93   : > { %240 = vst.msk [vmem:[%s5662_s15 + $0x70] sm:$0xff] %vm232_vm0, %v175_v35  ;;  %239 = vst.msk [vmem:[%s5662_s15 + $0x60] sm:$0xff] %vm232_vm0, %v168_v36  ;;  %v873_v36 = vrot.slane %v4973_v25, %v5589_v11 }
  0x94   : > { %659 = vbcast.lane.b32.xlu1 %v657_v33, 256  ;;  %652 = vbcast.lane.b32.xlu0 %v650_v34, 256  ;;  %v852_v33 = vrot.slane %v4973_v25, %v5571_v2 }
  0x96   : > { %v189_v39 = vpop.permute.xlu1 %188  ;;  %v182_v40 = vpop.permute.xlu0 %181 }
  0x97   : > { %242 = vst.msk [vmem:[%s5662_s15 + $0x490] sm:$0xff] %vm232_vm0, %v189_v39  ;;  %241 = vst.msk [vmem:[%s5662_s15 + $0x480] sm:$0xff] %vm232_vm0, %v182_v40  ;;  %v887_v40 = vrot.slane %v4973_v25, %v5595_v15 }
  0x98   : > { %673 = vbcast.lane.b32.xlu1 %v671_v37, 256  ;;  %666 = vbcast.lane.b32.xlu0 %v664_v38, 256  ;;  %v866_v37 = vrot.slane %v4973_v25, %v5591_v12 }
  0x9a   : > { %v203_v43 = vpop.permute.xlu1 %202  ;;  %v196_v44 = vpop.permute.xlu0 %195 }
  0x9b   : > { %244 = vst.msk [vmem:[%s5662_s15 + $0x4b0] sm:$0xff] %vm232_vm0, %v203_v43  ;;  %243 = vst.msk [vmem:[%s5662_s15 + $0x4a0] sm:$0xff] %vm232_vm0, %v196_v44 }
  0x9c   : > { %687 = vbcast.lane.b32.xlu1 %v685_v41, 256  ;;  %680 = vbcast.lane.b32.xlu0 %v678_v42, 256  ;;  %v880_v41 = vrot.slane %v4973_v25, %v5597_v16  ;;  %v4990_v42 = vld [vmem:[%s5578_s11 + $0xa8] sm:$0xff] }
  0x9e   : > { %v217_v48 = vpop.permute.xlu1 %216  ;;  %v210_v49 = vpop.permute.xlu0 %209 }
  0x9f   : > { %246 = vst.msk [vmem:[%s5662_s15 + $0x4d0] sm:$0xff] %vm232_vm0, %v217_v48  ;;  %245 = vst.msk [vmem:[%s5662_s15 + $0x4c0] sm:$0xff] %vm232_vm0, %v210_v49  ;;  %v934_v49 = vrot.slane %v4990_v42, %v5580_v4 }
  0xa0   : > { %701 = vbcast.lane.b32.xlu1 %v699_v45, 256  ;;  %694 = vbcast.lane.b32.xlu0 %v692_v46, 256  ;;  %v920_v45 = vrot.slane %v4990_v42, %v5582_v5  ;;  %v913_v46 = vrot.slane %v4990_v42, %v5573_v3 }
  0xa2   : > { %v231_v52 = vpop.permute.xlu1 %230  ;;  %v224_v53 = vpop.permute.xlu0 %223 }
  0xa3   : > { %248 = vst.msk [vmem:[%s5662_s15 + $0x4f0] sm:$0xff] %vm232_vm0, %v231_v52  ;;  %247 = vst.msk [vmem:[%s5662_s15 + $0x4e0] sm:$0xff] %vm232_vm0, %v224_v53  ;;  %v948_v53 = vrot.slane %v4990_v42, %v5589_v11 }
  0xa4   : > { %715 = vbcast.lane.b32.xlu1 %v713_v50, 256  ;;  %708 = vbcast.lane.b32.xlu0 %v706_v51, 256  ;;  %v927_v50 = vrot.slane %v4990_v42, %v5571_v2 }
  0xa6   : > { %v265_v56 = vpop.permute.xlu1 %264  ;;  %v258_v57 = vpop.permute.xlu0 %257 }
  0xa7   : > { %366 = vst.msk [vmem:[%s5662_s15 + $0x10] sm:$0xff] %vm364_vm1, %v265_v56  ;;  %365 = vst.msk [vmem:[%s5662_s15] sm:$0xff] %vm364_vm1, %v258_v57  ;;  %v962_v57 = vrot.slane %v4990_v42, %v5595_v15 }
  0xa8   : > { %729 = vbcast.lane.b32.xlu1 %v727_v54, 256  ;;  %722 = vbcast.lane.b32.xlu0 %v720_v55, 256  ;;  %v941_v54 = vrot.slane %v4990_v42, %v5591_v12 }
  0xaa   : > { %v279_v60 = vpop.permute.xlu1 %278  ;;  %v272_v61 = vpop.permute.xlu0 %271 }
  0xab   : > { %368 = vst.msk [vmem:[%s5662_s15 + $0x30] sm:$0xff] %vm364_vm1, %v279_v60  ;;  %367 = vst.msk [vmem:[%s5662_s15 + $0x20] sm:$0xff] %vm364_vm1, %v272_v61 }
  0xac   : > { %743 = vbcast.lane.b32.xlu1 %v741_v58, 256  ;;  %736 = vbcast.lane.b32.xlu0 %v734_v59, 256  ;;  %v955_v58 = vrot.slane %v4990_v42, %v5597_v16  ;;  %v4991_v59 = vld [vmem:[%s5578_s11 + $0xd0] sm:$0xff] }
  0xae   : > { %v293_v1 = vpop.permute.xlu1 %292  ;;  %v286_v6 = vpop.permute.xlu0 %285 }
  0xaf   : > { %370 = vst.msk [vmem:[%s5662_s15 + $0x50] sm:$0xff] %vm364_vm1, %v293_v1  ;;  %369 = vst.msk [vmem:[%s5662_s15 + $0x40] sm:$0xff] %vm364_vm1, %v286_v6  ;;  %v990_v6 = vrot.slane %v4991_v59, %v5580_v4 }
  0xb0   : > { %757 = vbcast.lane.b32.xlu1 %v755_v62, 256  ;;  %750 = vbcast.lane.b32.xlu0 %v748_v63, 256  ;;  %v976_v62 = vrot.slane %v4991_v59, %v5582_v5  ;;  %v969_v63 = vrot.slane %v4991_v59, %v5573_v3 }
  0xb2   : > { %v307_v9 = vpop.permute.xlu1 %306  ;;  %v300_v10 = vpop.permute.xlu0 %299 }
  0xb3   : > { %372 = vst.msk [vmem:[%s5662_s15 + $0x70] sm:$0xff] %vm364_vm1, %v307_v9  ;;  %371 = vst.msk [vmem:[%s5662_s15 + $0x60] sm:$0xff] %vm364_vm1, %v300_v10  ;;  %v1004_v10 = vrot.slane %v4991_v59, %v5589_v11 }
  0xb4   : > { %791 = vbcast.lane.b32.xlu1 %v789_v7, 256  ;;  %784 = vbcast.lane.b32.xlu0 %v782_v8, 256  ;;  %v983_v7 = vrot.slane %v4991_v59, %v5571_v2 }
  0xb6   : > { %v321_v17 = vpop.permute.xlu1 %320  ;;  %v314_v18 = vpop.permute.xlu0 %313 }
  0xb7   : > { %374 = vst.msk [vmem:[%s5662_s15 + $0x490] sm:$0xff] %vm364_vm1, %v321_v17  ;;  %373 = vst.msk [vmem:[%s5662_s15 + $0x480] sm:$0xff] %vm364_vm1, %v314_v18  ;;  %v1018_v18 = vrot.slane %v4991_v59, %v5595_v15 }
  0xb8   : > { %805 = vbcast.lane.b32.xlu1 %v803_v13, 256  ;;  %798 = vbcast.lane.b32.xlu0 %v796_v14, 256  ;;  %v997_v13 = vrot.slane %v4991_v59, %v5591_v12 }
  0xba   : > { %v335_v21 = vpop.permute.xlu1 %334  ;;  %v328_v22 = vpop.permute.xlu0 %327 }
  0xbb   : > { %376 = vst.msk [vmem:[%s5662_s15 + $0x4b0] sm:$0xff] %vm364_vm1, %v335_v21  ;;  %375 = vst.msk [vmem:[%s5662_s15 + $0x4a0] sm:$0xff] %vm364_vm1, %v328_v22 }
  0xbc   : > { %819 = vbcast.lane.b32.xlu1 %v817_v19, 256  ;;  %812 = vbcast.lane.b32.xlu0 %v810_v20, 256  ;;  %v1011_v19 = vrot.slane %v4991_v59, %v5597_v16  ;;  %v5008_v20 = vld [vmem:[%s5578_s11 + $0xf8] sm:$0xff] }
  0xbe   : > { %v349_v26 = vpop.permute.xlu1 %348  ;;  %v342_v27 = vpop.permute.xlu0 %341 }
  0xbf   : > { %378 = vst.msk [vmem:[%s5662_s15 + $0x4d0] sm:$0xff] %vm364_vm1, %v349_v26  ;;  %377 = vst.msk [vmem:[%s5662_s15 + $0x4c0] sm:$0xff] %vm364_vm1, %v342_v27  ;;  %v1066_v27 = vrot.slane %v5008_v20, %v5580_v4 }
  0xc0   : > { %833 = vbcast.lane.b32.xlu1 %v831_v23, 256  ;;  %826 = vbcast.lane.b32.xlu0 %v824_v24, 256  ;;  %v1052_v23 = vrot.slane %v5008_v20, %v5582_v5  ;;  %v1045_v24 = vrot.slane %v5008_v20, %v5573_v3 }
  0xc2   : > { %v363_v30 = vpop.permute.xlu1 %362  ;;  %v356_v31 = vpop.permute.xlu0 %355 }
  0xc3   : > { %380 = vst.msk [vmem:[%s5662_s15 + $0x4f0] sm:$0xff] %vm364_vm1, %v363_v30  ;;  %379 = vst.msk [vmem:[%s5662_s15 + $0x4e0] sm:$0xff] %vm364_vm1, %v356_v31  ;;  %v1080_v31 = vrot.slane %v5008_v20, %v5589_v11 }
  0xc4   : > { %847 = vbcast.lane.b32.xlu1 %v845_v28, 256  ;;  %840 = vbcast.lane.b32.xlu0 %v838_v29, 256  ;;  %v1059_v28 = vrot.slane %v5008_v20, %v5571_v2 }
  0xc6   : > { %v397_v34 = vpop.permute.xlu1 %396  ;;  %v390_v35 = vpop.permute.xlu0 %389 }
  0xc7   : > { %4921 = vst.msk [vmem:[%s5662_s15 + $0x18] sm:$0xff] %vm232_vm0, %v397_v34  ;;  %4920 = vst.msk [vmem:[%s5662_s15 + $0x8] sm:$0xff] %vm232_vm0, %v390_v35  ;;  %v1094_v35 = vrot.slane %v5008_v20, %v5595_v15 }
  0xc8   : > { %861 = vbcast.lane.b32.xlu1 %v859_v32, 256  ;;  %854 = vbcast.lane.b32.xlu0 %v852_v33, 256  ;;  %v1073_v32 = vrot.slane %v5008_v20, %v5591_v12 }
  0xca   : > { %v411_v38 = vpop.permute.xlu1 %410  ;;  %v404_v39 = vpop.permute.xlu0 %403 }
  0xcb   : > { %4923 = vst.msk [vmem:[%s5662_s15 + $0x38] sm:$0xff] %vm232_vm0, %v411_v38  ;;  %4922 = vst.msk [vmem:[%s5662_s15 + $0x28] sm:$0xff] %vm232_vm0, %v404_v39 }
  0xcc   : > { %875 = vbcast.lane.b32.xlu1 %v873_v36, 256  ;;  %868 = vbcast.lane.b32.xlu0 %v866_v37, 256  ;;  %v1087_v36 = vrot.slane %v5008_v20, %v5597_v16  ;;  %v5009_v37 = vld [vmem:[%s5578_s11 + $0x120] sm:$0xff] }
  0xce   : > { %v425_v43 = vpop.permute.xlu1 %424  ;;  %v418_v44 = vpop.permute.xlu0 %417 }
  0xcf   : > { %4925 = vst.msk [vmem:[%s5662_s15 + $0x58] sm:$0xff] %vm232_vm0, %v425_v43  ;;  %4924 = vst.msk [vmem:[%s5662_s15 + $0x48] sm:$0xff] %vm232_vm0, %v418_v44  ;;  %v1122_v44 = vrot.slane %v5009_v37, %v5580_v4 }
  0xd0   : > { %889 = vbcast.lane.b32.xlu1 %v887_v40, 256  ;;  %882 = vbcast.lane.b32.xlu0 %v880_v41, 256  ;;  %v1108_v40 = vrot.slane %v5009_v37, %v5582_v5  ;;  %v1101_v41 = vrot.slane %v5009_v37, %v5573_v3 }
  0xd2   : > { %v439_v47 = vpop.permute.xlu1 %438  ;;  %v432_v48 = vpop.permute.xlu0 %431 }
  0xd3   : > { %4927 = vst.msk [vmem:[%s5662_s15 + $0x78] sm:$0xff] %vm232_vm0, %v439_v47  ;;  %4926 = vst.msk [vmem:[%s5662_s15 + $0x68] sm:$0xff] %vm232_vm0, %v432_v48  ;;  %v1136_v48 = vrot.slane %v5009_v37, %v5589_v11 }
  0xd4   : > { %922 = vbcast.lane.b32.xlu1 %v920_v45, 256  ;;  %915 = vbcast.lane.b32.xlu0 %v913_v46, 256  ;;  %v1115_v45 = vrot.slane %v5009_v37, %v5571_v2 }
  0xd6   : > { %v453_v51 = vpop.permute.xlu1 %452  ;;  %v446_v52 = vpop.permute.xlu0 %445 }
  0xd7   : > { %4929 = vst.msk [vmem:[%s5662_s15 + $0x498] sm:$0xff] %vm232_vm0, %v453_v51  ;;  %4928 = vst.msk [vmem:[%s5662_s15 + $0x488] sm:$0xff] %vm232_vm0, %v446_v52  ;;  %v1150_v52 = vrot.slane %v5009_v37, %v5595_v15 }
  0xd8   : > { %936 = vbcast.lane.b32.xlu1 %v934_v49, 256  ;;  %929 = vbcast.lane.b32.xlu0 %v927_v50, 256  ;;  %v1129_v49 = vrot.slane %v5009_v37, %v5591_v12 }
  0xda   : > { %v467_v55 = vpop.permute.xlu1 %466  ;;  %v460_v56 = vpop.permute.xlu0 %459 }
  0xdb   : > { %4931 = vst.msk [vmem:[%s5662_s15 + $0x4b8] sm:$0xff] %vm232_vm0, %v467_v55  ;;  %4930 = vst.msk [vmem:[%s5662_s15 + $0x4a8] sm:$0xff] %vm232_vm0, %v460_v56 }
  0xdc   : > { %950 = vbcast.lane.b32.xlu1 %v948_v53, 256  ;;  %943 = vbcast.lane.b32.xlu0 %v941_v54, 256  ;;  %v1143_v53 = vrot.slane %v5009_v37, %v5597_v16  ;;  %v5026_v54 = vld [vmem:[%s5578_s11 + $0x148] sm:$0xff] }
  0xde   : > { %v481_v60 = vpop.permute.xlu1 %480  ;;  %v474_v61 = vpop.permute.xlu0 %473 }
  0xdf   : > { %4933 = vst.msk [vmem:[%s5662_s15 + $0x4d8] sm:$0xff] %vm232_vm0, %v481_v60  ;;  %4932 = vst.msk [vmem:[%s5662_s15 + $0x4c8] sm:$0xff] %vm232_vm0, %v474_v61  ;;  %v1197_v61 = vrot.slane %v5026_v54, %v5580_v4 }
  0xe0   : > { %964 = vbcast.lane.b32.xlu1 %v962_v57, 256  ;;  %957 = vbcast.lane.b32.xlu0 %v955_v58, 256  ;;  %v1183_v57 = vrot.slane %v5026_v54, %v5582_v5  ;;  %v1176_v58 = vrot.slane %v5026_v54, %v5573_v3 }
  0xe2   : > { %v495_v0 = vpop.permute.xlu1 %494  ;;  %v488_v1 = vpop.permute.xlu0 %487 }
  0xe3   : > { %4935 = vst.msk [vmem:[%s5662_s15 + $0x4f8] sm:$0xff] %vm232_vm0, %v495_v0  ;;  %4934 = vst.msk [vmem:[%s5662_s15 + $0x4e8] sm:$0xff] %vm232_vm0, %v488_v1  ;;  %v1211_v1 = vrot.slane %v5026_v54, %v5589_v11 }
  0xe4   : > { %978 = vbcast.lane.b32.xlu1 %v976_v62, 256  ;;  %971 = vbcast.lane.b32.xlu0 %v969_v63, 256  ;;  %v1190_v62 = vrot.slane %v5026_v54, %v5571_v2 }
  0xe6   : > { %v529_v8 = vpop.permute.xlu1 %528  ;;  %v522_v9 = vpop.permute.xlu0 %521 }
  0xe7   : > { %4939 = vst.msk [vmem:[%s5662_s15 + $0x18] sm:$0xff] %vm364_vm1, %v529_v8  ;;  %4938 = vst.msk [vmem:[%s5662_s15 + $0x8] sm:$0xff] %vm364_vm1, %v522_v9  ;;  %v1225_v9 = vrot.slane %v5026_v54, %v5595_v15 }
  0xe8   : > { %992 = vbcast.lane.b32.xlu1 %v990_v6, 256  ;;  %985 = vbcast.lane.b32.xlu0 %v983_v7, 256  ;;  %v1204_v6 = vrot.slane %v5026_v54, %v5591_v12 }
  0xea   : > { %v543_v14 = vpop.permute.xlu1 %542  ;;  %v536_v17 = vpop.permute.xlu0 %535 }
  0xeb   : > { %4941 = vst.msk [vmem:[%s5662_s15 + $0x38] sm:$0xff] %vm364_vm1, %v543_v14  ;;  %4940 = vst.msk [vmem:[%s5662_s15 + $0x28] sm:$0xff] %vm364_vm1, %v536_v17 }
  0xec   : > { %1006 = vbcast.lane.b32.xlu1 %v1004_v10, 256  ;;  %999 = vbcast.lane.b32.xlu0 %v997_v13, 256  ;;  %v1218_v10 = vrot.slane %v5026_v54, %v5597_v16  ;;  %v5027_v13 = vld [vmem:[%s5578_s11 + $0x170] sm:$0xff] }
  0xee   : > { %v557_v21 = vpop.permute.xlu1 %556  ;;  %v550_v22 = vpop.permute.xlu0 %549 }
  0xef   : > { %4943 = vst.msk [vmem:[%s5662_s15 + $0x58] sm:$0xff] %vm364_vm1, %v557_v21  ;;  %4942 = vst.msk [vmem:[%s5662_s15 + $0x48] sm:$0xff] %vm364_vm1, %v550_v22  ;;  %v1253_v22 = vrot.slane %v5027_v13, %v5580_v4 }
  0xf0   : > { %1020 = vbcast.lane.b32.xlu1 %v1018_v18, 256  ;;  %1013 = vbcast.lane.b32.xlu0 %v1011_v19, 256  ;;  %v1239_v18 = vrot.slane %v5027_v13, %v5582_v5  ;;  %v1232_v19 = vrot.slane %v5027_v13, %v5573_v3 }
  0xf2   : > { %v571_v25 = vpop.permute.xlu1 %570  ;;  %v564_v26 = vpop.permute.xlu0 %563 }
  0xf3   : > { %4945 = vst.msk [vmem:[%s5662_s15 + $0x78] sm:$0xff] %vm364_vm1, %v571_v25  ;;  %4944 = vst.msk [vmem:[%s5662_s15 + $0x68] sm:$0xff] %vm364_vm1, %v564_v26  ;;  %v1267_v26 = vrot.slane %v5027_v13, %v5589_v11 }
  0xf4   : > { %1054 = vbcast.lane.b32.xlu1 %v1052_v23, 256  ;;  %1047 = vbcast.lane.b32.xlu0 %v1045_v24, 256  ;;  %v1246_v23 = vrot.slane %v5027_v13, %v5571_v2 }
  0xf6   : > { %v585_v29 = vpop.permute.xlu1 %584  ;;  %v578_v30 = vpop.permute.xlu0 %577 }
  0xf7   : > { %4947 = vst.msk [vmem:[%s5662_s15 + $0x498] sm:$0xff] %vm364_vm1, %v585_v29  ;;  %4946 = vst.msk [vmem:[%s5662_s15 + $0x488] sm:$0xff] %vm364_vm1, %v578_v30  ;;  %v1281_v30 = vrot.slane %v5027_v13, %v5595_v15 }
  0xf8   : > { %1068 = vbcast.lane.b32.xlu1 %v1066_v27, 256  ;;  %1061 = vbcast.lane.b32.xlu0 %v1059_v28, 256  ;;  %v1260_v27 = vrot.slane %v5027_v13, %v5591_v12 }
  0xfa   : > { %v599_v33 = vpop.permute.xlu1 %598  ;;  %v592_v34 = vpop.permute.xlu0 %591 }
  0xfb   : > { %4949 = vst.msk [vmem:[%s5662_s15 + $0x4b8] sm:$0xff] %vm364_vm1, %v599_v33  ;;  %4948 = vst.msk [vmem:[%s5662_s15 + $0x4a8] sm:$0xff] %vm364_vm1, %v592_v34 }
  0xfc   : > { %1082 = vbcast.lane.b32.xlu1 %v1080_v31, 256  ;;  %1075 = vbcast.lane.b32.xlu0 %v1073_v32, 256  ;;  %v1274_v31 = vrot.slane %v5027_v13, %v5597_v16  ;;  %v5044_v32 = vld [vmem:[%s5578_s11 + $0x198] sm:$0xff] }
  0xfe   : > { %v613_v38 = vpop.permute.xlu1 %612  ;;  %v606_v39 = vpop.permute.xlu0 %605 }
  0xff   : > { %4951 = vst.msk [vmem:[%s5662_s15 + $0x4d8] sm:$0xff] %vm364_vm1, %v613_v38  ;;  %4950 = vst.msk [vmem:[%s5662_s15 + $0x4c8] sm:$0xff] %vm364_vm1, %v606_v39  ;;  %v1329_v39 = vrot.slane %v5044_v32, %v5580_v4 }
 0x100   : > { %1096 = vbcast.lane.b32.xlu1 %v1094_v35, 256  ;;  %1089 = vbcast.lane.b32.xlu0 %v1087_v36, 256  ;;  %v1315_v35 = vrot.slane %v5044_v32, %v5582_v5  ;;  %v1308_v36 = vrot.slane %v5044_v32, %v5573_v3 }
 0x102   : > { %v627_v42 = vpop.permute.xlu1 %626  ;;  %v620_v43 = vpop.permute.xlu0 %619 }
 0x103   : > { %4953 = vst.msk [vmem:[%s5662_s15 + $0x4f8] sm:$0xff] %vm364_vm1, %v627_v42  ;;  %4952 = vst.msk [vmem:[%s5662_s15 + $0x4e8] sm:$0xff] %vm364_vm1, %v620_v43  ;;  %v1343_v43 = vrot.slane %v5044_v32, %v5589_v11 }
 0x104   : > { %1110 = vbcast.lane.b32.xlu1 %v1108_v40, 256  ;;  %1103 = vbcast.lane.b32.xlu0 %v1101_v41, 256  ;;  %v1322_v40 = vrot.slane %v5044_v32, %v5571_v2 }
 0x106   : > { %v660_v46 = vpop.permute.xlu1 %659  ;;  %v653_v47 = vpop.permute.xlu0 %652 }
 0x107   : > { %4957 = vst.msk [vmem:[%s5662_s15 + $0x90] sm:$0xff] %vm232_vm0, %v660_v46  ;;  %4956 = vst.msk [vmem:[%s5662_s15 + $0x80] sm:$0xff] %vm232_vm0, %v653_v47  ;;  %v1357_v47 = vrot.slane %v5044_v32, %v5595_v15 }
 0x108   : > { %1124 = vbcast.lane.b32.xlu1 %v1122_v44, 256  ;;  %1117 = vbcast.lane.b32.xlu0 %v1115_v45, 256  ;;  %v1336_v44 = vrot.slane %v5044_v32, %v5591_v12 }
 0x10a   : > { %v674_v50 = vpop.permute.xlu1 %673  ;;  %v667_v51 = vpop.permute.xlu0 %666 }
 0x10b   : > { %4959 = vst.msk [vmem:[%s5662_s15 + $0xb0] sm:$0xff] %vm232_vm0, %v674_v50  ;;  %4958 = vst.msk [vmem:[%s5662_s15 + $0xa0] sm:$0xff] %vm232_vm0, %v667_v51 }
 0x10c   : > { %1138 = vbcast.lane.b32.xlu1 %v1136_v48, 256  ;;  %1131 = vbcast.lane.b32.xlu0 %v1129_v49, 256  ;;  %v1350_v48 = vrot.slane %v5044_v32, %v5597_v16  ;;  %v5045_v49 = vld [vmem:[%s5578_s11 + $0x1c0] sm:$0xff] }
 0x10e   : > { %v688_v55 = vpop.permute.xlu1 %687  ;;  %v681_v56 = vpop.permute.xlu0 %680 }
 0x10f   : > { %4961 = vst.msk [vmem:[%s5662_s15 + $0xd0] sm:$0xff] %vm232_vm0, %v688_v55  ;;  %4960 = vst.msk [vmem:[%s5662_s15 + $0xc0] sm:$0xff] %vm232_vm0, %v681_v56  ;;  %v1385_v56 = vrot.slane %v5045_v49, %v5580_v4 }
 0x110   : > { %1152 = vbcast.lane.b32.xlu1 %v1150_v52, 256  ;;  %1145 = vbcast.lane.b32.xlu0 %v1143_v53, 256  ;;  %v1371_v52 = vrot.slane %v5045_v49, %v5582_v5  ;;  %v1364_v53 = vrot.slane %v5045_v49, %v5573_v3 }
 0x112   : > { %v702_v59 = vpop.permute.xlu1 %701  ;;  %v695_v60 = vpop.permute.xlu0 %694 }
 0x113   : > { %4963 = vst.msk [vmem:[%s5662_s15 + $0xf0] sm:$0xff] %vm232_vm0, %v702_v59  ;;  %4962 = vst.msk [vmem:[%s5662_s15 + $0xe0] sm:$0xff] %vm232_vm0, %v695_v60  ;;  %v1399_v60 = vrot.slane %v5045_v49, %v5589_v11 }
 0x114   : > { %1185 = vbcast.lane.b32.xlu1 %v1183_v57, 256  ;;  %1178 = vbcast.lane.b32.xlu0 %v1176_v58, 256  ;;  %v1378_v57 = vrot.slane %v5045_v49, %v5571_v2 }
 0x116   : > { %v716_v63 = vpop.permute.xlu1 %715  ;;  %v709_v0 = vpop.permute.xlu0 %708 }
 0x117   : > { %4965 = vst.msk [vmem:[%s5662_s15 + $0x510] sm:$0xff] %vm232_vm0, %v716_v63  ;;  %4964 = vst.msk [vmem:[%s5662_s15 + $0x500] sm:$0xff] %vm232_vm0, %v709_v0  ;;  %v1413_v0 = vrot.slane %v5045_v49, %v5595_v15 }
 0x118   : > { %1199 = vbcast.lane.b32.xlu1 %v1197_v61, 256  ;;  %1192 = vbcast.lane.b32.xlu0 %v1190_v62, 256  ;;  %v1392_v61 = vrot.slane %v5045_v49, %v5591_v12 }
 0x11a   : > { %v730_v7 = vpop.permute.xlu1 %729  ;;  %v723_v8 = vpop.permute.xlu0 %722 }
 0x11b   : > { %4967 = vst.msk [vmem:[%s5662_s15 + $0x530] sm:$0xff] %vm232_vm0, %v730_v7  ;;  %4966 = vst.msk [vmem:[%s5662_s15 + $0x520] sm:$0xff] %vm232_vm0, %v723_v8 }
 0x11c   : > { %1213 = vbcast.lane.b32.xlu1 %v1211_v1, 256  ;;  %1206 = vbcast.lane.b32.xlu0 %v1204_v6, 256  ;;  %v1406_v1 = vrot.slane %v5045_v49, %v5597_v16  ;;  %v5062_v6 = vld [vmem:[%s5578_s11 + $0x1e8] sm:$0xff] }
 0x11e   : > { %v744_v14 = vpop.permute.xlu1 %743  ;;  %v737_v17 = vpop.permute.xlu0 %736 }
 0x11f   : > { %4969 = vst.msk [vmem:[%s5662_s15 + $0x550] sm:$0xff] %vm232_vm0, %v744_v14  ;;  %4968 = vst.msk [vmem:[%s5662_s15 + $0x540] sm:$0xff] %vm232_vm0, %v737_v17  ;;  %v1460_v17 = vrot.slane %v5062_v6, %v5580_v4 }
 0x120   : > { %1227 = vbcast.lane.b32.xlu1 %v1225_v9, 256  ;;  %1220 = vbcast.lane.b32.xlu0 %v1218_v10, 256  ;;  %v1446_v9 = vrot.slane %v5062_v6, %v5582_v5  ;;  %v1439_v10 = vrot.slane %v5062_v6, %v5573_v3 }
 0x122   : > { %v758_v20 = vpop.permute.xlu1 %757  ;;  %v751_v21 = vpop.permute.xlu0 %750 }
 0x123   : > { %4971 = vst.msk [vmem:[%s5662_s15 + $0x570] sm:$0xff] %vm232_vm0, %v758_v20  ;;  %4970 = vst.msk [vmem:[%s5662_s15 + $0x560] sm:$0xff] %vm232_vm0, %v751_v21  ;;  %v1474_v21 = vrot.slane %v5062_v6, %v5589_v11 }
 0x124   : > { %1241 = vbcast.lane.b32.xlu1 %v1239_v18, 256  ;;  %1234 = vbcast.lane.b32.xlu0 %v1232_v19, 256  ;;  %v1453_v18 = vrot.slane %v5062_v6, %v5571_v2 }
 0x126   : > { %v792_v24 = vpop.permute.xlu1 %791  ;;  %v785_v25 = vpop.permute.xlu0 %784 }
 0x127   : > { %4975 = vst.msk [vmem:[%s5662_s15 + $0x90] sm:$0xff] %vm364_vm1, %v792_v24  ;;  %4974 = vst.msk [vmem:[%s5662_s15 + $0x80] sm:$0xff] %vm364_vm1, %v785_v25  ;;  %v1488_v25 = vrot.slane %v5062_v6, %v5595_v15 }
 0x128   : > { %1255 = vbcast.lane.b32.xlu1 %v1253_v22, 256  ;;  %1248 = vbcast.lane.b32.xlu0 %v1246_v23, 256  ;;  %v1467_v22 = vrot.slane %v5062_v6, %v5591_v12 }
 0x12a   : > { %v806_v28 = vpop.permute.xlu1 %805  ;;  %v799_v29 = vpop.permute.xlu0 %798 }
 0x12b   : > { %4977 = vst.msk [vmem:[%s5662_s15 + $0xb0] sm:$0xff] %vm364_vm1, %v806_v28  ;;  %4976 = vst.msk [vmem:[%s5662_s15 + $0xa0] sm:$0xff] %vm364_vm1, %v799_v29 }
 0x12c   : > { %1269 = vbcast.lane.b32.xlu1 %v1267_v26, 256  ;;  %1262 = vbcast.lane.b32.xlu0 %v1260_v27, 256  ;;  %v1481_v26 = vrot.slane %v5062_v6, %v5597_v16  ;;  %v5063_v27 = vld [vmem:[%s5578_s11 + $0x210] sm:$0xff] }
 0x12e   : > { %v820_v33 = vpop.permute.xlu1 %819  ;;  %v813_v34 = vpop.permute.xlu0 %812 }
 0x12f   : > { %4979 = vst.msk [vmem:[%s5662_s15 + $0xd0] sm:$0xff] %vm364_vm1, %v820_v33  ;;  %4978 = vst.msk [vmem:[%s5662_s15 + $0xc0] sm:$0xff] %vm364_vm1, %v813_v34  ;;  %v1516_v34 = vrot.slane %v5063_v27, %v5580_v4 }
 0x130   : > { %1283 = vbcast.lane.b32.xlu1 %v1281_v30, 256  ;;  %1276 = vbcast.lane.b32.xlu0 %v1274_v31, 256  ;;  %v1502_v30 = vrot.slane %v5063_v27, %v5582_v5  ;;  %v1495_v31 = vrot.slane %v5063_v27, %v5573_v3 }
 0x132   : > { %v834_v37 = vpop.permute.xlu1 %833  ;;  %v827_v38 = vpop.permute.xlu0 %826 }
 0x133   : > { %4981 = vst.msk [vmem:[%s5662_s15 + $0xf0] sm:$0xff] %vm364_vm1, %v834_v37  ;;  %4980 = vst.msk [vmem:[%s5662_s15 + $0xe0] sm:$0xff] %vm364_vm1, %v827_v38  ;;  %v1530_v38 = vrot.slane %v5063_v27, %v5589_v11 }
 0x134   : > { %1317 = vbcast.lane.b32.xlu1 %v1315_v35, 256  ;;  %1310 = vbcast.lane.b32.xlu0 %v1308_v36, 256  ;;  %v1509_v35 = vrot.slane %v5063_v27, %v5571_v2 }
 0x136   : > { %v848_v41 = vpop.permute.xlu1 %847  ;;  %v841_v42 = vpop.permute.xlu0 %840 }
 0x137   : > { %4983 = vst.msk [vmem:[%s5662_s15 + $0x510] sm:$0xff] %vm364_vm1, %v848_v41  ;;  %4982 = vst.msk [vmem:[%s5662_s15 + $0x500] sm:$0xff] %vm364_vm1, %v841_v42  ;;  %v1544_v42 = vrot.slane %v5063_v27, %v5595_v15 }
 0x138   : > { %1331 = vbcast.lane.b32.xlu1 %v1329_v39, 256  ;;  %1324 = vbcast.lane.b32.xlu0 %v1322_v40, 256  ;;  %v1523_v39 = vrot.slane %v5063_v27, %v5591_v12 }
 0x13a   : > { %v862_v45 = vpop.permute.xlu1 %861  ;;  %v855_v46 = vpop.permute.xlu0 %854 }
 0x13b   : > { %4985 = vst.msk [vmem:[%s5662_s15 + $0x530] sm:$0xff] %vm364_vm1, %v862_v45  ;;  %4984 = vst.msk [vmem:[%s5662_s15 + $0x520] sm:$0xff] %vm364_vm1, %v855_v46 }
 0x13c   : > { %1345 = vbcast.lane.b32.xlu1 %v1343_v43, 256  ;;  %1338 = vbcast.lane.b32.xlu0 %v1336_v44, 256  ;;  %v1537_v43 = vrot.slane %v5063_v27, %v5597_v16  ;;  %v5080_v44 = vld [vmem:[%s5578_s11 + $0x238] sm:$0xff] }
 0x13e   : > { %v876_v50 = vpop.permute.xlu1 %875  ;;  %v869_v51 = vpop.permute.xlu0 %868 }
 0x13f   : > { %4987 = vst.msk [vmem:[%s5662_s15 + $0x550] sm:$0xff] %vm364_vm1, %v876_v50  ;;  %4986 = vst.msk [vmem:[%s5662_s15 + $0x540] sm:$0xff] %vm364_vm1, %v869_v51  ;;  %v1592_v51 = vrot.slane %v5080_v44, %v5580_v4 }
 0x140   : > { %1359 = vbcast.lane.b32.xlu1 %v1357_v47, 256  ;;  %1352 = vbcast.lane.b32.xlu0 %v1350_v48, 256  ;;  %v1578_v47 = vrot.slane %v5080_v44, %v5582_v5  ;;  %v1571_v48 = vrot.slane %v5080_v44, %v5573_v3 }
 0x142   : > { %v890_v54 = vpop.permute.xlu1 %889  ;;  %v883_v55 = vpop.permute.xlu0 %882 }
 0x143   : > { %4989 = vst.msk [vmem:[%s5662_s15 + $0x570] sm:$0xff] %vm364_vm1, %v890_v54  ;;  %4988 = vst.msk [vmem:[%s5662_s15 + $0x560] sm:$0xff] %vm364_vm1, %v883_v55  ;;  %v1606_v55 = vrot.slane %v5080_v44, %v5589_v11 }
 0x144   : > { %1373 = vbcast.lane.b32.xlu1 %v1371_v52, 256  ;;  %1366 = vbcast.lane.b32.xlu0 %v1364_v53, 256  ;;  %v1585_v52 = vrot.slane %v5080_v44, %v5571_v2 }
 0x146   : > { %v923_v58 = vpop.permute.xlu1 %922  ;;  %v916_v59 = vpop.permute.xlu0 %915 }
 0x147   : > { %4993 = vst.msk [vmem:[%s5662_s15 + $0x98] sm:$0xff] %vm232_vm0, %v923_v58  ;;  %4992 = vst.msk [vmem:[%s5662_s15 + $0x88] sm:$0xff] %vm232_vm0, %v916_v59  ;;  %v1620_v59 = vrot.slane %v5080_v44, %v5595_v15 }
 0x148   : > { %1387 = vbcast.lane.b32.xlu1 %v1385_v56, 256  ;;  %1380 = vbcast.lane.b32.xlu0 %v1378_v57, 256  ;;  %v1599_v56 = vrot.slane %v5080_v44, %v5591_v12 }
 0x14a   : > { %v937_v62 = vpop.permute.xlu1 %936  ;;  %v930_v63 = vpop.permute.xlu0 %929 }
 0x14b   : > { %4995 = vst.msk [vmem:[%s5662_s15 + $0xb8] sm:$0xff] %vm232_vm0, %v937_v62  ;;  %4994 = vst.msk [vmem:[%s5662_s15 + $0xa8] sm:$0xff] %vm232_vm0, %v930_v63 }
 0x14c   : > { %1401 = vbcast.lane.b32.xlu1 %v1399_v60, 256  ;;  %1394 = vbcast.lane.b32.xlu0 %v1392_v61, 256  ;;  %v1613_v60 = vrot.slane %v5080_v44, %v5597_v16  ;;  %v5081_v61 = vld [vmem:[%s5578_s11 + $0x260] sm:$0xff] }
 0x14e   : > { %v951_v7 = vpop.permute.xlu1 %950  ;;  %v944_v8 = vpop.permute.xlu0 %943 }
 0x14f   : > { %4997 = vst.msk [vmem:[%s5662_s15 + $0xd8] sm:$0xff] %vm232_vm0, %v951_v7  ;;  %4996 = vst.msk [vmem:[%s5662_s15 + $0xc8] sm:$0xff] %vm232_vm0, %v944_v8  ;;  %v1648_v8 = vrot.slane %v5081_v61, %v5580_v4 }
 0x150   : > { %1415 = vbcast.lane.b32.xlu1 %v1413_v0, 256  ;;  %1408 = vbcast.lane.b32.xlu0 %v1406_v1, 256  ;;  %v1634_v0 = vrot.slane %v5081_v61, %v5582_v5  ;;  %v1627_v1 = vrot.slane %v5081_v61, %v5573_v3 }
 0x152   : > { %v965_v13 = vpop.permute.xlu1 %964  ;;  %v958_v14 = vpop.permute.xlu0 %957 }
 0x153   : > { %4999 = vst.msk [vmem:[%s5662_s15 + $0xf8] sm:$0xff] %vm232_vm0, %v965_v13  ;;  %4998 = vst.msk [vmem:[%s5662_s15 + $0xe8] sm:$0xff] %vm232_vm0, %v958_v14  ;;  %v1662_v14 = vrot.slane %v5081_v61, %v5589_v11 }
 0x154   : > { %1448 = vbcast.lane.b32.xlu1 %v1446_v9, 256  ;;  %1441 = vbcast.lane.b32.xlu0 %v1439_v10, 256  ;;  %v1641_v9 = vrot.slane %v5081_v61, %v5571_v2 }
 0x156   : > { %v979_v19 = vpop.permute.xlu1 %978  ;;  %v972_v20 = vpop.permute.xlu0 %971 }
 0x157   : > { %5001 = vst.msk [vmem:[%s5662_s15 + $0x518] sm:$0xff] %vm232_vm0, %v979_v19  ;;  %5000 = vst.msk [vmem:[%s5662_s15 + $0x508] sm:$0xff] %vm232_vm0, %v972_v20  ;;  %v1676_v20 = vrot.slane %v5081_v61, %v5595_v15 }
 0x158   : > { %1462 = vbcast.lane.b32.xlu1 %v1460_v17, 256  ;;  %1455 = vbcast.lane.b32.xlu0 %v1453_v18, 256  ;;  %v1655_v17 = vrot.slane %v5081_v61, %v5591_v12 }
 0x15a   : > { %v993_v23 = vpop.permute.xlu1 %992  ;;  %v986_v24 = vpop.permute.xlu0 %985 }
 0x15b   : > { %5003 = vst.msk [vmem:[%s5662_s15 + $0x538] sm:$0xff] %vm232_vm0, %v993_v23  ;;  %5002 = vst.msk [vmem:[%s5662_s15 + $0x528] sm:$0xff] %vm232_vm0, %v986_v24 }
 0x15c   : > { %1476 = vbcast.lane.b32.xlu1 %v1474_v21, 256  ;;  %1469 = vbcast.lane.b32.xlu0 %v1467_v22, 256  ;;  %v1669_v21 = vrot.slane %v5081_v61, %v5597_v16  ;;  %v5098_v22 = vld [vmem:[%s5578_s11 + $0x10] sm:$0xff] }
 0x15e   : > { %v1007_v28 = vpop.permute.xlu1 %1006  ;;  %v1000_v29 = vpop.permute.xlu0 %999 }
 0x15f   : > { %5005 = vst.msk [vmem:[%s5662_s15 + $0x558] sm:$0xff] %vm232_vm0, %v1007_v28  ;;  %5004 = vst.msk [vmem:[%s5662_s15 + $0x548] sm:$0xff] %vm232_vm0, %v1000_v29  ;;  %v1723_v29 = vrot.slane %v5098_v22, %v5580_v4 }
 0x160   : > { %1490 = vbcast.lane.b32.xlu1 %v1488_v25, 256  ;;  %1483 = vbcast.lane.b32.xlu0 %v1481_v26, 256  ;;  %v1709_v25 = vrot.slane %v5098_v22, %v5582_v5  ;;  %v1702_v26 = vrot.slane %v5098_v22, %v5573_v3 }
 0x162   : > { %v1021_v32 = vpop.permute.xlu1 %1020  ;;  %v1014_v33 = vpop.permute.xlu0 %1013 }
 0x163   : > { %5007 = vst.msk [vmem:[%s5662_s15 + $0x578] sm:$0xff] %vm232_vm0, %v1021_v32  ;;  %5006 = vst.msk [vmem:[%s5662_s15 + $0x568] sm:$0xff] %vm232_vm0, %v1014_v33  ;;  %v1737_v33 = vrot.slane %v5098_v22, %v5589_v11 }
 0x164   : > { %1504 = vbcast.lane.b32.xlu1 %v1502_v30, 256  ;;  %1497 = vbcast.lane.b32.xlu0 %v1495_v31, 256  ;;  %v1716_v30 = vrot.slane %v5098_v22, %v5571_v2 }
 0x166   : > { %v1055_v36 = vpop.permute.xlu1 %1054  ;;  %v1048_v37 = vpop.permute.xlu0 %1047 }
 0x167   : > { %5011 = vst.msk [vmem:[%s5662_s15 + $0x98] sm:$0xff] %vm364_vm1, %v1055_v36  ;;  %5010 = vst.msk [vmem:[%s5662_s15 + $0x88] sm:$0xff] %vm364_vm1, %v1048_v37  ;;  %v1751_v37 = vrot.slane %v5098_v22, %v5595_v15 }
 0x168   : > { %1518 = vbcast.lane.b32.xlu1 %v1516_v34, 256  ;;  %1511 = vbcast.lane.b32.xlu0 %v1509_v35, 256  ;;  %v1730_v34 = vrot.slane %v5098_v22, %v5591_v12 }
 0x16a   : > { %v1069_v40 = vpop.permute.xlu1 %1068  ;;  %v1062_v41 = vpop.permute.xlu0 %1061 }
 0x16b   : > { %5013 = vst.msk [vmem:[%s5662_s15 + $0xb8] sm:$0xff] %vm364_vm1, %v1069_v40  ;;  %5012 = vst.msk [vmem:[%s5662_s15 + $0xa8] sm:$0xff] %vm364_vm1, %v1062_v41 }
 0x16c   : > { %1532 = vbcast.lane.b32.xlu1 %v1530_v38, 256  ;;  %1525 = vbcast.lane.b32.xlu0 %v1523_v39, 256  ;;  %v1744_v38 = vrot.slane %v5098_v22, %v5597_v16  ;;  %v5099_v39 = vld [vmem:[%s5578_s11 + $0x38] sm:$0xff] }
 0x16e   : > { %v1083_v45 = vpop.permute.xlu1 %1082  ;;  %v1076_v46 = vpop.permute.xlu0 %1075 }
 0x16f   : > { %5015 = vst.msk [vmem:[%s5662_s15 + $0xd8] sm:$0xff] %vm364_vm1, %v1083_v45  ;;  %5014 = vst.msk [vmem:[%s5662_s15 + $0xc8] sm:$0xff] %vm364_vm1, %v1076_v46  ;;  %v1779_v46 = vrot.slane %v5099_v39, %v5580_v4 }
 0x170   : > { %1546 = vbcast.lane.b32.xlu1 %v1544_v42, 256  ;;  %1539 = vbcast.lane.b32.xlu0 %v1537_v43, 256  ;;  %v1765_v42 = vrot.slane %v5099_v39, %v5582_v5  ;;  %v1758_v43 = vrot.slane %v5099_v39, %v5573_v3 }
 0x172   : > { %v1097_v49 = vpop.permute.xlu1 %1096  ;;  %v1090_v50 = vpop.permute.xlu0 %1089 }
 0x173   : > { %5017 = vst.msk [vmem:[%s5662_s15 + $0xf8] sm:$0xff] %vm364_vm1, %v1097_v49  ;;  %5016 = vst.msk [vmem:[%s5662_s15 + $0xe8] sm:$0xff] %vm364_vm1, %v1090_v50  ;;  %v1793_v50 = vrot.slane %v5099_v39, %v5589_v11 }
 0x174   : > { %1580 = vbcast.lane.b32.xlu1 %v1578_v47, 256  ;;  %1573 = vbcast.lane.b32.xlu0 %v1571_v48, 256  ;;  %v1772_v47 = vrot.slane %v5099_v39, %v5571_v2 }
 0x176   : > { %v1111_v53 = vpop.permute.xlu1 %1110  ;;  %v1104_v54 = vpop.permute.xlu0 %1103 }
 0x177   : > { %5019 = vst.msk [vmem:[%s5662_s15 + $0x518] sm:$0xff] %vm364_vm1, %v1111_v53  ;;  %5018 = vst.msk [vmem:[%s5662_s15 + $0x508] sm:$0xff] %vm364_vm1, %v1104_v54  ;;  %v1807_v54 = vrot.slane %v5099_v39, %v5595_v15 }
 0x178   : > { %1594 = vbcast.lane.b32.xlu1 %v1592_v51, 256  ;;  %1587 = vbcast.lane.b32.xlu0 %v1585_v52, 256  ;;  %v1786_v51 = vrot.slane %v5099_v39, %v5591_v12 }
 0x17a   : > { %v1125_v57 = vpop.permute.xlu1 %1124  ;;  %v1118_v58 = vpop.permute.xlu0 %1117 }
 0x17b   : > { %5021 = vst.msk [vmem:[%s5662_s15 + $0x538] sm:$0xff] %vm364_vm1, %v1125_v57  ;;  %5020 = vst.msk [vmem:[%s5662_s15 + $0x528] sm:$0xff] %vm364_vm1, %v1118_v58 }
 0x17c   : > { %1608 = vbcast.lane.b32.xlu1 %v1606_v55, 256  ;;  %1601 = vbcast.lane.b32.xlu0 %v1599_v56, 256  ;;  %v1800_v55 = vrot.slane %v5099_v39, %v5597_v16  ;;  %v5116_v56 = vld [vmem:[%s5578_s11 + $0x60] sm:$0xff] }
 0x17e   : > { %v1139_v62 = vpop.permute.xlu1 %1138  ;;  %v1132_v63 = vpop.permute.xlu0 %1131 }
 0x17f   : > { %5023 = vst.msk [vmem:[%s5662_s15 + $0x558] sm:$0xff] %vm364_vm1, %v1139_v62  ;;  %5022 = vst.msk [vmem:[%s5662_s15 + $0x548] sm:$0xff] %vm364_vm1, %v1132_v63  ;;  %v1855_v63 = vrot.slane %v5116_v56, %v5580_v4 }
 0x180   : > { %1622 = vbcast.lane.b32.xlu1 %v1620_v59, 256  ;;  %1615 = vbcast.lane.b32.xlu0 %v1613_v60, 256  ;;  %v1841_v59 = vrot.slane %v5116_v56, %v5582_v5  ;;  %v1834_v60 = vrot.slane %v5116_v56, %v5573_v3 }
 0x182   : > { %v1153_v6 = vpop.permute.xlu1 %1152  ;;  %v1146_v7 = vpop.permute.xlu0 %1145 }
 0x183   : > { %5025 = vst.msk [vmem:[%s5662_s15 + $0x578] sm:$0xff] %vm364_vm1, %v1153_v6  ;;  %5024 = vst.msk [vmem:[%s5662_s15 + $0x568] sm:$0xff] %vm364_vm1, %v1146_v7  ;;  %v1869_v7 = vrot.slane %v5116_v56, %v5589_v11 }
 0x184   : > { %1636 = vbcast.lane.b32.xlu1 %v1634_v0, 256  ;;  %1629 = vbcast.lane.b32.xlu0 %v1627_v1, 256  ;;  %v1848_v0 = vrot.slane %v5116_v56, %v5571_v2 }
 0x186   : > { %v1186_v10 = vpop.permute.xlu1 %1185  ;;  %v1179_v13 = vpop.permute.xlu0 %1178 }
 0x187   : > { %5029 = vst.msk [vmem:[%s5662_s15 + $0x110] sm:$0xff] %vm232_vm0, %v1186_v10  ;;  %5028 = vst.msk [vmem:[%s5662_s15 + $0x100] sm:$0xff] %vm232_vm0, %v1179_v13  ;;  %v1883_v13 = vrot.slane %v5116_v56, %v5595_v15 }
 0x188   : > { %1650 = vbcast.lane.b32.xlu1 %v1648_v8, 256  ;;  %1643 = vbcast.lane.b32.xlu0 %v1641_v9, 256  ;;  %v1862_v8 = vrot.slane %v5116_v56, %v5591_v12 }
 0x18a   : > { %v1200_v18 = vpop.permute.xlu1 %1199  ;;  %v1193_v19 = vpop.permute.xlu0 %1192 }
 0x18b   : > { %5031 = vst.msk [vmem:[%s5662_s15 + $0x130] sm:$0xff] %vm232_vm0, %v1200_v18  ;;  %5030 = vst.msk [vmem:[%s5662_s15 + $0x120] sm:$0xff] %vm232_vm0, %v1193_v19 }
 0x18c   : > { %1664 = vbcast.lane.b32.xlu1 %v1662_v14, 256  ;;  %1657 = vbcast.lane.b32.xlu0 %v1655_v17, 256  ;;  %v1876_v14 = vrot.slane %v5116_v56, %v5597_v16  ;;  %v5117_v17 = vld [vmem:[%s5578_s11 + $0x88] sm:$0xff] }
 0x18e   : > { %v1214_v23 = vpop.permute.xlu1 %1213  ;;  %v1207_v24 = vpop.permute.xlu0 %1206 }
 0x18f   : > { %5033 = vst.msk [vmem:[%s5662_s15 + $0x150] sm:$0xff] %vm232_vm0, %v1214_v23  ;;  %5032 = vst.msk [vmem:[%s5662_s15 + $0x140] sm:$0xff] %vm232_vm0, %v1207_v24  ;;  %v1911_v24 = vrot.slane %v5117_v17, %v5580_v4 }
 0x190   : > { %1678 = vbcast.lane.b32.xlu1 %v1676_v20, 256  ;;  %1671 = vbcast.lane.b32.xlu0 %v1669_v21, 256  ;;  %v1897_v20 = vrot.slane %v5117_v17, %v5582_v5  ;;  %v1890_v21 = vrot.slane %v5117_v17, %v5573_v3 }
 0x192   : > { %v1228_v27 = vpop.permute.xlu1 %1227  ;;  %v1221_v28 = vpop.permute.xlu0 %1220 }
 0x193   : > { %5035 = vst.msk [vmem:[%s5662_s15 + $0x170] sm:$0xff] %vm232_vm0, %v1228_v27  ;;  %5034 = vst.msk [vmem:[%s5662_s15 + $0x160] sm:$0xff] %vm232_vm0, %v1221_v28  ;;  %v1925_v28 = vrot.slane %v5117_v17, %v5589_v11 }
 0x194   : > { %1711 = vbcast.lane.b32.xlu1 %v1709_v25, 256  ;;  %1704 = vbcast.lane.b32.xlu0 %v1702_v26, 256  ;;  %v1904_v25 = vrot.slane %v5117_v17, %v5571_v2 }
 0x196   : > { %v1242_v31 = vpop.permute.xlu1 %1241  ;;  %v1235_v32 = vpop.permute.xlu0 %1234 }
 0x197   : > { %5037 = vst.msk [vmem:[%s5662_s15 + $0x590] sm:$0xff] %vm232_vm0, %v1242_v31  ;;  %5036 = vst.msk [vmem:[%s5662_s15 + $0x580] sm:$0xff] %vm232_vm0, %v1235_v32  ;;  %v1939_v32 = vrot.slane %v5117_v17, %v5595_v15 }
 0x198   : > { %1725 = vbcast.lane.b32.xlu1 %v1723_v29, 256  ;;  %1718 = vbcast.lane.b32.xlu0 %v1716_v30, 256  ;;  %v1918_v29 = vrot.slane %v5117_v17, %v5591_v12 }
 0x19a   : > { %v1256_v35 = vpop.permute.xlu1 %1255  ;;  %v1249_v36 = vpop.permute.xlu0 %1248 }
 0x19b   : > { %5039 = vst.msk [vmem:[%s5662_s15 + $0x5b0] sm:$0xff] %vm232_vm0, %v1256_v35  ;;  %5038 = vst.msk [vmem:[%s5662_s15 + $0x5a0] sm:$0xff] %vm232_vm0, %v1249_v36 }
 0x19c   : > { %1739 = vbcast.lane.b32.xlu1 %v1737_v33, 256  ;;  %1732 = vbcast.lane.b32.xlu0 %v1730_v34, 256  ;;  %v1932_v33 = vrot.slane %v5117_v17, %v5597_v16  ;;  %v5134_v34 = vld [vmem:[%s5578_s11 + $0xb0] sm:$0xff] }
 0x19e   : > { %v1270_v40 = vpop.permute.xlu1 %1269  ;;  %v1263_v41 = vpop.permute.xlu0 %1262 }
 0x19f   : > { %5041 = vst.msk [vmem:[%s5662_s15 + $0x5d0] sm:$0xff] %vm232_vm0, %v1270_v40  ;;  %5040 = vst.msk [vmem:[%s5662_s15 + $0x5c0] sm:$0xff] %vm232_vm0, %v1263_v41  ;;  %v1986_v41 = vrot.slane %v5134_v34, %v5580_v4 }
 0x1a0   : > { %1753 = vbcast.lane.b32.xlu1 %v1751_v37, 256  ;;  %1746 = vbcast.lane.b32.xlu0 %v1744_v38, 256  ;;  %v1972_v37 = vrot.slane %v5134_v34, %v5582_v5  ;;  %v1965_v38 = vrot.slane %v5134_v34, %v5573_v3 }
 0x1a2   : > { %v1284_v44 = vpop.permute.xlu1 %1283  ;;  %v1277_v45 = vpop.permute.xlu0 %1276 }
 0x1a3   : > { %5043 = vst.msk [vmem:[%s5662_s15 + $0x5f0] sm:$0xff] %vm232_vm0, %v1284_v44  ;;  %5042 = vst.msk [vmem:[%s5662_s15 + $0x5e0] sm:$0xff] %vm232_vm0, %v1277_v45  ;;  %v2000_v45 = vrot.slane %v5134_v34, %v5589_v11 }
 0x1a4   : > { %1767 = vbcast.lane.b32.xlu1 %v1765_v42, 256  ;;  %1760 = vbcast.lane.b32.xlu0 %v1758_v43, 256  ;;  %v1979_v42 = vrot.slane %v5134_v34, %v5571_v2 }
 0x1a6   : > { %v1318_v48 = vpop.permute.xlu1 %1317  ;;  %v1311_v49 = vpop.permute.xlu0 %1310 }
 0x1a7   : > { %5047 = vst.msk [vmem:[%s5662_s15 + $0x110] sm:$0xff] %vm364_vm1, %v1318_v48  ;;  %5046 = vst.msk [vmem:[%s5662_s15 + $0x100] sm:$0xff] %vm364_vm1, %v1311_v49  ;;  %v2014_v49 = vrot.slane %v5134_v34, %v5595_v15 }
 0x1a8   : > { %1781 = vbcast.lane.b32.xlu1 %v1779_v46, 256  ;;  %1774 = vbcast.lane.b32.xlu0 %v1772_v47, 256  ;;  %v1993_v46 = vrot.slane %v5134_v34, %v5591_v12 }
 0x1aa   : > { %v1332_v52 = vpop.permute.xlu1 %1331  ;;  %v1325_v53 = vpop.permute.xlu0 %1324 }
 0x1ab   : > { %5049 = vst.msk [vmem:[%s5662_s15 + $0x130] sm:$0xff] %vm364_vm1, %v1332_v52  ;;  %5048 = vst.msk [vmem:[%s5662_s15 + $0x120] sm:$0xff] %vm364_vm1, %v1325_v53 }
 0x1ac   : > { %1795 = vbcast.lane.b32.xlu1 %v1793_v50, 256  ;;  %1788 = vbcast.lane.b32.xlu0 %v1786_v51, 256  ;;  %v2007_v50 = vrot.slane %v5134_v34, %v5597_v16  ;;  %v5135_v51 = vld [vmem:[%s5578_s11 + $0xd8] sm:$0xff] }
 0x1ae   : > { %v1346_v57 = vpop.permute.xlu1 %1345  ;;  %v1339_v58 = vpop.permute.xlu0 %1338 }
 0x1af   : > { %5051 = vst.msk [vmem:[%s5662_s15 + $0x150] sm:$0xff] %vm364_vm1, %v1346_v57  ;;  %5050 = vst.msk [vmem:[%s5662_s15 + $0x140] sm:$0xff] %vm364_vm1, %v1339_v58  ;;  %v2042_v58 = vrot.slane %v5135_v51, %v5580_v4 }
 0x1b0   : > { %1809 = vbcast.lane.b32.xlu1 %v1807_v54, 256  ;;  %1802 = vbcast.lane.b32.xlu0 %v1800_v55, 256  ;;  %v2028_v54 = vrot.slane %v5135_v51, %v5582_v5  ;;  %v2021_v55 = vrot.slane %v5135_v51, %v5573_v3 }
 0x1b2   : > { %v1360_v61 = vpop.permute.xlu1 %1359  ;;  %v1353_v62 = vpop.permute.xlu0 %1352 }
 0x1b3   : > { %5053 = vst.msk [vmem:[%s5662_s15 + $0x170] sm:$0xff] %vm364_vm1, %v1360_v61  ;;  %5052 = vst.msk [vmem:[%s5662_s15 + $0x160] sm:$0xff] %vm364_vm1, %v1353_v62  ;;  %v2056_v62 = vrot.slane %v5135_v51, %v5589_v11 }
 0x1b4   : > { %1843 = vbcast.lane.b32.xlu1 %v1841_v59, 256  ;;  %1836 = vbcast.lane.b32.xlu0 %v1834_v60, 256  ;;  %v2035_v59 = vrot.slane %v5135_v51, %v5571_v2 }
 0x1b6   : > { %v1374_v1 = vpop.permute.xlu1 %1373  ;;  %v1367_v6 = vpop.permute.xlu0 %1366 }
 0x1b7   : > { %5055 = vst.msk [vmem:[%s5662_s15 + $0x590] sm:$0xff] %vm364_vm1, %v1374_v1  ;;  %5054 = vst.msk [vmem:[%s5662_s15 + $0x580] sm:$0xff] %vm364_vm1, %v1367_v6  ;;  %v2070_v6 = vrot.slane %v5135_v51, %v5595_v15 }
 0x1b8   : > { %1857 = vbcast.lane.b32.xlu1 %v1855_v63, 256  ;;  %1850 = vbcast.lane.b32.xlu0 %v1848_v0, 256  ;;  %v2049_v63 = vrot.slane %v5135_v51, %v5591_v12 }
 0x1ba   : > { %v1388_v9 = vpop.permute.xlu1 %1387  ;;  %v1381_v10 = vpop.permute.xlu0 %1380 }
 0x1bb   : > { %5057 = vst.msk [vmem:[%s5662_s15 + $0x5b0] sm:$0xff] %vm364_vm1, %v1388_v9  ;;  %5056 = vst.msk [vmem:[%s5662_s15 + $0x5a0] sm:$0xff] %vm364_vm1, %v1381_v10 }
 0x1bc   : > { %1871 = vbcast.lane.b32.xlu1 %v1869_v7, 256  ;;  %1864 = vbcast.lane.b32.xlu0 %v1862_v8, 256  ;;  %v2063_v7 = vrot.slane %v5135_v51, %v5597_v16  ;;  %v5152_v8 = vld [vmem:[%s5578_s11 + $0x100] sm:$0xff] }
 0x1be   : > { %v1402_v18 = vpop.permute.xlu1 %1401  ;;  %v1395_v19 = vpop.permute.xlu0 %1394 }
 0x1bf   : > { %5059 = vst.msk [vmem:[%s5662_s15 + $0x5d0] sm:$0xff] %vm364_vm1, %v1402_v18  ;;  %5058 = vst.msk [vmem:[%s5662_s15 + $0x5c0] sm:$0xff] %vm364_vm1, %v1395_v19  ;;  %v2118_v19 = vrot.slane %v5152_v8, %v5580_v4 }
 0x1c0   : > { %1885 = vbcast.lane.b32.xlu1 %v1883_v13, 256  ;;  %1878 = vbcast.lane.b32.xlu0 %v1876_v14, 256  ;;  %v2104_v13 = vrot.slane %v5152_v8, %v5582_v5  ;;  %v2097_v14 = vrot.slane %v5152_v8, %v5573_v3 }
 0x1c2   : > { %v1416_v22 = vpop.permute.xlu1 %1415  ;;  %v1409_v23 = vpop.permute.xlu0 %1408 }
 0x1c3   : > { %5061 = vst.msk [vmem:[%s5662_s15 + $0x5f0] sm:$0xff] %vm364_vm1, %v1416_v22  ;;  %5060 = vst.msk [vmem:[%s5662_s15 + $0x5e0] sm:$0xff] %vm364_vm1, %v1409_v23  ;;  %v2132_v23 = vrot.slane %v5152_v8, %v5589_v11 }
 0x1c4   : > { %1899 = vbcast.lane.b32.xlu1 %v1897_v20, 256  ;;  %1892 = vbcast.lane.b32.xlu0 %v1890_v21, 256  ;;  %v2111_v20 = vrot.slane %v5152_v8, %v5571_v2 }
 0x1c6   : > { %v1449_v26 = vpop.permute.xlu1 %1448  ;;  %v1442_v27 = vpop.permute.xlu0 %1441 }
 0x1c7   : > { %5065 = vst.msk [vmem:[%s5662_s15 + $0x118] sm:$0xff] %vm232_vm0, %v1449_v26  ;;  %5064 = vst.msk [vmem:[%s5662_s15 + $0x108] sm:$0xff] %vm232_vm0, %v1442_v27  ;;  %v2146_v27 = vrot.slane %v5152_v8, %v5595_v15 }
 0x1c8   : > { %1913 = vbcast.lane.b32.xlu1 %v1911_v24, 256  ;;  %1906 = vbcast.lane.b32.xlu0 %v1904_v25, 256  ;;  %v2125_v24 = vrot.slane %v5152_v8, %v5591_v12 }
 0x1ca   : > { %v1463_v30 = vpop.permute.xlu1 %1462  ;;  %v1456_v31 = vpop.permute.xlu0 %1455 }
 0x1cb   : > { %5067 = vst.msk [vmem:[%s5662_s15 + $0x138] sm:$0xff] %vm232_vm0, %v1463_v30  ;;  %5066 = vst.msk [vmem:[%s5662_s15 + $0x128] sm:$0xff] %vm232_vm0, %v1456_v31 }
 0x1cc   : > { %1927 = vbcast.lane.b32.xlu1 %v1925_v28, 256  ;;  %1920 = vbcast.lane.b32.xlu0 %v1918_v29, 256  ;;  %v2139_v28 = vrot.slane %v5152_v8, %v5597_v16  ;;  %v5153_v29 = vld [vmem:[%s5578_s11 + $0x128] sm:$0xff] }
 0x1ce   : > { %v1477_v35 = vpop.permute.xlu1 %1476  ;;  %v1470_v36 = vpop.permute.xlu0 %1469 }
 0x1cf   : > { %5069 = vst.msk [vmem:[%s5662_s15 + $0x158] sm:$0xff] %vm232_vm0, %v1477_v35  ;;  %5068 = vst.msk [vmem:[%s5662_s15 + $0x148] sm:$0xff] %vm232_vm0, %v1470_v36  ;;  %v2174_v36 = vrot.slane %v5153_v29, %v5580_v4 }
 0x1d0   : > { %1941 = vbcast.lane.b32.xlu1 %v1939_v32, 256  ;;  %1934 = vbcast.lane.b32.xlu0 %v1932_v33, 256  ;;  %v2160_v32 = vrot.slane %v5153_v29, %v5582_v5  ;;  %v2153_v33 = vrot.slane %v5153_v29, %v5573_v3 }
 0x1d2   : > { %v1491_v39 = vpop.permute.xlu1 %1490  ;;  %v1484_v40 = vpop.permute.xlu0 %1483 }
 0x1d3   : > { %5071 = vst.msk [vmem:[%s5662_s15 + $0x178] sm:$0xff] %vm232_vm0, %v1491_v39  ;;  %5070 = vst.msk [vmem:[%s5662_s15 + $0x168] sm:$0xff] %vm232_vm0, %v1484_v40  ;;  %v2188_v40 = vrot.slane %v5153_v29, %v5589_v11 }
 0x1d4   : > { %1974 = vbcast.lane.b32.xlu1 %v1972_v37, 256  ;;  %1967 = vbcast.lane.b32.xlu0 %v1965_v38, 256  ;;  %v2167_v37 = vrot.slane %v5153_v29, %v5571_v2 }
 0x1d6   : > { %v1505_v43 = vpop.permute.xlu1 %1504  ;;  %v1498_v44 = vpop.permute.xlu0 %1497 }
 0x1d7   : > { %5073 = vst.msk [vmem:[%s5662_s15 + $0x598] sm:$0xff] %vm232_vm0, %v1505_v43  ;;  %5072 = vst.msk [vmem:[%s5662_s15 + $0x588] sm:$0xff] %vm232_vm0, %v1498_v44  ;;  %v2202_v44 = vrot.slane %v5153_v29, %v5595_v15 }
 0x1d8   : > { %1988 = vbcast.lane.b32.xlu1 %v1986_v41, 256  ;;  %1981 = vbcast.lane.b32.xlu0 %v1979_v42, 256  ;;  %v2181_v41 = vrot.slane %v5153_v29, %v5591_v12 }
 0x1da   : > { %v1519_v47 = vpop.permute.xlu1 %1518  ;;  %v1512_v48 = vpop.permute.xlu0 %1511 }
 0x1db   : > { %5075 = vst.msk [vmem:[%s5662_s15 + $0x5b8] sm:$0xff] %vm232_vm0, %v1519_v47  ;;  %5074 = vst.msk [vmem:[%s5662_s15 + $0x5a8] sm:$0xff] %vm232_vm0, %v1512_v48 }
 0x1dc   : > { %2002 = vbcast.lane.b32.xlu1 %v2000_v45, 256  ;;  %1995 = vbcast.lane.b32.xlu0 %v1993_v46, 256  ;;  %v2195_v45 = vrot.slane %v5153_v29, %v5597_v16  ;;  %v5170_v46 = vld [vmem:[%s5578_s11 + $0x150] sm:$0xff] }
 0x1de   : > { %v1533_v52 = vpop.permute.xlu1 %1532  ;;  %v1526_v53 = vpop.permute.xlu0 %1525 }
 0x1df   : > { %5077 = vst.msk [vmem:[%s5662_s15 + $0x5d8] sm:$0xff] %vm232_vm0, %v1533_v52  ;;  %5076 = vst.msk [vmem:[%s5662_s15 + $0x5c8] sm:$0xff] %vm232_vm0, %v1526_v53  ;;  %v2249_v53 = vrot.slane %v5170_v46, %v5580_v4 }
 0x1e0   : > { %2016 = vbcast.lane.b32.xlu1 %v2014_v49, 256  ;;  %2009 = vbcast.lane.b32.xlu0 %v2007_v50, 256  ;;  %v2235_v49 = vrot.slane %v5170_v46, %v5582_v5  ;;  %v2228_v50 = vrot.slane %v5170_v46, %v5573_v3 }
 0x1e2   : > { %v1547_v56 = vpop.permute.xlu1 %1546  ;;  %v1540_v57 = vpop.permute.xlu0 %1539 }
 0x1e3   : > { %5079 = vst.msk [vmem:[%s5662_s15 + $0x5f8] sm:$0xff] %vm232_vm0, %v1547_v56  ;;  %5078 = vst.msk [vmem:[%s5662_s15 + $0x5e8] sm:$0xff] %vm232_vm0, %v1540_v57  ;;  %v2263_v57 = vrot.slane %v5170_v46, %v5589_v11 }
 0x1e4   : > { %2030 = vbcast.lane.b32.xlu1 %v2028_v54, 256  ;;  %2023 = vbcast.lane.b32.xlu0 %v2021_v55, 256  ;;  %v2242_v54 = vrot.slane %v5170_v46, %v5571_v2 }
 0x1e6   : > { %v1581_v60 = vpop.permute.xlu1 %1580  ;;  %v1574_v61 = vpop.permute.xlu0 %1573 }
 0x1e7   : > { %5083 = vst.msk [vmem:[%s5662_s15 + $0x118] sm:$0xff] %vm364_vm1, %v1581_v60  ;;  %5082 = vst.msk [vmem:[%s5662_s15 + $0x108] sm:$0xff] %vm364_vm1, %v1574_v61  ;;  %v2277_v61 = vrot.slane %v5170_v46, %v5595_v15 }
 0x1e8   : > { %2044 = vbcast.lane.b32.xlu1 %v2042_v58, 256  ;;  %2037 = vbcast.lane.b32.xlu0 %v2035_v59, 256  ;;  %v2256_v58 = vrot.slane %v5170_v46, %v5591_v12 }
 0x1ea   : > { %v1595_v0 = vpop.permute.xlu1 %1594  ;;  %v1588_v1 = vpop.permute.xlu0 %1587 }
 0x1eb   : > { %5085 = vst.msk [vmem:[%s5662_s15 + $0x138] sm:$0xff] %vm364_vm1, %v1595_v0  ;;  %5084 = vst.msk [vmem:[%s5662_s15 + $0x128] sm:$0xff] %vm364_vm1, %v1588_v1 }
 0x1ec   : > { %2058 = vbcast.lane.b32.xlu1 %v2056_v62, 256  ;;  %2051 = vbcast.lane.b32.xlu0 %v2049_v63, 256  ;;  %v2270_v62 = vrot.slane %v5170_v46, %v5597_v16  ;;  %v5171_v63 = vld [vmem:[%s5578_s11 + $0x178] sm:$0xff] }
 0x1ee   : > { %v1609_v9 = vpop.permute.xlu1 %1608  ;;  %v1602_v10 = vpop.permute.xlu0 %1601 }
 0x1ef   : > { %5087 = vst.msk [vmem:[%s5662_s15 + $0x158] sm:$0xff] %vm364_vm1, %v1609_v9  ;;  %5086 = vst.msk [vmem:[%s5662_s15 + $0x148] sm:$0xff] %vm364_vm1, %v1602_v10  ;;  %v2305_v10 = vrot.slane %v5171_v63, %v5580_v4 }
 0x1f0   : > { %2072 = vbcast.lane.b32.xlu1 %v2070_v6, 256  ;;  %2065 = vbcast.lane.b32.xlu0 %v2063_v7, 256  ;;  %v2291_v6 = vrot.slane %v5171_v63, %v5582_v5  ;;  %v2284_v7 = vrot.slane %v5171_v63, %v5573_v3 }
 0x1f2   : > { %v1623_v17 = vpop.permute.xlu1 %1622  ;;  %v1616_v18 = vpop.permute.xlu0 %1615 }
 0x1f3   : > { %5089 = vst.msk [vmem:[%s5662_s15 + $0x178] sm:$0xff] %vm364_vm1, %v1623_v17  ;;  %5088 = vst.msk [vmem:[%s5662_s15 + $0x168] sm:$0xff] %vm364_vm1, %v1616_v18  ;;  %v2319_v18 = vrot.slane %v5171_v63, %v5589_v11 }
 0x1f4   : > { %2106 = vbcast.lane.b32.xlu1 %v2104_v13, 256  ;;  %2099 = vbcast.lane.b32.xlu0 %v2097_v14, 256  ;;  %v2298_v13 = vrot.slane %v5171_v63, %v5571_v2 }
 0x1f6   : > { %v1637_v21 = vpop.permute.xlu1 %1636  ;;  %v1630_v22 = vpop.permute.xlu0 %1629 }
 0x1f7   : > { %5091 = vst.msk [vmem:[%s5662_s15 + $0x598] sm:$0xff] %vm364_vm1, %v1637_v21  ;;  %5090 = vst.msk [vmem:[%s5662_s15 + $0x588] sm:$0xff] %vm364_vm1, %v1630_v22  ;;  %v2333_v22 = vrot.slane %v5171_v63, %v5595_v15 }
 0x1f8   : > { %2120 = vbcast.lane.b32.xlu1 %v2118_v19, 256  ;;  %2113 = vbcast.lane.b32.xlu0 %v2111_v20, 256  ;;  %v2312_v19 = vrot.slane %v5171_v63, %v5591_v12 }
 0x1fa   : > { %v1651_v25 = vpop.permute.xlu1 %1650  ;;  %v1644_v26 = vpop.permute.xlu0 %1643 }
 0x1fb   : > { %5093 = vst.msk [vmem:[%s5662_s15 + $0x5b8] sm:$0xff] %vm364_vm1, %v1651_v25  ;;  %5092 = vst.msk [vmem:[%s5662_s15 + $0x5a8] sm:$0xff] %vm364_vm1, %v1644_v26 }
 0x1fc   : > { %2134 = vbcast.lane.b32.xlu1 %v2132_v23, 256  ;;  %2127 = vbcast.lane.b32.xlu0 %v2125_v24, 256  ;;  %v2326_v23 = vrot.slane %v5171_v63, %v5597_v16  ;;  %v5188_v24 = vld [vmem:[%s5578_s11 + $0x1a0] sm:$0xff] }
 0x1fe   : > { %v1665_v30 = vpop.permute.xlu1 %1664  ;;  %v1658_v31 = vpop.permute.xlu0 %1657 }
 0x1ff   : > { %5095 = vst.msk [vmem:[%s5662_s15 + $0x5d8] sm:$0xff] %vm364_vm1, %v1665_v30  ;;  %5094 = vst.msk [vmem:[%s5662_s15 + $0x5c8] sm:$0xff] %vm364_vm1, %v1658_v31  ;;  %v2381_v31 = vrot.slane %v5188_v24, %v5580_v4 }
 0x200   : > { %2148 = vbcast.lane.b32.xlu1 %v2146_v27, 256  ;;  %2141 = vbcast.lane.b32.xlu0 %v2139_v28, 256  ;;  %v2367_v27 = vrot.slane %v5188_v24, %v5582_v5  ;;  %v2360_v28 = vrot.slane %v5188_v24, %v5573_v3 }
 0x202   : > { %v1679_v34 = vpop.permute.xlu1 %1678  ;;  %v1672_v35 = vpop.permute.xlu0 %1671 }
 0x203   : > { %5097 = vst.msk [vmem:[%s5662_s15 + $0x5f8] sm:$0xff] %vm364_vm1, %v1679_v34  ;;  %5096 = vst.msk [vmem:[%s5662_s15 + $0x5e8] sm:$0xff] %vm364_vm1, %v1672_v35  ;;  %v2395_v35 = vrot.slane %v5188_v24, %v5589_v11 }
 0x204   : > { %2162 = vbcast.lane.b32.xlu1 %v2160_v32, 256  ;;  %2155 = vbcast.lane.b32.xlu0 %v2153_v33, 256  ;;  %v2374_v32 = vrot.slane %v5188_v24, %v5571_v2 }
 0x206   : > { %v1712_v38 = vpop.permute.xlu1 %1711  ;;  %v1705_v39 = vpop.permute.xlu0 %1704 }
 0x207   : > { %5101 = vst.msk [vmem:[%s5662_s15 + $0x190] sm:$0xff] %vm232_vm0, %v1712_v38  ;;  %5100 = vst.msk [vmem:[%s5662_s15 + $0x180] sm:$0xff] %vm232_vm0, %v1705_v39  ;;  %v2409_v39 = vrot.slane %v5188_v24, %v5595_v15 }
 0x208   : > { %2176 = vbcast.lane.b32.xlu1 %v2174_v36, 256  ;;  %2169 = vbcast.lane.b32.xlu0 %v2167_v37, 256  ;;  %v2388_v36 = vrot.slane %v5188_v24, %v5591_v12 }
 0x20a   : > { %v1726_v42 = vpop.permute.xlu1 %1725  ;;  %v1719_v43 = vpop.permute.xlu0 %1718 }
 0x20b   : > { %5103 = vst.msk [vmem:[%s5662_s15 + $0x1b0] sm:$0xff] %vm232_vm0, %v1726_v42  ;;  %5102 = vst.msk [vmem:[%s5662_s15 + $0x1a0] sm:$0xff] %vm232_vm0, %v1719_v43 }
 0x20c   : > { %2190 = vbcast.lane.b32.xlu1 %v2188_v40, 256  ;;  %2183 = vbcast.lane.b32.xlu0 %v2181_v41, 256  ;;  %v2402_v40 = vrot.slane %v5188_v24, %v5597_v16  ;;  %v5189_v41 = vld [vmem:[%s5578_s11 + $0x1c8] sm:$0xff] }
 0x20e   : > { %v1740_v47 = vpop.permute.xlu1 %1739  ;;  %v1733_v48 = vpop.permute.xlu0 %1732 }
 0x20f   : > { %5105 = vst.msk [vmem:[%s5662_s15 + $0x1d0] sm:$0xff] %vm232_vm0, %v1740_v47  ;;  %5104 = vst.msk [vmem:[%s5662_s15 + $0x1c0] sm:$0xff] %vm232_vm0, %v1733_v48  ;;  %v2437_v48 = vrot.slane %v5189_v41, %v5580_v4 }
 0x210   : > { %2204 = vbcast.lane.b32.xlu1 %v2202_v44, 256  ;;  %2197 = vbcast.lane.b32.xlu0 %v2195_v45, 256  ;;  %v2423_v44 = vrot.slane %v5189_v41, %v5582_v5  ;;  %v2416_v45 = vrot.slane %v5189_v41, %v5573_v3 }
 0x212   : > { %v1754_v51 = vpop.permute.xlu1 %1753  ;;  %v1747_v52 = vpop.permute.xlu0 %1746 }
 0x213   : > { %5107 = vst.msk [vmem:[%s5662_s15 + $0x1f0] sm:$0xff] %vm232_vm0, %v1754_v51  ;;  %5106 = vst.msk [vmem:[%s5662_s15 + $0x1e0] sm:$0xff] %vm232_vm0, %v1747_v52  ;;  %v2451_v52 = vrot.slane %v5189_v41, %v5589_v11 }
 0x214   : > { %2237 = vbcast.lane.b32.xlu1 %v2235_v49, 256  ;;  %2230 = vbcast.lane.b32.xlu0 %v2228_v50, 256  ;;  %v2430_v49 = vrot.slane %v5189_v41, %v5571_v2 }
 0x216   : > { %v1768_v55 = vpop.permute.xlu1 %1767  ;;  %v1761_v56 = vpop.permute.xlu0 %1760 }
 0x217   : > { %5109 = vst.msk [vmem:[%s5662_s15 + $0x610] sm:$0xff] %vm232_vm0, %v1768_v55  ;;  %5108 = vst.msk [vmem:[%s5662_s15 + $0x600] sm:$0xff] %vm232_vm0, %v1761_v56  ;;  %v2465_v56 = vrot.slane %v5189_v41, %v5595_v15 }
 0x218   : > { %2251 = vbcast.lane.b32.xlu1 %v2249_v53, 256  ;;  %2244 = vbcast.lane.b32.xlu0 %v2242_v54, 256  ;;  %v2444_v53 = vrot.slane %v5189_v41, %v5591_v12 }
 0x21a   : > { %v1782_v59 = vpop.permute.xlu1 %1781  ;;  %v1775_v60 = vpop.permute.xlu0 %1774 }
 0x21b   : > { %5111 = vst.msk [vmem:[%s5662_s15 + $0x630] sm:$0xff] %vm232_vm0, %v1782_v59  ;;  %5110 = vst.msk [vmem:[%s5662_s15 + $0x620] sm:$0xff] %vm232_vm0, %v1775_v60 }
 0x21c   : > { %2265 = vbcast.lane.b32.xlu1 %v2263_v57, 256  ;;  %2258 = vbcast.lane.b32.xlu0 %v2256_v58, 256  ;;  %v2458_v57 = vrot.slane %v5189_v41, %v5597_v16  ;;  %v5206_v58 = vld [vmem:[%s5578_s11 + $0x1f0] sm:$0xff] }
 0x21e   : > { %v1796_v0 = vpop.permute.xlu1 %1795  ;;  %v1789_v1 = vpop.permute.xlu0 %1788 }
 0x21f   : > { %5113 = vst.msk [vmem:[%s5662_s15 + $0x650] sm:$0xff] %vm232_vm0, %v1796_v0  ;;  %5112 = vst.msk [vmem:[%s5662_s15 + $0x640] sm:$0xff] %vm232_vm0, %v1789_v1  ;;  %v2512_v1 = vrot.slane %v5206_v58, %v5580_v4 }
 0x220   : > { %2279 = vbcast.lane.b32.xlu1 %v2277_v61, 256  ;;  %2272 = vbcast.lane.b32.xlu0 %v2270_v62, 256  ;;  %v2498_v61 = vrot.slane %v5206_v58, %v5582_v5  ;;  %v2491_v62 = vrot.slane %v5206_v58, %v5573_v3 }
 0x222   : > { %v1810_v8 = vpop.permute.xlu1 %1809  ;;  %v1803_v9 = vpop.permute.xlu0 %1802 }
 0x223   : > { %5115 = vst.msk [vmem:[%s5662_s15 + $0x670] sm:$0xff] %vm232_vm0, %v1810_v8  ;;  %5114 = vst.msk [vmem:[%s5662_s15 + $0x660] sm:$0xff] %vm232_vm0, %v1803_v9  ;;  %v2526_v9 = vrot.slane %v5206_v58, %v5589_v11 }
 0x224   : > { %2293 = vbcast.lane.b32.xlu1 %v2291_v6, 256  ;;  %2286 = vbcast.lane.b32.xlu0 %v2284_v7, 256  ;;  %v2505_v6 = vrot.slane %v5206_v58, %v5571_v2 }
 0x226   : > { %v1844_v14 = vpop.permute.xlu1 %1843  ;;  %v1837_v17 = vpop.permute.xlu0 %1836 }
 0x227   : > { %5119 = vst.msk [vmem:[%s5662_s15 + $0x190] sm:$0xff] %vm364_vm1, %v1844_v14  ;;  %5118 = vst.msk [vmem:[%s5662_s15 + $0x180] sm:$0xff] %vm364_vm1, %v1837_v17  ;;  %v2540_v17 = vrot.slane %v5206_v58, %v5595_v15 }
 0x228   : > { %2307 = vbcast.lane.b32.xlu1 %v2305_v10, 256  ;;  %2300 = vbcast.lane.b32.xlu0 %v2298_v13, 256  ;;  %v2519_v10 = vrot.slane %v5206_v58, %v5591_v12 }
 0x22a   : > { %v1858_v20 = vpop.permute.xlu1 %1857  ;;  %v1851_v21 = vpop.permute.xlu0 %1850 }
 0x22b   : > { %5121 = vst.msk [vmem:[%s5662_s15 + $0x1b0] sm:$0xff] %vm364_vm1, %v1858_v20  ;;  %5120 = vst.msk [vmem:[%s5662_s15 + $0x1a0] sm:$0xff] %vm364_vm1, %v1851_v21 }
 0x22c   : > { %2321 = vbcast.lane.b32.xlu1 %v2319_v18, 256  ;;  %2314 = vbcast.lane.b32.xlu0 %v2312_v19, 256  ;;  %v2533_v18 = vrot.slane %v5206_v58, %v5597_v16  ;;  %v5207_v19 = vld [vmem:[%s5578_s11 + $0x218] sm:$0xff] }
 0x22e   : > { %v1872_v25 = vpop.permute.xlu1 %1871  ;;  %v1865_v26 = vpop.permute.xlu0 %1864 }
 0x22f   : > { %5123 = vst.msk [vmem:[%s5662_s15 + $0x1d0] sm:$0xff] %vm364_vm1, %v1872_v25  ;;  %5122 = vst.msk [vmem:[%s5662_s15 + $0x1c0] sm:$0xff] %vm364_vm1, %v1865_v26  ;;  %v2568_v26 = vrot.slane %v5207_v19, %v5580_v4 }
 0x230   : > { %2335 = vbcast.lane.b32.xlu1 %v2333_v22, 256  ;;  %2328 = vbcast.lane.b32.xlu0 %v2326_v23, 256  ;;  %v2554_v22 = vrot.slane %v5207_v19, %v5582_v5  ;;  %v2547_v23 = vrot.slane %v5207_v19, %v5573_v3 }
 0x232   : > { %v1886_v29 = vpop.permute.xlu1 %1885  ;;  %v1879_v30 = vpop.permute.xlu0 %1878 }
 0x233   : > { %5125 = vst.msk [vmem:[%s5662_s15 + $0x1f0] sm:$0xff] %vm364_vm1, %v1886_v29  ;;  %5124 = vst.msk [vmem:[%s5662_s15 + $0x1e0] sm:$0xff] %vm364_vm1, %v1879_v30  ;;  %v2582_v30 = vrot.slane %v5207_v19, %v5589_v11 }
 0x234   : > { %2369 = vbcast.lane.b32.xlu1 %v2367_v27, 256  ;;  %2362 = vbcast.lane.b32.xlu0 %v2360_v28, 256  ;;  %v2561_v27 = vrot.slane %v5207_v19, %v5571_v2 }
 0x236   : > { %v1900_v33 = vpop.permute.xlu1 %1899  ;;  %v1893_v34 = vpop.permute.xlu0 %1892 }
 0x237   : > { %5127 = vst.msk [vmem:[%s5662_s15 + $0x610] sm:$0xff] %vm364_vm1, %v1900_v33  ;;  %5126 = vst.msk [vmem:[%s5662_s15 + $0x600] sm:$0xff] %vm364_vm1, %v1893_v34  ;;  %v2596_v34 = vrot.slane %v5207_v19, %v5595_v15 }
 0x238   : > { %2383 = vbcast.lane.b32.xlu1 %v2381_v31, 256  ;;  %2376 = vbcast.lane.b32.xlu0 %v2374_v32, 256  ;;  %v2575_v31 = vrot.slane %v5207_v19, %v5591_v12 }
 0x23a   : > { %v1914_v37 = vpop.permute.xlu1 %1913  ;;  %v1907_v38 = vpop.permute.xlu0 %1906 }
 0x23b   : > { %5129 = vst.msk [vmem:[%s5662_s15 + $0x630] sm:$0xff] %vm364_vm1, %v1914_v37  ;;  %5128 = vst.msk [vmem:[%s5662_s15 + $0x620] sm:$0xff] %vm364_vm1, %v1907_v38 }
 0x23c   : > { %2397 = vbcast.lane.b32.xlu1 %v2395_v35, 256  ;;  %2390 = vbcast.lane.b32.xlu0 %v2388_v36, 256  ;;  %v2589_v35 = vrot.slane %v5207_v19, %v5597_v16  ;;  %v5224_v36 = vld [vmem:[%s5578_s11 + $0x240] sm:$0xff] }
 0x23e   : > { %v1928_v42 = vpop.permute.xlu1 %1927  ;;  %v1921_v43 = vpop.permute.xlu0 %1920 }
 0x23f   : > { %5131 = vst.msk [vmem:[%s5662_s15 + $0x650] sm:$0xff] %vm364_vm1, %v1928_v42  ;;  %5130 = vst.msk [vmem:[%s5662_s15 + $0x640] sm:$0xff] %vm364_vm1, %v1921_v43  ;;  %v2644_v43 = vrot.slane %v5224_v36, %v5580_v4 }
 0x240   : > { %2411 = vbcast.lane.b32.xlu1 %v2409_v39, 256  ;;  %2404 = vbcast.lane.b32.xlu0 %v2402_v40, 256  ;;  %v2630_v39 = vrot.slane %v5224_v36, %v5582_v5  ;;  %v2623_v40 = vrot.slane %v5224_v36, %v5573_v3 }
 0x242   : > { %v1942_v46 = vpop.permute.xlu1 %1941  ;;  %v1935_v47 = vpop.permute.xlu0 %1934 }
 0x243   : > { %5133 = vst.msk [vmem:[%s5662_s15 + $0x670] sm:$0xff] %vm364_vm1, %v1942_v46  ;;  %5132 = vst.msk [vmem:[%s5662_s15 + $0x660] sm:$0xff] %vm364_vm1, %v1935_v47  ;;  %v2658_v47 = vrot.slane %v5224_v36, %v5589_v11 }
 0x244   : > { %2425 = vbcast.lane.b32.xlu1 %v2423_v44, 256  ;;  %2418 = vbcast.lane.b32.xlu0 %v2416_v45, 256  ;;  %v2637_v44 = vrot.slane %v5224_v36, %v5571_v2 }
 0x246   : > { %v1975_v50 = vpop.permute.xlu1 %1974  ;;  %v1968_v51 = vpop.permute.xlu0 %1967 }
 0x247   : > { %5137 = vst.msk [vmem:[%s5662_s15 + $0x198] sm:$0xff] %vm232_vm0, %v1975_v50  ;;  %5136 = vst.msk [vmem:[%s5662_s15 + $0x188] sm:$0xff] %vm232_vm0, %v1968_v51  ;;  %v2672_v51 = vrot.slane %v5224_v36, %v5595_v15 }
 0x248   : > { %2439 = vbcast.lane.b32.xlu1 %v2437_v48, 256  ;;  %2432 = vbcast.lane.b32.xlu0 %v2430_v49, 256  ;;  %v2651_v48 = vrot.slane %v5224_v36, %v5591_v12 }
 0x24a   : > { %v1989_v54 = vpop.permute.xlu1 %1988  ;;  %v1982_v55 = vpop.permute.xlu0 %1981 }
 0x24b   : > { %5139 = vst.msk [vmem:[%s5662_s15 + $0x1b8] sm:$0xff] %vm232_vm0, %v1989_v54  ;;  %5138 = vst.msk [vmem:[%s5662_s15 + $0x1a8] sm:$0xff] %vm232_vm0, %v1982_v55 }
 0x24c   : > { %2453 = vbcast.lane.b32.xlu1 %v2451_v52, 256  ;;  %2446 = vbcast.lane.b32.xlu0 %v2444_v53, 256  ;;  %v2665_v52 = vrot.slane %v5224_v36, %v5597_v16  ;;  %v5225_v53 = vld [vmem:[%s5578_s11 + $0x268] sm:$0xff] }
 0x24e   : > { %v2003_v59 = vpop.permute.xlu1 %2002  ;;  %v1996_v60 = vpop.permute.xlu0 %1995 }
 0x24f   : > { %5141 = vst.msk [vmem:[%s5662_s15 + $0x1d8] sm:$0xff] %vm232_vm0, %v2003_v59  ;;  %5140 = vst.msk [vmem:[%s5662_s15 + $0x1c8] sm:$0xff] %vm232_vm0, %v1996_v60  ;;  %v2700_v60 = vrot.slane %v5225_v53, %v5580_v4 }
 0x250   : > { %2467 = vbcast.lane.b32.xlu1 %v2465_v56, 256  ;;  %2460 = vbcast.lane.b32.xlu0 %v2458_v57, 256  ;;  %v2686_v56 = vrot.slane %v5225_v53, %v5582_v5  ;;  %v2679_v57 = vrot.slane %v5225_v53, %v5573_v3 }
 0x252   : > { %v2017_v63 = vpop.permute.xlu1 %2016  ;;  %v2010_v0 = vpop.permute.xlu0 %2009 }
 0x253   : > { %5143 = vst.msk [vmem:[%s5662_s15 + $0x1f8] sm:$0xff] %vm232_vm0, %v2017_v63  ;;  %5142 = vst.msk [vmem:[%s5662_s15 + $0x1e8] sm:$0xff] %vm232_vm0, %v2010_v0  ;;  %v2714_v0 = vrot.slane %v5225_v53, %v5589_v11 }
 0x254   : > { %2500 = vbcast.lane.b32.xlu1 %v2498_v61, 256  ;;  %2493 = vbcast.lane.b32.xlu0 %v2491_v62, 256  ;;  %v2693_v61 = vrot.slane %v5225_v53, %v5571_v2 }
 0x256   : > { %v2031_v7 = vpop.permute.xlu1 %2030  ;;  %v2024_v8 = vpop.permute.xlu0 %2023 }
 0x257   : > { %5145 = vst.msk [vmem:[%s5662_s15 + $0x618] sm:$0xff] %vm232_vm0, %v2031_v7  ;;  %5144 = vst.msk [vmem:[%s5662_s15 + $0x608] sm:$0xff] %vm232_vm0, %v2024_v8  ;;  %v2728_v8 = vrot.slane %v5225_v53, %v5595_v15 }
 0x258   : > { %2514 = vbcast.lane.b32.xlu1 %v2512_v1, 256  ;;  %2507 = vbcast.lane.b32.xlu0 %v2505_v6, 256  ;;  %v2707_v1 = vrot.slane %v5225_v53, %v5591_v12 }
 0x25a   : > { %v2045_v13 = vpop.permute.xlu1 %2044  ;;  %v2038_v14 = vpop.permute.xlu0 %2037 }
 0x25b   : > { %5147 = vst.msk [vmem:[%s5662_s15 + $0x638] sm:$0xff] %vm232_vm0, %v2045_v13  ;;  %5146 = vst.msk [vmem:[%s5662_s15 + $0x628] sm:$0xff] %vm232_vm0, %v2038_v14 }
 0x25c   : > { %2528 = vbcast.lane.b32.xlu1 %v2526_v9, 256  ;;  %2521 = vbcast.lane.b32.xlu0 %v2519_v10, 256  ;;  %v2721_v9 = vrot.slane %v5225_v53, %v5597_v16  ;;  %v5242_v10 = vld [vmem:[%s5578_s11 + $0x18] sm:$0xff] }
 0x25e   : > { %v2059_v20 = vpop.permute.xlu1 %2058  ;;  %v2052_v21 = vpop.permute.xlu0 %2051 }
 0x25f   : > { %5149 = vst.msk [vmem:[%s5662_s15 + $0x658] sm:$0xff] %vm232_vm0, %v2059_v20  ;;  %5148 = vst.msk [vmem:[%s5662_s15 + $0x648] sm:$0xff] %vm232_vm0, %v2052_v21  ;;  %v2775_v21 = vrot.slane %v5242_v10, %v5580_v4 }
 0x260   : > { %2542 = vbcast.lane.b32.xlu1 %v2540_v17, 256  ;;  %2535 = vbcast.lane.b32.xlu0 %v2533_v18, 256  ;;  %v2761_v17 = vrot.slane %v5242_v10, %v5582_v5  ;;  %v2754_v18 = vrot.slane %v5242_v10, %v5573_v3 }
 0x262   : > { %v2073_v24 = vpop.permute.xlu1 %2072  ;;  %v2066_v25 = vpop.permute.xlu0 %2065 }
 0x263   : > { %5151 = vst.msk [vmem:[%s5662_s15 + $0x678] sm:$0xff] %vm232_vm0, %v2073_v24  ;;  %5150 = vst.msk [vmem:[%s5662_s15 + $0x668] sm:$0xff] %vm232_vm0, %v2066_v25  ;;  %v2789_v25 = vrot.slane %v5242_v10, %v5589_v11 }
 0x264   : > { %2556 = vbcast.lane.b32.xlu1 %v2554_v22, 256  ;;  %2549 = vbcast.lane.b32.xlu0 %v2547_v23, 256  ;;  %v2768_v22 = vrot.slane %v5242_v10, %v5571_v2 }
 0x266   : > { %v2107_v28 = vpop.permute.xlu1 %2106  ;;  %v2100_v29 = vpop.permute.xlu0 %2099 }
 0x267   : > { %5155 = vst.msk [vmem:[%s5662_s15 + $0x198] sm:$0xff] %vm364_vm1, %v2107_v28  ;;  %5154 = vst.msk [vmem:[%s5662_s15 + $0x188] sm:$0xff] %vm364_vm1, %v2100_v29  ;;  %v2803_v29 = vrot.slane %v5242_v10, %v5595_v15 }
 0x268   : > { %2570 = vbcast.lane.b32.xlu1 %v2568_v26, 256  ;;  %2563 = vbcast.lane.b32.xlu0 %v2561_v27, 256  ;;  %v2782_v26 = vrot.slane %v5242_v10, %v5591_v12 }
 0x26a   : > { %v2121_v32 = vpop.permute.xlu1 %2120  ;;  %v2114_v33 = vpop.permute.xlu0 %2113 }
 0x26b   : > { %5157 = vst.msk [vmem:[%s5662_s15 + $0x1b8] sm:$0xff] %vm364_vm1, %v2121_v32  ;;  %5156 = vst.msk [vmem:[%s5662_s15 + $0x1a8] sm:$0xff] %vm364_vm1, %v2114_v33 }
 0x26c   : > { %2584 = vbcast.lane.b32.xlu1 %v2582_v30, 256  ;;  %2577 = vbcast.lane.b32.xlu0 %v2575_v31, 256  ;;  %v2796_v30 = vrot.slane %v5242_v10, %v5597_v16  ;;  %v5243_v31 = vld [vmem:[%s5578_s11 + $0x40] sm:$0xff] }
 0x26e   : > { %v2135_v37 = vpop.permute.xlu1 %2134  ;;  %v2128_v38 = vpop.permute.xlu0 %2127 }
 0x26f   : > { %5159 = vst.msk [vmem:[%s5662_s15 + $0x1d8] sm:$0xff] %vm364_vm1, %v2135_v37  ;;  %5158 = vst.msk [vmem:[%s5662_s15 + $0x1c8] sm:$0xff] %vm364_vm1, %v2128_v38  ;;  %v2831_v38 = vrot.slane %v5243_v31, %v5580_v4 }
 0x270   : > { %2598 = vbcast.lane.b32.xlu1 %v2596_v34, 256  ;;  %2591 = vbcast.lane.b32.xlu0 %v2589_v35, 256  ;;  %v2817_v34 = vrot.slane %v5243_v31, %v5582_v5  ;;  %v2810_v35 = vrot.slane %v5243_v31, %v5573_v3 }
 0x272   : > { %v2149_v41 = vpop.permute.xlu1 %2148  ;;  %v2142_v42 = vpop.permute.xlu0 %2141 }
 0x273   : > { %5161 = vst.msk [vmem:[%s5662_s15 + $0x1f8] sm:$0xff] %vm364_vm1, %v2149_v41  ;;  %5160 = vst.msk [vmem:[%s5662_s15 + $0x1e8] sm:$0xff] %vm364_vm1, %v2142_v42  ;;  %v2845_v42 = vrot.slane %v5243_v31, %v5589_v11 }
 0x274   : > { %2632 = vbcast.lane.b32.xlu1 %v2630_v39, 256  ;;  %2625 = vbcast.lane.b32.xlu0 %v2623_v40, 256  ;;  %v2824_v39 = vrot.slane %v5243_v31, %v5571_v2 }
 0x276   : > { %v2163_v45 = vpop.permute.xlu1 %2162  ;;  %v2156_v46 = vpop.permute.xlu0 %2155 }
 0x277   : > { %5163 = vst.msk [vmem:[%s5662_s15 + $0x618] sm:$0xff] %vm364_vm1, %v2163_v45  ;;  %5162 = vst.msk [vmem:[%s5662_s15 + $0x608] sm:$0xff] %vm364_vm1, %v2156_v46  ;;  %v2859_v46 = vrot.slane %v5243_v31, %v5595_v15 }
 0x278   : > { %2646 = vbcast.lane.b32.xlu1 %v2644_v43, 256  ;;  %2639 = vbcast.lane.b32.xlu0 %v2637_v44, 256  ;;  %v2838_v43 = vrot.slane %v5243_v31, %v5591_v12 }
 0x27a   : > { %v2177_v49 = vpop.permute.xlu1 %2176  ;;  %v2170_v50 = vpop.permute.xlu0 %2169 }
 0x27b   : > { %5165 = vst.msk [vmem:[%s5662_s15 + $0x638] sm:$0xff] %vm364_vm1, %v2177_v49  ;;  %5164 = vst.msk [vmem:[%s5662_s15 + $0x628] sm:$0xff] %vm364_vm1, %v2170_v50 }
 0x27c   : > { %2660 = vbcast.lane.b32.xlu1 %v2658_v47, 256  ;;  %2653 = vbcast.lane.b32.xlu0 %v2651_v48, 256  ;;  %v2852_v47 = vrot.slane %v5243_v31, %v5597_v16  ;;  %v5260_v48 = vld [vmem:[%s5578_s11 + $0x68] sm:$0xff] }
 0x27e   : > { %v2191_v54 = vpop.permute.xlu1 %2190  ;;  %v2184_v55 = vpop.permute.xlu0 %2183 }
 0x27f   : > { %5167 = vst.msk [vmem:[%s5662_s15 + $0x658] sm:$0xff] %vm364_vm1, %v2191_v54  ;;  %5166 = vst.msk [vmem:[%s5662_s15 + $0x648] sm:$0xff] %vm364_vm1, %v2184_v55  ;;  %v2907_v55 = vrot.slane %v5260_v48, %v5580_v4 }
 0x280   : > { %2674 = vbcast.lane.b32.xlu1 %v2672_v51, 256  ;;  %2667 = vbcast.lane.b32.xlu0 %v2665_v52, 256  ;;  %v2893_v51 = vrot.slane %v5260_v48, %v5582_v5  ;;  %v2886_v52 = vrot.slane %v5260_v48, %v5573_v3 }
 0x282   : > { %v2205_v58 = vpop.permute.xlu1 %2204  ;;  %v2198_v59 = vpop.permute.xlu0 %2197 }
 0x283   : > { %5169 = vst.msk [vmem:[%s5662_s15 + $0x678] sm:$0xff] %vm364_vm1, %v2205_v58  ;;  %5168 = vst.msk [vmem:[%s5662_s15 + $0x668] sm:$0xff] %vm364_vm1, %v2198_v59  ;;  %v2921_v59 = vrot.slane %v5260_v48, %v5589_v11 }
 0x284   : > { %2688 = vbcast.lane.b32.xlu1 %v2686_v56, 256  ;;  %2681 = vbcast.lane.b32.xlu0 %v2679_v57, 256  ;;  %v2900_v56 = vrot.slane %v5260_v48, %v5571_v2 }
 0x286   : > { %v2238_v62 = vpop.permute.xlu1 %2237  ;;  %v2231_v63 = vpop.permute.xlu0 %2230 }
 0x287   : > { %5173 = vst.msk [vmem:[%s5662_s15 + $0x210] sm:$0xff] %vm232_vm0, %v2238_v62  ;;  %5172 = vst.msk [vmem:[%s5662_s15 + $0x200] sm:$0xff] %vm232_vm0, %v2231_v63  ;;  %v2935_v63 = vrot.slane %v5260_v48, %v5595_v15 }
 0x288   : > { %2702 = vbcast.lane.b32.xlu1 %v2700_v60, 256  ;;  %2695 = vbcast.lane.b32.xlu0 %v2693_v61, 256  ;;  %v2914_v60 = vrot.slane %v5260_v48, %v5591_v12 }
 0x28a   : > { %v2252_v6 = vpop.permute.xlu1 %2251  ;;  %v2245_v7 = vpop.permute.xlu0 %2244 }
 0x28b   : > { %5175 = vst.msk [vmem:[%s5662_s15 + $0x230] sm:$0xff] %vm232_vm0, %v2252_v6  ;;  %5174 = vst.msk [vmem:[%s5662_s15 + $0x220] sm:$0xff] %vm232_vm0, %v2245_v7 }
 0x28c   : > { %2716 = vbcast.lane.b32.xlu1 %v2714_v0, 256  ;;  %2709 = vbcast.lane.b32.xlu0 %v2707_v1, 256  ;;  %v2928_v0 = vrot.slane %v5260_v48, %v5597_v16  ;;  %v5261_v1 = vld [vmem:[%s5578_s11 + $0x90] sm:$0xff] }
 0x28e   : > { %v2266_v13 = vpop.permute.xlu1 %2265  ;;  %v2259_v14 = vpop.permute.xlu0 %2258 }
 0x28f   : > { %5177 = vst.msk [vmem:[%s5662_s15 + $0x250] sm:$0xff] %vm232_vm0, %v2266_v13  ;;  %5176 = vst.msk [vmem:[%s5662_s15 + $0x240] sm:$0xff] %vm232_vm0, %v2259_v14  ;;  %v2963_v14 = vrot.slane %v5261_v1, %v5580_v4 }
 0x290   : > { %2730 = vbcast.lane.b32.xlu1 %v2728_v8, 256  ;;  %2723 = vbcast.lane.b32.xlu0 %v2721_v9, 256  ;;  %v2949_v8 = vrot.slane %v5261_v1, %v5582_v5  ;;  %v2942_v9 = vrot.slane %v5261_v1, %v5573_v3 }
 0x292   : > { %v2280_v19 = vpop.permute.xlu1 %2279  ;;  %v2273_v20 = vpop.permute.xlu0 %2272 }
 0x293   : > { %5179 = vst.msk [vmem:[%s5662_s15 + $0x270] sm:$0xff] %vm232_vm0, %v2280_v19  ;;  %5178 = vst.msk [vmem:[%s5662_s15 + $0x260] sm:$0xff] %vm232_vm0, %v2273_v20  ;;  %v2977_v20 = vrot.slane %v5261_v1, %v5589_v11 }
 0x294   : > { %2763 = vbcast.lane.b32.xlu1 %v2761_v17, 256  ;;  %2756 = vbcast.lane.b32.xlu0 %v2754_v18, 256  ;;  %v2956_v17 = vrot.slane %v5261_v1, %v5571_v2 }
 0x296   : > { %v2294_v23 = vpop.permute.xlu1 %2293  ;;  %v2287_v24 = vpop.permute.xlu0 %2286 }
 0x297   : > { %5181 = vst.msk [vmem:[%s5662_s15 + $0x690] sm:$0xff] %vm232_vm0, %v2294_v23  ;;  %5180 = vst.msk [vmem:[%s5662_s15 + $0x680] sm:$0xff] %vm232_vm0, %v2287_v24  ;;  %v2991_v24 = vrot.slane %v5261_v1, %v5595_v15 }
 0x298   : > { %2777 = vbcast.lane.b32.xlu1 %v2775_v21, 256  ;;  %2770 = vbcast.lane.b32.xlu0 %v2768_v22, 256  ;;  %v2970_v21 = vrot.slane %v5261_v1, %v5591_v12 }
 0x29a   : > { %v2308_v27 = vpop.permute.xlu1 %2307  ;;  %v2301_v28 = vpop.permute.xlu0 %2300 }
 0x29b   : > { %5183 = vst.msk [vmem:[%s5662_s15 + $0x6b0] sm:$0xff] %vm232_vm0, %v2308_v27  ;;  %5182 = vst.msk [vmem:[%s5662_s15 + $0x6a0] sm:$0xff] %vm232_vm0, %v2301_v28 }
 0x29c   : > { %2791 = vbcast.lane.b32.xlu1 %v2789_v25, 256  ;;  %2784 = vbcast.lane.b32.xlu0 %v2782_v26, 256  ;;  %v2984_v25 = vrot.slane %v5261_v1, %v5597_v16  ;;  %v5278_v26 = vld [vmem:[%s5578_s11 + $0xb8] sm:$0xff] }
 0x29e   : > { %v2322_v32 = vpop.permute.xlu1 %2321  ;;  %v2315_v33 = vpop.permute.xlu0 %2314 }
 0x29f   : > { %5185 = vst.msk [vmem:[%s5662_s15 + $0x6d0] sm:$0xff] %vm232_vm0, %v2322_v32  ;;  %5184 = vst.msk [vmem:[%s5662_s15 + $0x6c0] sm:$0xff] %vm232_vm0, %v2315_v33  ;;  %v3038_v33 = vrot.slane %v5278_v26, %v5580_v4 }
 0x2a0   : > { %2805 = vbcast.lane.b32.xlu1 %v2803_v29, 256  ;;  %2798 = vbcast.lane.b32.xlu0 %v2796_v30, 256  ;;  %v3024_v29 = vrot.slane %v5278_v26, %v5582_v5  ;;  %v3017_v30 = vrot.slane %v5278_v26, %v5573_v3 }
 0x2a2   : > { %v2336_v36 = vpop.permute.xlu1 %2335  ;;  %v2329_v37 = vpop.permute.xlu0 %2328 }
 0x2a3   : > { %5187 = vst.msk [vmem:[%s5662_s15 + $0x6f0] sm:$0xff] %vm232_vm0, %v2336_v36  ;;  %5186 = vst.msk [vmem:[%s5662_s15 + $0x6e0] sm:$0xff] %vm232_vm0, %v2329_v37  ;;  %v3052_v37 = vrot.slane %v5278_v26, %v5589_v11 }
 0x2a4   : > { %2819 = vbcast.lane.b32.xlu1 %v2817_v34, 256  ;;  %2812 = vbcast.lane.b32.xlu0 %v2810_v35, 256  ;;  %v3031_v34 = vrot.slane %v5278_v26, %v5571_v2 }
 0x2a6   : > { %v2370_v40 = vpop.permute.xlu1 %2369  ;;  %v2363_v41 = vpop.permute.xlu0 %2362 }
 0x2a7   : > { %5191 = vst.msk [vmem:[%s5662_s15 + $0x210] sm:$0xff] %vm364_vm1, %v2370_v40  ;;  %5190 = vst.msk [vmem:[%s5662_s15 + $0x200] sm:$0xff] %vm364_vm1, %v2363_v41  ;;  %v3066_v41 = vrot.slane %v5278_v26, %v5595_v15 }
 0x2a8   : > { %2833 = vbcast.lane.b32.xlu1 %v2831_v38, 256  ;;  %2826 = vbcast.lane.b32.xlu0 %v2824_v39, 256  ;;  %v3045_v38 = vrot.slane %v5278_v26, %v5591_v12 }
 0x2aa   : > { %v2384_v44 = vpop.permute.xlu1 %2383  ;;  %v2377_v45 = vpop.permute.xlu0 %2376 }
 0x2ab   : > { %5193 = vst.msk [vmem:[%s5662_s15 + $0x230] sm:$0xff] %vm364_vm1, %v2384_v44  ;;  %5192 = vst.msk [vmem:[%s5662_s15 + $0x220] sm:$0xff] %vm364_vm1, %v2377_v45 }
 0x2ac   : > { %2847 = vbcast.lane.b32.xlu1 %v2845_v42, 256  ;;  %2840 = vbcast.lane.b32.xlu0 %v2838_v43, 256  ;;  %v3059_v42 = vrot.slane %v5278_v26, %v5597_v16  ;;  %v5279_v43 = vld [vmem:[%s5578_s11 + $0xe0] sm:$0xff] }
 0x2ae   : > { %v2398_v49 = vpop.permute.xlu1 %2397  ;;  %v2391_v50 = vpop.permute.xlu0 %2390 }
 0x2af   : > { %5195 = vst.msk [vmem:[%s5662_s15 + $0x250] sm:$0xff] %vm364_vm1, %v2398_v49  ;;  %5194 = vst.msk [vmem:[%s5662_s15 + $0x240] sm:$0xff] %vm364_vm1, %v2391_v50  ;;  %v3094_v50 = vrot.slane %v5279_v43, %v5580_v4 }
 0x2b0   : > { %2861 = vbcast.lane.b32.xlu1 %v2859_v46, 256  ;;  %2854 = vbcast.lane.b32.xlu0 %v2852_v47, 256  ;;  %v3080_v46 = vrot.slane %v5279_v43, %v5582_v5  ;;  %v3073_v47 = vrot.slane %v5279_v43, %v5573_v3 }
 0x2b2   : > { %v2412_v53 = vpop.permute.xlu1 %2411  ;;  %v2405_v54 = vpop.permute.xlu0 %2404 }
 0x2b3   : > { %5197 = vst.msk [vmem:[%s5662_s15 + $0x270] sm:$0xff] %vm364_vm1, %v2412_v53  ;;  %5196 = vst.msk [vmem:[%s5662_s15 + $0x260] sm:$0xff] %vm364_vm1, %v2405_v54  ;;  %v3108_v54 = vrot.slane %v5279_v43, %v5589_v11 }
 0x2b4   : > { %2895 = vbcast.lane.b32.xlu1 %v2893_v51, 256  ;;  %2888 = vbcast.lane.b32.xlu0 %v2886_v52, 256  ;;  %v3087_v51 = vrot.slane %v5279_v43, %v5571_v2 }
 0x2b6   : > { %v2426_v57 = vpop.permute.xlu1 %2425  ;;  %v2419_v58 = vpop.permute.xlu0 %2418 }
 0x2b7   : > { %5199 = vst.msk [vmem:[%s5662_s15 + $0x690] sm:$0xff] %vm364_vm1, %v2426_v57  ;;  %5198 = vst.msk [vmem:[%s5662_s15 + $0x680] sm:$0xff] %vm364_vm1, %v2419_v58  ;;  %v3122_v58 = vrot.slane %v5279_v43, %v5595_v15 }
 0x2b8   : > { %2909 = vbcast.lane.b32.xlu1 %v2907_v55, 256  ;;  %2902 = vbcast.lane.b32.xlu0 %v2900_v56, 256  ;;  %v3101_v55 = vrot.slane %v5279_v43, %v5591_v12 }
 0x2ba   : > { %v2440_v61 = vpop.permute.xlu1 %2439  ;;  %v2433_v62 = vpop.permute.xlu0 %2432 }
 0x2bb   : > { %5201 = vst.msk [vmem:[%s5662_s15 + $0x6b0] sm:$0xff] %vm364_vm1, %v2440_v61  ;;  %5200 = vst.msk [vmem:[%s5662_s15 + $0x6a0] sm:$0xff] %vm364_vm1, %v2433_v62 }
 0x2bc   : > { %2923 = vbcast.lane.b32.xlu1 %v2921_v59, 256  ;;  %2916 = vbcast.lane.b32.xlu0 %v2914_v60, 256  ;;  %v3115_v59 = vrot.slane %v5279_v43, %v5597_v16  ;;  %v5296_v60 = vld [vmem:[%s5578_s11 + $0x108] sm:$0xff] }
 0x2be   : > { %v2454_v6 = vpop.permute.xlu1 %2453  ;;  %v2447_v7 = vpop.permute.xlu0 %2446 }
 0x2bf   : > { %5203 = vst.msk [vmem:[%s5662_s15 + $0x6d0] sm:$0xff] %vm364_vm1, %v2454_v6  ;;  %5202 = vst.msk [vmem:[%s5662_s15 + $0x6c0] sm:$0xff] %vm364_vm1, %v2447_v7  ;;  %v3170_v7 = vrot.slane %v5296_v60, %v5580_v4 }
 0x2c0   : > { %2937 = vbcast.lane.b32.xlu1 %v2935_v63, 256  ;;  %2930 = vbcast.lane.b32.xlu0 %v2928_v0, 256  ;;  %v3156_v63 = vrot.slane %v5296_v60, %v5582_v5  ;;  %v3149_v0 = vrot.slane %v5296_v60, %v5573_v3 }
 0x2c2   : > { %v2468_v10 = vpop.permute.xlu1 %2467  ;;  %v2461_v13 = vpop.permute.xlu0 %2460 }
 0x2c3   : > { %5205 = vst.msk [vmem:[%s5662_s15 + $0x6f0] sm:$0xff] %vm364_vm1, %v2468_v10  ;;  %5204 = vst.msk [vmem:[%s5662_s15 + $0x6e0] sm:$0xff] %vm364_vm1, %v2461_v13  ;;  %v3184_v13 = vrot.slane %v5296_v60, %v5589_v11 }
 0x2c4   : > { %2951 = vbcast.lane.b32.xlu1 %v2949_v8, 256  ;;  %2944 = vbcast.lane.b32.xlu0 %v2942_v9, 256  ;;  %v3163_v8 = vrot.slane %v5296_v60, %v5571_v2 }
 0x2c6   : > { %v2501_v18 = vpop.permute.xlu1 %2500  ;;  %v2494_v19 = vpop.permute.xlu0 %2493 }
 0x2c7   : > { %5209 = vst.msk [vmem:[%s5662_s15 + $0x218] sm:$0xff] %vm232_vm0, %v2501_v18  ;;  %5208 = vst.msk [vmem:[%s5662_s15 + $0x208] sm:$0xff] %vm232_vm0, %v2494_v19  ;;  %v3198_v19 = vrot.slane %v5296_v60, %v5595_v15 }
 0x2c8   : > { %2965 = vbcast.lane.b32.xlu1 %v2963_v14, 256  ;;  %2958 = vbcast.lane.b32.xlu0 %v2956_v17, 256  ;;  %v3177_v14 = vrot.slane %v5296_v60, %v5591_v12 }
 0x2ca   : > { %v2515_v22 = vpop.permute.xlu1 %2514  ;;  %v2508_v23 = vpop.permute.xlu0 %2507 }
 0x2cb   : > { %5211 = vst.msk [vmem:[%s5662_s15 + $0x238] sm:$0xff] %vm232_vm0, %v2515_v22  ;;  %5210 = vst.msk [vmem:[%s5662_s15 + $0x228] sm:$0xff] %vm232_vm0, %v2508_v23 }
 0x2cc   : > { %2979 = vbcast.lane.b32.xlu1 %v2977_v20, 256  ;;  %2972 = vbcast.lane.b32.xlu0 %v2970_v21, 256  ;;  %v3191_v20 = vrot.slane %v5296_v60, %v5597_v16  ;;  %v5297_v21 = vld [vmem:[%s5578_s11 + $0x130] sm:$0xff] }
 0x2ce   : > { %v2529_v27 = vpop.permute.xlu1 %2528  ;;  %v2522_v28 = vpop.permute.xlu0 %2521 }
 0x2cf   : > { %5213 = vst.msk [vmem:[%s5662_s15 + $0x258] sm:$0xff] %vm232_vm0, %v2529_v27  ;;  %5212 = vst.msk [vmem:[%s5662_s15 + $0x248] sm:$0xff] %vm232_vm0, %v2522_v28  ;;  %v3226_v28 = vrot.slane %v5297_v21, %v5580_v4 }
 0x2d0   : > { %2993 = vbcast.lane.b32.xlu1 %v2991_v24, 256  ;;  %2986 = vbcast.lane.b32.xlu0 %v2984_v25, 256  ;;  %v3212_v24 = vrot.slane %v5297_v21, %v5582_v5  ;;  %v3205_v25 = vrot.slane %v5297_v21, %v5573_v3 }
 0x2d2   : > { %v2543_v31 = vpop.permute.xlu1 %2542  ;;  %v2536_v32 = vpop.permute.xlu0 %2535 }
 0x2d3   : > { %5215 = vst.msk [vmem:[%s5662_s15 + $0x278] sm:$0xff] %vm232_vm0, %v2543_v31  ;;  %5214 = vst.msk [vmem:[%s5662_s15 + $0x268] sm:$0xff] %vm232_vm0, %v2536_v32  ;;  %v3240_v32 = vrot.slane %v5297_v21, %v5589_v11 }
 0x2d4   : > { %3026 = vbcast.lane.b32.xlu1 %v3024_v29, 256  ;;  %3019 = vbcast.lane.b32.xlu0 %v3017_v30, 256  ;;  %v3219_v29 = vrot.slane %v5297_v21, %v5571_v2 }
 0x2d6   : > { %v2557_v35 = vpop.permute.xlu1 %2556  ;;  %v2550_v36 = vpop.permute.xlu0 %2549 }
 0x2d7   : > { %5217 = vst.msk [vmem:[%s5662_s15 + $0x698] sm:$0xff] %vm232_vm0, %v2557_v35  ;;  %5216 = vst.msk [vmem:[%s5662_s15 + $0x688] sm:$0xff] %vm232_vm0, %v2550_v36  ;;  %v3254_v36 = vrot.slane %v5297_v21, %v5595_v15 }
 0x2d8   : > { %3040 = vbcast.lane.b32.xlu1 %v3038_v33, 256  ;;  %3033 = vbcast.lane.b32.xlu0 %v3031_v34, 256  ;;  %v3233_v33 = vrot.slane %v5297_v21, %v5591_v12 }
 0x2da   : > { %v2571_v39 = vpop.permute.xlu1 %2570  ;;  %v2564_v40 = vpop.permute.xlu0 %2563 }
 0x2db   : > { %5219 = vst.msk [vmem:[%s5662_s15 + $0x6b8] sm:$0xff] %vm232_vm0, %v2571_v39  ;;  %5218 = vst.msk [vmem:[%s5662_s15 + $0x6a8] sm:$0xff] %vm232_vm0, %v2564_v40 }
 0x2dc   : > { %3054 = vbcast.lane.b32.xlu1 %v3052_v37, 256  ;;  %3047 = vbcast.lane.b32.xlu0 %v3045_v38, 256  ;;  %v3247_v37 = vrot.slane %v5297_v21, %v5597_v16  ;;  %v5314_v38 = vld [vmem:[%s5578_s11 + $0x158] sm:$0xff] }
 0x2de   : > { %v2585_v44 = vpop.permute.xlu1 %2584  ;;  %v2578_v45 = vpop.permute.xlu0 %2577 }
 0x2df   : > { %5221 = vst.msk [vmem:[%s5662_s15 + $0x6d8] sm:$0xff] %vm232_vm0, %v2585_v44  ;;  %5220 = vst.msk [vmem:[%s5662_s15 + $0x6c8] sm:$0xff] %vm232_vm0, %v2578_v45  ;;  %v3301_v45 = vrot.slane %v5314_v38, %v5580_v4 }
 0x2e0   : > { %3068 = vbcast.lane.b32.xlu1 %v3066_v41, 256  ;;  %3061 = vbcast.lane.b32.xlu0 %v3059_v42, 256  ;;  %v3287_v41 = vrot.slane %v5314_v38, %v5582_v5  ;;  %v3280_v42 = vrot.slane %v5314_v38, %v5573_v3 }
 0x2e2   : > { %v2599_v48 = vpop.permute.xlu1 %2598  ;;  %v2592_v49 = vpop.permute.xlu0 %2591 }
 0x2e3   : > { %5223 = vst.msk [vmem:[%s5662_s15 + $0x6f8] sm:$0xff] %vm232_vm0, %v2599_v48  ;;  %5222 = vst.msk [vmem:[%s5662_s15 + $0x6e8] sm:$0xff] %vm232_vm0, %v2592_v49  ;;  %v3315_v49 = vrot.slane %v5314_v38, %v5589_v11 }
 0x2e4   : > { %3082 = vbcast.lane.b32.xlu1 %v3080_v46, 256  ;;  %3075 = vbcast.lane.b32.xlu0 %v3073_v47, 256  ;;  %v3294_v46 = vrot.slane %v5314_v38, %v5571_v2 }
 0x2e6   : > { %v2633_v52 = vpop.permute.xlu1 %2632  ;;  %v2626_v53 = vpop.permute.xlu0 %2625 }
 0x2e7   : > { %5227 = vst.msk [vmem:[%s5662_s15 + $0x218] sm:$0xff] %vm364_vm1, %v2633_v52  ;;  %5226 = vst.msk [vmem:[%s5662_s15 + $0x208] sm:$0xff] %vm364_vm1, %v2626_v53  ;;  %v3329_v53 = vrot.slane %v5314_v38, %v5595_v15 }
 0x2e8   : > { %3096 = vbcast.lane.b32.xlu1 %v3094_v50, 256  ;;  %3089 = vbcast.lane.b32.xlu0 %v3087_v51, 256  ;;  %v3308_v50 = vrot.slane %v5314_v38, %v5591_v12 }
 0x2ea   : > { %v2647_v56 = vpop.permute.xlu1 %2646  ;;  %v2640_v57 = vpop.permute.xlu0 %2639 }
 0x2eb   : > { %5229 = vst.msk [vmem:[%s5662_s15 + $0x238] sm:$0xff] %vm364_vm1, %v2647_v56  ;;  %5228 = vst.msk [vmem:[%s5662_s15 + $0x228] sm:$0xff] %vm364_vm1, %v2640_v57 }
 0x2ec   : > { %3110 = vbcast.lane.b32.xlu1 %v3108_v54, 256  ;;  %3103 = vbcast.lane.b32.xlu0 %v3101_v55, 256  ;;  %v3322_v54 = vrot.slane %v5314_v38, %v5597_v16  ;;  %v5315_v55 = vld [vmem:[%s5578_s11 + $0x180] sm:$0xff] }
 0x2ee   : > { %v2661_v61 = vpop.permute.xlu1 %2660  ;;  %v2654_v62 = vpop.permute.xlu0 %2653 }
 0x2ef   : > { %5231 = vst.msk [vmem:[%s5662_s15 + $0x258] sm:$0xff] %vm364_vm1, %v2661_v61  ;;  %5230 = vst.msk [vmem:[%s5662_s15 + $0x248] sm:$0xff] %vm364_vm1, %v2654_v62  ;;  %v3357_v62 = vrot.slane %v5315_v55, %v5580_v4 }
 0x2f0   : > { %3124 = vbcast.lane.b32.xlu1 %v3122_v58, 256  ;;  %3117 = vbcast.lane.b32.xlu0 %v3115_v59, 256  ;;  %v3343_v58 = vrot.slane %v5315_v55, %v5582_v5  ;;  %v3336_v59 = vrot.slane %v5315_v55, %v5573_v3 }
 0x2f2   : > { %v2675_v1 = vpop.permute.xlu1 %2674  ;;  %v2668_v6 = vpop.permute.xlu0 %2667 }
 0x2f3   : > { %5233 = vst.msk [vmem:[%s5662_s15 + $0x278] sm:$0xff] %vm364_vm1, %v2675_v1  ;;  %5232 = vst.msk [vmem:[%s5662_s15 + $0x268] sm:$0xff] %vm364_vm1, %v2668_v6  ;;  %v3371_v6 = vrot.slane %v5315_v55, %v5589_v11 }
 0x2f4   : > { %3158 = vbcast.lane.b32.xlu1 %v3156_v63, 256  ;;  %3151 = vbcast.lane.b32.xlu0 %v3149_v0, 256  ;;  %v3350_v63 = vrot.slane %v5315_v55, %v5571_v2 }
 0x2f6   : > { %v2689_v9 = vpop.permute.xlu1 %2688  ;;  %v2682_v10 = vpop.permute.xlu0 %2681 }
 0x2f7   : > { %5235 = vst.msk [vmem:[%s5662_s15 + $0x698] sm:$0xff] %vm364_vm1, %v2689_v9  ;;  %5234 = vst.msk [vmem:[%s5662_s15 + $0x688] sm:$0xff] %vm364_vm1, %v2682_v10  ;;  %v3385_v10 = vrot.slane %v5315_v55, %v5595_v15 }
 0x2f8   : > { %3172 = vbcast.lane.b32.xlu1 %v3170_v7, 256  ;;  %3165 = vbcast.lane.b32.xlu0 %v3163_v8, 256  ;;  %v3364_v7 = vrot.slane %v5315_v55, %v5591_v12 }
 0x2fa   : > { %v2703_v17 = vpop.permute.xlu1 %2702  ;;  %v2696_v18 = vpop.permute.xlu0 %2695 }
 0x2fb   : > { %5237 = vst.msk [vmem:[%s5662_s15 + $0x6b8] sm:$0xff] %vm364_vm1, %v2703_v17  ;;  %5236 = vst.msk [vmem:[%s5662_s15 + $0x6a8] sm:$0xff] %vm364_vm1, %v2696_v18 }
 0x2fc   : > { %3186 = vbcast.lane.b32.xlu1 %v3184_v13, 256  ;;  %3179 = vbcast.lane.b32.xlu0 %v3177_v14, 256  ;;  %v3378_v13 = vrot.slane %v5315_v55, %v5597_v16  ;;  %v5332_v14 = vld [vmem:[%s5578_s11 + $0x1a8] sm:$0xff] }
 0x2fe   : > { %v2717_v22 = vpop.permute.xlu1 %2716  ;;  %v2710_v23 = vpop.permute.xlu0 %2709 }
 0x2ff   : > { %5239 = vst.msk [vmem:[%s5662_s15 + $0x6d8] sm:$0xff] %vm364_vm1, %v2717_v22  ;;  %5238 = vst.msk [vmem:[%s5662_s15 + $0x6c8] sm:$0xff] %vm364_vm1, %v2710_v23  ;;  %v3433_v23 = vrot.slane %v5332_v14, %v5580_v4 }
 0x300   : > { %3200 = vbcast.lane.b32.xlu1 %v3198_v19, 256  ;;  %3193 = vbcast.lane.b32.xlu0 %v3191_v20, 256  ;;  %v3419_v19 = vrot.slane %v5332_v14, %v5582_v5  ;;  %v3412_v20 = vrot.slane %v5332_v14, %v5573_v3 }
 0x302   : > { %v2731_v26 = vpop.permute.xlu1 %2730  ;;  %v2724_v27 = vpop.permute.xlu0 %2723 }
 0x303   : > { %5241 = vst.msk [vmem:[%s5662_s15 + $0x6f8] sm:$0xff] %vm364_vm1, %v2731_v26  ;;  %5240 = vst.msk [vmem:[%s5662_s15 + $0x6e8] sm:$0xff] %vm364_vm1, %v2724_v27  ;;  %v3447_v27 = vrot.slane %v5332_v14, %v5589_v11 }
 0x304   : > { %3214 = vbcast.lane.b32.xlu1 %v3212_v24, 256  ;;  %3207 = vbcast.lane.b32.xlu0 %v3205_v25, 256  ;;  %v3426_v24 = vrot.slane %v5332_v14, %v5571_v2 }
 0x306   : > { %v2764_v30 = vpop.permute.xlu1 %2763  ;;  %v2757_v31 = vpop.permute.xlu0 %2756 }
 0x307   : > { %5245 = vst.msk [vmem:[%s5662_s15 + $0x290] sm:$0xff] %vm232_vm0, %v2764_v30  ;;  %5244 = vst.msk [vmem:[%s5662_s15 + $0x280] sm:$0xff] %vm232_vm0, %v2757_v31  ;;  %v3461_v31 = vrot.slane %v5332_v14, %v5595_v15 }
 0x308   : > { %3228 = vbcast.lane.b32.xlu1 %v3226_v28, 256  ;;  %3221 = vbcast.lane.b32.xlu0 %v3219_v29, 256  ;;  %v3440_v28 = vrot.slane %v5332_v14, %v5591_v12 }
 0x30a   : > { %v2778_v34 = vpop.permute.xlu1 %2777  ;;  %v2771_v35 = vpop.permute.xlu0 %2770 }
 0x30b   : > { %5247 = vst.msk [vmem:[%s5662_s15 + $0x2b0] sm:$0xff] %vm232_vm0, %v2778_v34  ;;  %5246 = vst.msk [vmem:[%s5662_s15 + $0x2a0] sm:$0xff] %vm232_vm0, %v2771_v35 }
 0x30c   : > { %3242 = vbcast.lane.b32.xlu1 %v3240_v32, 256  ;;  %3235 = vbcast.lane.b32.xlu0 %v3233_v33, 256  ;;  %v3454_v32 = vrot.slane %v5332_v14, %v5597_v16  ;;  %v5333_v33 = vld [vmem:[%s5578_s11 + $0x1d0] sm:$0xff] }
 0x30e   : > { %v2792_v39 = vpop.permute.xlu1 %2791  ;;  %v2785_v40 = vpop.permute.xlu0 %2784 }
 0x30f   : > { %5249 = vst.msk [vmem:[%s5662_s15 + $0x2d0] sm:$0xff] %vm232_vm0, %v2792_v39  ;;  %5248 = vst.msk [vmem:[%s5662_s15 + $0x2c0] sm:$0xff] %vm232_vm0, %v2785_v40  ;;  %v3489_v40 = vrot.slane %v5333_v33, %v5580_v4 }
 0x310   : > { %3256 = vbcast.lane.b32.xlu1 %v3254_v36, 256  ;;  %3249 = vbcast.lane.b32.xlu0 %v3247_v37, 256  ;;  %v3475_v36 = vrot.slane %v5333_v33, %v5582_v5  ;;  %v3468_v37 = vrot.slane %v5333_v33, %v5573_v3 }
 0x312   : > { %v2806_v43 = vpop.permute.xlu1 %2805  ;;  %v2799_v44 = vpop.permute.xlu0 %2798 }
 0x313   : > { %5251 = vst.msk [vmem:[%s5662_s15 + $0x2f0] sm:$0xff] %vm232_vm0, %v2806_v43  ;;  %5250 = vst.msk [vmem:[%s5662_s15 + $0x2e0] sm:$0xff] %vm232_vm0, %v2799_v44  ;;  %v3503_v44 = vrot.slane %v5333_v33, %v5589_v11 }
 0x314   : > { %3289 = vbcast.lane.b32.xlu1 %v3287_v41, 256  ;;  %3282 = vbcast.lane.b32.xlu0 %v3280_v42, 256  ;;  %v3482_v41 = vrot.slane %v5333_v33, %v5571_v2 }
 0x316   : > { %v2820_v47 = vpop.permute.xlu1 %2819  ;;  %v2813_v48 = vpop.permute.xlu0 %2812 }
 0x317   : > { %5253 = vst.msk [vmem:[%s5662_s15 + $0x710] sm:$0xff] %vm232_vm0, %v2820_v47  ;;  %5252 = vst.msk [vmem:[%s5662_s15 + $0x700] sm:$0xff] %vm232_vm0, %v2813_v48  ;;  %v3517_v48 = vrot.slane %v5333_v33, %v5595_v15 }
 0x318   : > { %3303 = vbcast.lane.b32.xlu1 %v3301_v45, 256  ;;  %3296 = vbcast.lane.b32.xlu0 %v3294_v46, 256  ;;  %v3496_v45 = vrot.slane %v5333_v33, %v5591_v12 }
 0x31a   : > { %v2834_v51 = vpop.permute.xlu1 %2833  ;;  %v2827_v52 = vpop.permute.xlu0 %2826 }
 0x31b   : > { %5255 = vst.msk [vmem:[%s5662_s15 + $0x730] sm:$0xff] %vm232_vm0, %v2834_v51  ;;  %5254 = vst.msk [vmem:[%s5662_s15 + $0x720] sm:$0xff] %vm232_vm0, %v2827_v52 }
 0x31c   : > { %3317 = vbcast.lane.b32.xlu1 %v3315_v49, 256  ;;  %3310 = vbcast.lane.b32.xlu0 %v3308_v50, 256  ;;  %v3510_v49 = vrot.slane %v5333_v33, %v5597_v16  ;;  %v5350_v50 = vld [vmem:[%s5578_s11 + $0x1f8] sm:$0xff] }
 0x31e   : > { %v2848_v56 = vpop.permute.xlu1 %2847  ;;  %v2841_v57 = vpop.permute.xlu0 %2840 }
 0x31f   : > { %5257 = vst.msk [vmem:[%s5662_s15 + $0x750] sm:$0xff] %vm232_vm0, %v2848_v56  ;;  %5256 = vst.msk [vmem:[%s5662_s15 + $0x740] sm:$0xff] %vm232_vm0, %v2841_v57  ;;  %v3564_v57 = vrot.slane %v5350_v50, %v5580_v4 }
 0x320   : > { %3331 = vbcast.lane.b32.xlu1 %v3329_v53, 256  ;;  %3324 = vbcast.lane.b32.xlu0 %v3322_v54, 256  ;;  %v3550_v53 = vrot.slane %v5350_v50, %v5582_v5  ;;  %v3543_v54 = vrot.slane %v5350_v50, %v5573_v3 }
 0x322   : > { %v2862_v60 = vpop.permute.xlu1 %2861  ;;  %v2855_v61 = vpop.permute.xlu0 %2854 }
 0x323   : > { %5259 = vst.msk [vmem:[%s5662_s15 + $0x770] sm:$0xff] %vm232_vm0, %v2862_v60  ;;  %5258 = vst.msk [vmem:[%s5662_s15 + $0x760] sm:$0xff] %vm232_vm0, %v2855_v61  ;;  %v3578_v61 = vrot.slane %v5350_v50, %v5589_v11 }
 0x324   : > { %3345 = vbcast.lane.b32.xlu1 %v3343_v58, 256  ;;  %3338 = vbcast.lane.b32.xlu0 %v3336_v59, 256  ;;  %v3557_v58 = vrot.slane %v5350_v50, %v5571_v2 }
 0x326   : > { %v2896_v0 = vpop.permute.xlu1 %2895  ;;  %v2889_v1 = vpop.permute.xlu0 %2888 }
 0x327   : > { %5263 = vst.msk [vmem:[%s5662_s15 + $0x290] sm:$0xff] %vm364_vm1, %v2896_v0  ;;  %5262 = vst.msk [vmem:[%s5662_s15 + $0x280] sm:$0xff] %vm364_vm1, %v2889_v1  ;;  %v3592_v1 = vrot.slane %v5350_v50, %v5595_v15 }
 0x328   : > { %3359 = vbcast.lane.b32.xlu1 %v3357_v62, 256  ;;  %3352 = vbcast.lane.b32.xlu0 %v3350_v63, 256  ;;  %v3571_v62 = vrot.slane %v5350_v50, %v5591_v12 }
 0x32a   : > { %v2910_v8 = vpop.permute.xlu1 %2909  ;;  %v2903_v9 = vpop.permute.xlu0 %2902 }
 0x32b   : > { %5265 = vst.msk [vmem:[%s5662_s15 + $0x2b0] sm:$0xff] %vm364_vm1, %v2910_v8  ;;  %5264 = vst.msk [vmem:[%s5662_s15 + $0x2a0] sm:$0xff] %vm364_vm1, %v2903_v9 }
 0x32c   : > { %3373 = vbcast.lane.b32.xlu1 %v3371_v6, 256  ;;  %3366 = vbcast.lane.b32.xlu0 %v3364_v7, 256  ;;  %v3585_v6 = vrot.slane %v5350_v50, %v5597_v16  ;;  %v5351_v7 = vld [vmem:[%s5578_s11 + $0x220] sm:$0xff] }
 0x32e   : > { %v2924_v17 = vpop.permute.xlu1 %2923  ;;  %v2917_v18 = vpop.permute.xlu0 %2916 }
 0x32f   : > { %5267 = vst.msk [vmem:[%s5662_s15 + $0x2d0] sm:$0xff] %vm364_vm1, %v2924_v17  ;;  %5266 = vst.msk [vmem:[%s5662_s15 + $0x2c0] sm:$0xff] %vm364_vm1, %v2917_v18  ;;  %v3620_v18 = vrot.slane %v5351_v7, %v5580_v4 }
 0x330   : > { %3387 = vbcast.lane.b32.xlu1 %v3385_v10, 256  ;;  %3380 = vbcast.lane.b32.xlu0 %v3378_v13, 256  ;;  %v3606_v10 = vrot.slane %v5351_v7, %v5582_v5  ;;  %v3599_v13 = vrot.slane %v5351_v7, %v5573_v3 }
 0x332   : > { %v2938_v21 = vpop.permute.xlu1 %2937  ;;  %v2931_v22 = vpop.permute.xlu0 %2930 }
 0x333   : > { %5269 = vst.msk [vmem:[%s5662_s15 + $0x2f0] sm:$0xff] %vm364_vm1, %v2938_v21  ;;  %5268 = vst.msk [vmem:[%s5662_s15 + $0x2e0] sm:$0xff] %vm364_vm1, %v2931_v22  ;;  %v3634_v22 = vrot.slane %v5351_v7, %v5589_v11 }
 0x334   : > { %3421 = vbcast.lane.b32.xlu1 %v3419_v19, 256  ;;  %3414 = vbcast.lane.b32.xlu0 %v3412_v20, 256  ;;  %v3613_v19 = vrot.slane %v5351_v7, %v5571_v2 }
 0x336   : > { %v2952_v25 = vpop.permute.xlu1 %2951  ;;  %v2945_v26 = vpop.permute.xlu0 %2944 }
 0x337   : > { %5271 = vst.msk [vmem:[%s5662_s15 + $0x710] sm:$0xff] %vm364_vm1, %v2952_v25  ;;  %5270 = vst.msk [vmem:[%s5662_s15 + $0x700] sm:$0xff] %vm364_vm1, %v2945_v26  ;;  %v3648_v26 = vrot.slane %v5351_v7, %v5595_v15 }
 0x338   : > { %3435 = vbcast.lane.b32.xlu1 %v3433_v23, 256  ;;  %3428 = vbcast.lane.b32.xlu0 %v3426_v24, 256  ;;  %v3627_v23 = vrot.slane %v5351_v7, %v5591_v12 }
 0x33a   : > { %v2966_v29 = vpop.permute.xlu1 %2965  ;;  %v2959_v30 = vpop.permute.xlu0 %2958 }
 0x33b   : > { %5273 = vst.msk [vmem:[%s5662_s15 + $0x730] sm:$0xff] %vm364_vm1, %v2966_v29  ;;  %5272 = vst.msk [vmem:[%s5662_s15 + $0x720] sm:$0xff] %vm364_vm1, %v2959_v30 }
 0x33c   : > { %3449 = vbcast.lane.b32.xlu1 %v3447_v27, 256  ;;  %3442 = vbcast.lane.b32.xlu0 %v3440_v28, 256  ;;  %v3641_v27 = vrot.slane %v5351_v7, %v5597_v16  ;;  %v5368_v28 = vld [vmem:[%s5578_s11 + $0x248] sm:$0xff] }
 0x33e   : > { %v2980_v34 = vpop.permute.xlu1 %2979  ;;  %v2973_v35 = vpop.permute.xlu0 %2972 }
 0x33f   : > { %5275 = vst.msk [vmem:[%s5662_s15 + $0x750] sm:$0xff] %vm364_vm1, %v2980_v34  ;;  %5274 = vst.msk [vmem:[%s5662_s15 + $0x740] sm:$0xff] %vm364_vm1, %v2973_v35  ;;  %v3696_v35 = vrot.slane %v5368_v28, %v5580_v4 }
 0x340   : > { %3463 = vbcast.lane.b32.xlu1 %v3461_v31, 256  ;;  %3456 = vbcast.lane.b32.xlu0 %v3454_v32, 256  ;;  %v3682_v31 = vrot.slane %v5368_v28, %v5582_v5  ;;  %v3675_v32 = vrot.slane %v5368_v28, %v5573_v3 }
 0x342   : > { %v2994_v38 = vpop.permute.xlu1 %2993  ;;  %v2987_v39 = vpop.permute.xlu0 %2986 }
 0x343   : > { %5277 = vst.msk [vmem:[%s5662_s15 + $0x770] sm:$0xff] %vm364_vm1, %v2994_v38  ;;  %5276 = vst.msk [vmem:[%s5662_s15 + $0x760] sm:$0xff] %vm364_vm1, %v2987_v39  ;;  %v3710_v39 = vrot.slane %v5368_v28, %v5589_v11 }
 0x344   : > { %3477 = vbcast.lane.b32.xlu1 %v3475_v36, 256  ;;  %3470 = vbcast.lane.b32.xlu0 %v3468_v37, 256  ;;  %v3689_v36 = vrot.slane %v5368_v28, %v5571_v2 }
 0x346   : > { %v3027_v42 = vpop.permute.xlu1 %3026  ;;  %v3020_v43 = vpop.permute.xlu0 %3019 }
 0x347   : > { %5281 = vst.msk [vmem:[%s5662_s15 + $0x298] sm:$0xff] %vm232_vm0, %v3027_v42  ;;  %5280 = vst.msk [vmem:[%s5662_s15 + $0x288] sm:$0xff] %vm232_vm0, %v3020_v43  ;;  %v3724_v43 = vrot.slane %v5368_v28, %v5595_v15 }
 0x348   : > { %3491 = vbcast.lane.b32.xlu1 %v3489_v40, 256  ;;  %3484 = vbcast.lane.b32.xlu0 %v3482_v41, 256  ;;  %v3703_v40 = vrot.slane %v5368_v28, %v5591_v12 }
 0x34a   : > { %v3041_v46 = vpop.permute.xlu1 %3040  ;;  %v3034_v47 = vpop.permute.xlu0 %3033 }
 0x34b   : > { %5283 = vst.msk [vmem:[%s5662_s15 + $0x2b8] sm:$0xff] %vm232_vm0, %v3041_v46  ;;  %5282 = vst.msk [vmem:[%s5662_s15 + $0x2a8] sm:$0xff] %vm232_vm0, %v3034_v47 }
 0x34c   : > { %3505 = vbcast.lane.b32.xlu1 %v3503_v44, 256  ;;  %3498 = vbcast.lane.b32.xlu0 %v3496_v45, 256  ;;  %v3717_v44 = vrot.slane %v5368_v28, %v5597_v16  ;;  %v5369_v45 = vld [vmem:[%s5578_s11 + $0x270] sm:$0xff] }
 0x34e   : > { %v3055_v51 = vpop.permute.xlu1 %3054  ;;  %v3048_v52 = vpop.permute.xlu0 %3047 }
 0x34f   : > { %5285 = vst.msk [vmem:[%s5662_s15 + $0x2d8] sm:$0xff] %vm232_vm0, %v3055_v51  ;;  %5284 = vst.msk [vmem:[%s5662_s15 + $0x2c8] sm:$0xff] %vm232_vm0, %v3048_v52  ;;  %v3752_v52 = vrot.slane %v5369_v45, %v5580_v4 }
 0x350   : > { %3519 = vbcast.lane.b32.xlu1 %v3517_v48, 256  ;;  %3512 = vbcast.lane.b32.xlu0 %v3510_v49, 256  ;;  %v3738_v48 = vrot.slane %v5369_v45, %v5582_v5  ;;  %v3731_v49 = vrot.slane %v5369_v45, %v5573_v3 }
 0x352   : > { %v3069_v55 = vpop.permute.xlu1 %3068  ;;  %v3062_v56 = vpop.permute.xlu0 %3061 }
 0x353   : > { %5287 = vst.msk [vmem:[%s5662_s15 + $0x2f8] sm:$0xff] %vm232_vm0, %v3069_v55  ;;  %5286 = vst.msk [vmem:[%s5662_s15 + $0x2e8] sm:$0xff] %vm232_vm0, %v3062_v56  ;;  %v3766_v56 = vrot.slane %v5369_v45, %v5589_v11 }
 0x354   : > { %3552 = vbcast.lane.b32.xlu1 %v3550_v53, 256  ;;  %3545 = vbcast.lane.b32.xlu0 %v3543_v54, 256  ;;  %v3745_v53 = vrot.slane %v5369_v45, %v5571_v2 }
 0x356   : > { %v3083_v59 = vpop.permute.xlu1 %3082  ;;  %v3076_v60 = vpop.permute.xlu0 %3075 }
 0x357   : > { %5289 = vst.msk [vmem:[%s5662_s15 + $0x718] sm:$0xff] %vm232_vm0, %v3083_v59  ;;  %5288 = vst.msk [vmem:[%s5662_s15 + $0x708] sm:$0xff] %vm232_vm0, %v3076_v60  ;;  %v3780_v60 = vrot.slane %v5369_v45, %v5595_v15 }
 0x358   : > { %3566 = vbcast.lane.b32.xlu1 %v3564_v57, 256  ;;  %3559 = vbcast.lane.b32.xlu0 %v3557_v58, 256  ;;  %v3759_v57 = vrot.slane %v5369_v45, %v5591_v12 }
 0x35a   : > { %v3097_v63 = vpop.permute.xlu1 %3096  ;;  %v3090_v0 = vpop.permute.xlu0 %3089 }
 0x35b   : > { %5291 = vst.msk [vmem:[%s5662_s15 + $0x738] sm:$0xff] %vm232_vm0, %v3097_v63  ;;  %5290 = vst.msk [vmem:[%s5662_s15 + $0x728] sm:$0xff] %vm232_vm0, %v3090_v0 }
 0x35c   : > { %3580 = vbcast.lane.b32.xlu1 %v3578_v61, 256  ;;  %3573 = vbcast.lane.b32.xlu0 %v3571_v62, 256  ;;  %v3773_v61 = vrot.slane %v5369_v45, %v5597_v16  ;;  %v5386_v62 = vld [vmem:[%s5578_s11 + $0x20] sm:$0xff] }
 0x35e   : > { %v3111_v8 = vpop.permute.xlu1 %3110  ;;  %v3104_v9 = vpop.permute.xlu0 %3103 }
 0x35f   : > { %5293 = vst.msk [vmem:[%s5662_s15 + $0x758] sm:$0xff] %vm232_vm0, %v3111_v8  ;;  %5292 = vst.msk [vmem:[%s5662_s15 + $0x748] sm:$0xff] %vm232_vm0, %v3104_v9  ;;  %v3827_v9 = vrot.slane %v5386_v62, %v5580_v4 }
 0x360   : > { %3594 = vbcast.lane.b32.xlu1 %v3592_v1, 256  ;;  %3587 = vbcast.lane.b32.xlu0 %v3585_v6, 256  ;;  %v3813_v1 = vrot.slane %v5386_v62, %v5582_v5  ;;  %v3806_v6 = vrot.slane %v5386_v62, %v5573_v3 }
 0x362   : > { %v3125_v14 = vpop.permute.xlu1 %3124  ;;  %v3118_v17 = vpop.permute.xlu0 %3117 }
 0x363   : > { %5295 = vst.msk [vmem:[%s5662_s15 + $0x778] sm:$0xff] %vm232_vm0, %v3125_v14  ;;  %5294 = vst.msk [vmem:[%s5662_s15 + $0x768] sm:$0xff] %vm232_vm0, %v3118_v17  ;;  %v3841_v17 = vrot.slane %v5386_v62, %v5589_v11 }
 0x364   : > { %3608 = vbcast.lane.b32.xlu1 %v3606_v10, 256  ;;  %3601 = vbcast.lane.b32.xlu0 %v3599_v13, 256  ;;  %v3820_v10 = vrot.slane %v5386_v62, %v5571_v2 }
 0x366   : > { %v3159_v20 = vpop.permute.xlu1 %3158  ;;  %v3152_v21 = vpop.permute.xlu0 %3151 }
 0x367   : > { %5299 = vst.msk [vmem:[%s5662_s15 + $0x298] sm:$0xff] %vm364_vm1, %v3159_v20  ;;  %5298 = vst.msk [vmem:[%s5662_s15 + $0x288] sm:$0xff] %vm364_vm1, %v3152_v21  ;;  %v3855_v21 = vrot.slane %v5386_v62, %v5595_v15 }
 0x368   : > { %3622 = vbcast.lane.b32.xlu1 %v3620_v18, 256  ;;  %3615 = vbcast.lane.b32.xlu0 %v3613_v19, 256  ;;  %v3834_v18 = vrot.slane %v5386_v62, %v5591_v12 }
 0x36a   : > { %v3173_v24 = vpop.permute.xlu1 %3172  ;;  %v3166_v25 = vpop.permute.xlu0 %3165 }
 0x36b   : > { %5301 = vst.msk [vmem:[%s5662_s15 + $0x2b8] sm:$0xff] %vm364_vm1, %v3173_v24  ;;  %5300 = vst.msk [vmem:[%s5662_s15 + $0x2a8] sm:$0xff] %vm364_vm1, %v3166_v25 }
 0x36c   : > { %3636 = vbcast.lane.b32.xlu1 %v3634_v22, 256  ;;  %3629 = vbcast.lane.b32.xlu0 %v3627_v23, 256  ;;  %v3848_v22 = vrot.slane %v5386_v62, %v5597_v16  ;;  %v5387_v23 = vld [vmem:[%s5578_s11 + $0x48] sm:$0xff] }
 0x36e   : > { %v3187_v29 = vpop.permute.xlu1 %3186  ;;  %v3180_v30 = vpop.permute.xlu0 %3179 }
 0x36f   : > { %5303 = vst.msk [vmem:[%s5662_s15 + $0x2d8] sm:$0xff] %vm364_vm1, %v3187_v29  ;;  %5302 = vst.msk [vmem:[%s5662_s15 + $0x2c8] sm:$0xff] %vm364_vm1, %v3180_v30  ;;  %v3883_v30 = vrot.slane %v5387_v23, %v5580_v4 }
 0x370   : > { %3650 = vbcast.lane.b32.xlu1 %v3648_v26, 256  ;;  %3643 = vbcast.lane.b32.xlu0 %v3641_v27, 256  ;;  %v3869_v26 = vrot.slane %v5387_v23, %v5582_v5  ;;  %v3862_v27 = vrot.slane %v5387_v23, %v5573_v3 }
 0x372   : > { %v3201_v33 = vpop.permute.xlu1 %3200  ;;  %v3194_v34 = vpop.permute.xlu0 %3193 }
 0x373   : > { %5305 = vst.msk [vmem:[%s5662_s15 + $0x2f8] sm:$0xff] %vm364_vm1, %v3201_v33  ;;  %5304 = vst.msk [vmem:[%s5662_s15 + $0x2e8] sm:$0xff] %vm364_vm1, %v3194_v34  ;;  %v3897_v34 = vrot.slane %v5387_v23, %v5589_v11 }
 0x374   : > { %3684 = vbcast.lane.b32.xlu1 %v3682_v31, 256  ;;  %3677 = vbcast.lane.b32.xlu0 %v3675_v32, 256  ;;  %v3876_v31 = vrot.slane %v5387_v23, %v5571_v2 }
 0x376   : > { %v3215_v37 = vpop.permute.xlu1 %3214  ;;  %v3208_v38 = vpop.permute.xlu0 %3207 }
 0x377   : > { %5307 = vst.msk [vmem:[%s5662_s15 + $0x718] sm:$0xff] %vm364_vm1, %v3215_v37  ;;  %5306 = vst.msk [vmem:[%s5662_s15 + $0x708] sm:$0xff] %vm364_vm1, %v3208_v38  ;;  %v3911_v38 = vrot.slane %v5387_v23, %v5595_v15 }
 0x378   : > { %3698 = vbcast.lane.b32.xlu1 %v3696_v35, 256  ;;  %3691 = vbcast.lane.b32.xlu0 %v3689_v36, 256  ;;  %v3890_v35 = vrot.slane %v5387_v23, %v5591_v12 }
 0x37a   : > { %v3229_v41 = vpop.permute.xlu1 %3228  ;;  %v3222_v42 = vpop.permute.xlu0 %3221 }
 0x37b   : > { %5309 = vst.msk [vmem:[%s5662_s15 + $0x738] sm:$0xff] %vm364_vm1, %v3229_v41  ;;  %5308 = vst.msk [vmem:[%s5662_s15 + $0x728] sm:$0xff] %vm364_vm1, %v3222_v42 }
 0x37c   : > { %3712 = vbcast.lane.b32.xlu1 %v3710_v39, 256  ;;  %3705 = vbcast.lane.b32.xlu0 %v3703_v40, 256  ;;  %v3904_v39 = vrot.slane %v5387_v23, %v5597_v16  ;;  %v5404_v40 = vld [vmem:[%s5578_s11 + $0x70] sm:$0xff] }
 0x37e   : > { %v3243_v46 = vpop.permute.xlu1 %3242  ;;  %v3236_v47 = vpop.permute.xlu0 %3235 }
 0x37f   : > { %5311 = vst.msk [vmem:[%s5662_s15 + $0x758] sm:$0xff] %vm364_vm1, %v3243_v46  ;;  %5310 = vst.msk [vmem:[%s5662_s15 + $0x748] sm:$0xff] %vm364_vm1, %v3236_v47  ;;  %v3959_v47 = vrot.slane %v5404_v40, %v5580_v4 }
 0x380   : > { %3726 = vbcast.lane.b32.xlu1 %v3724_v43, 256  ;;  %3719 = vbcast.lane.b32.xlu0 %v3717_v44, 256  ;;  %v3945_v43 = vrot.slane %v5404_v40, %v5582_v5  ;;  %v3938_v44 = vrot.slane %v5404_v40, %v5573_v3 }
 0x382   : > { %v3257_v50 = vpop.permute.xlu1 %3256  ;;  %v3250_v51 = vpop.permute.xlu0 %3249 }
 0x383   : > { %5313 = vst.msk [vmem:[%s5662_s15 + $0x778] sm:$0xff] %vm364_vm1, %v3257_v50  ;;  %5312 = vst.msk [vmem:[%s5662_s15 + $0x768] sm:$0xff] %vm364_vm1, %v3250_v51  ;;  %v3973_v51 = vrot.slane %v5404_v40, %v5589_v11 }
 0x384   : > { %3740 = vbcast.lane.b32.xlu1 %v3738_v48, 256  ;;  %3733 = vbcast.lane.b32.xlu0 %v3731_v49, 256  ;;  %v3952_v48 = vrot.slane %v5404_v40, %v5571_v2 }
 0x386   : > { %v3290_v54 = vpop.permute.xlu1 %3289  ;;  %v3283_v55 = vpop.permute.xlu0 %3282 }
 0x387   : > { %5317 = vst.msk [vmem:[%s5662_s15 + $0x310] sm:$0xff] %vm232_vm0, %v3290_v54  ;;  %5316 = vst.msk [vmem:[%s5662_s15 + $0x300] sm:$0xff] %vm232_vm0, %v3283_v55  ;;  %v3987_v55 = vrot.slane %v5404_v40, %v5595_v15 }
 0x388   : > { %3754 = vbcast.lane.b32.xlu1 %v3752_v52, 256  ;;  %3747 = vbcast.lane.b32.xlu0 %v3745_v53, 256  ;;  %v3966_v52 = vrot.slane %v5404_v40, %v5591_v12 }
 0x38a   : > { %v3304_v58 = vpop.permute.xlu1 %3303  ;;  %v3297_v59 = vpop.permute.xlu0 %3296 }
 0x38b   : > { %5319 = vst.msk [vmem:[%s5662_s15 + $0x330] sm:$0xff] %vm232_vm0, %v3304_v58  ;;  %5318 = vst.msk [vmem:[%s5662_s15 + $0x320] sm:$0xff] %vm232_vm0, %v3297_v59 }
 0x38c   : > { %3768 = vbcast.lane.b32.xlu1 %v3766_v56, 256  ;;  %3761 = vbcast.lane.b32.xlu0 %v3759_v57, 256  ;;  %v3980_v56 = vrot.slane %v5404_v40, %v5597_v16  ;;  %v5405_v57 = vld [vmem:[%s5578_s11 + $0x98] sm:$0xff] }
 0x38e   : > { %v3318_v63 = vpop.permute.xlu1 %3317  ;;  %v3311_v0 = vpop.permute.xlu0 %3310 }
 0x38f   : > { %5321 = vst.msk [vmem:[%s5662_s15 + $0x350] sm:$0xff] %vm232_vm0, %v3318_v63  ;;  %5320 = vst.msk [vmem:[%s5662_s15 + $0x340] sm:$0xff] %vm232_vm0, %v3311_v0  ;;  %v4015_v0 = vrot.slane %v5405_v57, %v5580_v4 }
 0x390   : > { %3782 = vbcast.lane.b32.xlu1 %v3780_v60, 256  ;;  %3775 = vbcast.lane.b32.xlu0 %v3773_v61, 256  ;;  %v4001_v60 = vrot.slane %v5405_v57, %v5582_v5  ;;  %v3994_v61 = vrot.slane %v5405_v57, %v5573_v3 }
 0x392   : > { %v3332_v7 = vpop.permute.xlu1 %3331  ;;  %v3325_v8 = vpop.permute.xlu0 %3324 }
 0x393   : > { %5323 = vst.msk [vmem:[%s5662_s15 + $0x370] sm:$0xff] %vm232_vm0, %v3332_v7  ;;  %5322 = vst.msk [vmem:[%s5662_s15 + $0x360] sm:$0xff] %vm232_vm0, %v3325_v8  ;;  %v4029_v8 = vrot.slane %v5405_v57, %v5589_v11 }
 0x394   : > { %3815 = vbcast.lane.b32.xlu1 %v3813_v1, 256  ;;  %3808 = vbcast.lane.b32.xlu0 %v3806_v6, 256  ;;  %v4008_v1 = vrot.slane %v5405_v57, %v5571_v2 }
 0x396   : > { %v3346_v13 = vpop.permute.xlu1 %3345  ;;  %v3339_v14 = vpop.permute.xlu0 %3338 }
 0x397   : > { %5325 = vst.msk [vmem:[%s5662_s15 + $0x790] sm:$0xff] %vm232_vm0, %v3346_v13  ;;  %5324 = vst.msk [vmem:[%s5662_s15 + $0x780] sm:$0xff] %vm232_vm0, %v3339_v14  ;;  %v4043_v14 = vrot.slane %v5405_v57, %v5595_v15 }
 0x398   : > { %3829 = vbcast.lane.b32.xlu1 %v3827_v9, 256  ;;  %3822 = vbcast.lane.b32.xlu0 %v3820_v10, 256  ;;  %v4022_v9 = vrot.slane %v5405_v57, %v5591_v12 }
 0x39a   : > { %v3360_v19 = vpop.permute.xlu1 %3359  ;;  %v3353_v20 = vpop.permute.xlu0 %3352 }
 0x39b   : > { %5327 = vst.msk [vmem:[%s5662_s15 + $0x7b0] sm:$0xff] %vm232_vm0, %v3360_v19  ;;  %5326 = vst.msk [vmem:[%s5662_s15 + $0x7a0] sm:$0xff] %vm232_vm0, %v3353_v20 }
 0x39c   : > { %3843 = vbcast.lane.b32.xlu1 %v3841_v17, 256  ;;  %3836 = vbcast.lane.b32.xlu0 %v3834_v18, 256  ;;  %v4036_v17 = vrot.slane %v5405_v57, %v5597_v16  ;;  %v5422_v18 = vld [vmem:[%s5578_s11 + $0xc0] sm:$0xff] }
 0x39e   : > { %v3374_v24 = vpop.permute.xlu1 %3373  ;;  %v3367_v25 = vpop.permute.xlu0 %3366 }
 0x39f   : > { %5329 = vst.msk [vmem:[%s5662_s15 + $0x7d0] sm:$0xff] %vm232_vm0, %v3374_v24  ;;  %5328 = vst.msk [vmem:[%s5662_s15 + $0x7c0] sm:$0xff] %vm232_vm0, %v3367_v25  ;;  %v4090_v25 = vrot.slane %v5422_v18, %v5580_v4 }
 0x3a0   : > { %3857 = vbcast.lane.b32.xlu1 %v3855_v21, 256  ;;  %3850 = vbcast.lane.b32.xlu0 %v3848_v22, 256  ;;  %v4076_v21 = vrot.slane %v5422_v18, %v5582_v5  ;;  %v4069_v22 = vrot.slane %v5422_v18, %v5573_v3 }
 0x3a2   : > { %v3388_v28 = vpop.permute.xlu1 %3387  ;;  %v3381_v29 = vpop.permute.xlu0 %3380 }
 0x3a3   : > { %5331 = vst.msk [vmem:[%s5662_s15 + $0x7f0] sm:$0xff] %vm232_vm0, %v3388_v28  ;;  %5330 = vst.msk [vmem:[%s5662_s15 + $0x7e0] sm:$0xff] %vm232_vm0, %v3381_v29  ;;  %v4104_v29 = vrot.slane %v5422_v18, %v5589_v11 }
 0x3a4   : > { %3871 = vbcast.lane.b32.xlu1 %v3869_v26, 256  ;;  %3864 = vbcast.lane.b32.xlu0 %v3862_v27, 256  ;;  %v4083_v26 = vrot.slane %v5422_v18, %v5571_v2 }
 0x3a6   : > { %v3422_v32 = vpop.permute.xlu1 %3421  ;;  %v3415_v33 = vpop.permute.xlu0 %3414 }
 0x3a7   : > { %5335 = vst.msk [vmem:[%s5662_s15 + $0x310] sm:$0xff] %vm364_vm1, %v3422_v32  ;;  %5334 = vst.msk [vmem:[%s5662_s15 + $0x300] sm:$0xff] %vm364_vm1, %v3415_v33  ;;  %v4118_v33 = vrot.slane %v5422_v18, %v5595_v15 }
 0x3a8   : > { %3885 = vbcast.lane.b32.xlu1 %v3883_v30, 256  ;;  %3878 = vbcast.lane.b32.xlu0 %v3876_v31, 256  ;;  %v4097_v30 = vrot.slane %v5422_v18, %v5591_v12 }
 0x3aa   : > { %v3436_v36 = vpop.permute.xlu1 %3435  ;;  %v3429_v37 = vpop.permute.xlu0 %3428 }
 0x3ab   : > { %5337 = vst.msk [vmem:[%s5662_s15 + $0x330] sm:$0xff] %vm364_vm1, %v3436_v36  ;;  %5336 = vst.msk [vmem:[%s5662_s15 + $0x320] sm:$0xff] %vm364_vm1, %v3429_v37 }
 0x3ac   : > { %3899 = vbcast.lane.b32.xlu1 %v3897_v34, 256  ;;  %3892 = vbcast.lane.b32.xlu0 %v3890_v35, 256  ;;  %v4111_v34 = vrot.slane %v5422_v18, %v5597_v16  ;;  %v5423_v35 = vld [vmem:[%s5578_s11 + $0xe8] sm:$0xff] }
 0x3ae   : > { %v3450_v41 = vpop.permute.xlu1 %3449  ;;  %v3443_v42 = vpop.permute.xlu0 %3442 }
 0x3af   : > { %5339 = vst.msk [vmem:[%s5662_s15 + $0x350] sm:$0xff] %vm364_vm1, %v3450_v41  ;;  %5338 = vst.msk [vmem:[%s5662_s15 + $0x340] sm:$0xff] %vm364_vm1, %v3443_v42  ;;  %v4146_v42 = vrot.slane %v5423_v35, %v5580_v4 }
 0x3b0   : > { %3913 = vbcast.lane.b32.xlu1 %v3911_v38, 256  ;;  %3906 = vbcast.lane.b32.xlu0 %v3904_v39, 256  ;;  %v4132_v38 = vrot.slane %v5423_v35, %v5582_v5  ;;  %v4125_v39 = vrot.slane %v5423_v35, %v5573_v3 }
 0x3b2   : > { %v3464_v45 = vpop.permute.xlu1 %3463  ;;  %v3457_v46 = vpop.permute.xlu0 %3456 }
 0x3b3   : > { %5341 = vst.msk [vmem:[%s5662_s15 + $0x370] sm:$0xff] %vm364_vm1, %v3464_v45  ;;  %5340 = vst.msk [vmem:[%s5662_s15 + $0x360] sm:$0xff] %vm364_vm1, %v3457_v46  ;;  %v4160_v46 = vrot.slane %v5423_v35, %v5589_v11 }
 0x3b4   : > { %3947 = vbcast.lane.b32.xlu1 %v3945_v43, 256  ;;  %3940 = vbcast.lane.b32.xlu0 %v3938_v44, 256  ;;  %v4139_v43 = vrot.slane %v5423_v35, %v5571_v2 }
 0x3b6   : > { %v3478_v49 = vpop.permute.xlu1 %3477  ;;  %v3471_v50 = vpop.permute.xlu0 %3470 }
 0x3b7   : > { %5343 = vst.msk [vmem:[%s5662_s15 + $0x790] sm:$0xff] %vm364_vm1, %v3478_v49  ;;  %5342 = vst.msk [vmem:[%s5662_s15 + $0x780] sm:$0xff] %vm364_vm1, %v3471_v50  ;;  %v4174_v50 = vrot.slane %v5423_v35, %v5595_v15 }
 0x3b8   : > { %3961 = vbcast.lane.b32.xlu1 %v3959_v47, 256  ;;  %3954 = vbcast.lane.b32.xlu0 %v3952_v48, 256  ;;  %v4153_v47 = vrot.slane %v5423_v35, %v5591_v12 }
 0x3ba   : > { %v3492_v53 = vpop.permute.xlu1 %3491  ;;  %v3485_v54 = vpop.permute.xlu0 %3484 }
 0x3bb   : > { %5345 = vst.msk [vmem:[%s5662_s15 + $0x7b0] sm:$0xff] %vm364_vm1, %v3492_v53  ;;  %5344 = vst.msk [vmem:[%s5662_s15 + $0x7a0] sm:$0xff] %vm364_vm1, %v3485_v54 }
 0x3bc   : > { %3975 = vbcast.lane.b32.xlu1 %v3973_v51, 256  ;;  %3968 = vbcast.lane.b32.xlu0 %v3966_v52, 256  ;;  %v4167_v51 = vrot.slane %v5423_v35, %v5597_v16  ;;  %v5440_v52 = vld [vmem:[%s5578_s11 + $0x110] sm:$0xff] }
 0x3be   : > { %v3506_v58 = vpop.permute.xlu1 %3505  ;;  %v3499_v59 = vpop.permute.xlu0 %3498 }
 0x3bf   : > { %5347 = vst.msk [vmem:[%s5662_s15 + $0x7d0] sm:$0xff] %vm364_vm1, %v3506_v58  ;;  %5346 = vst.msk [vmem:[%s5662_s15 + $0x7c0] sm:$0xff] %vm364_vm1, %v3499_v59  ;;  %v4222_v59 = vrot.slane %v5440_v52, %v5580_v4 }
 0x3c0   : > { %3989 = vbcast.lane.b32.xlu1 %v3987_v55, 256  ;;  %3982 = vbcast.lane.b32.xlu0 %v3980_v56, 256  ;;  %v4208_v55 = vrot.slane %v5440_v52, %v5582_v5  ;;  %v4201_v56 = vrot.slane %v5440_v52, %v5573_v3 }
 0x3c2   : > { %v3520_v62 = vpop.permute.xlu1 %3519  ;;  %v3513_v63 = vpop.permute.xlu0 %3512 }
 0x3c3   : > { %5349 = vst.msk [vmem:[%s5662_s15 + $0x7f0] sm:$0xff] %vm364_vm1, %v3520_v62  ;;  %5348 = vst.msk [vmem:[%s5662_s15 + $0x7e0] sm:$0xff] %vm364_vm1, %v3513_v63  ;;  %v4236_v63 = vrot.slane %v5440_v52, %v5589_v11 }
 0x3c4   : > { %4003 = vbcast.lane.b32.xlu1 %v4001_v60, 256  ;;  %3996 = vbcast.lane.b32.xlu0 %v3994_v61, 256  ;;  %v4215_v60 = vrot.slane %v5440_v52, %v5571_v2 }
 0x3c6   : > { %v3553_v6 = vpop.permute.xlu1 %3552  ;;  %v3546_v7 = vpop.permute.xlu0 %3545 }
 0x3c7   : > { %5353 = vst.msk [vmem:[%s5662_s15 + $0x318] sm:$0xff] %vm232_vm0, %v3553_v6  ;;  %5352 = vst.msk [vmem:[%s5662_s15 + $0x308] sm:$0xff] %vm232_vm0, %v3546_v7  ;;  %v4250_v7 = vrot.slane %v5440_v52, %v5595_v15 }
 0x3c8   : > { %4017 = vbcast.lane.b32.xlu1 %v4015_v0, 256  ;;  %4010 = vbcast.lane.b32.xlu0 %v4008_v1, 256  ;;  %v4229_v0 = vrot.slane %v5440_v52, %v5591_v12 }
 0x3ca   : > { %v3567_v10 = vpop.permute.xlu1 %3566  ;;  %v3560_v13 = vpop.permute.xlu0 %3559 }
 0x3cb   : > { %5355 = vst.msk [vmem:[%s5662_s15 + $0x338] sm:$0xff] %vm232_vm0, %v3567_v10  ;;  %5354 = vst.msk [vmem:[%s5662_s15 + $0x328] sm:$0xff] %vm232_vm0, %v3560_v13 }
 0x3cc   : > { %4031 = vbcast.lane.b32.xlu1 %v4029_v8, 256  ;;  %4024 = vbcast.lane.b32.xlu0 %v4022_v9, 256  ;;  %v4243_v8 = vrot.slane %v5440_v52, %v5597_v16  ;;  %v5441_v9 = vld [vmem:[%s5578_s11 + $0x138] sm:$0xff] }
 0x3ce   : > { %v3581_v19 = vpop.permute.xlu1 %3580  ;;  %v3574_v20 = vpop.permute.xlu0 %3573 }
 0x3cf   : > { %5357 = vst.msk [vmem:[%s5662_s15 + $0x358] sm:$0xff] %vm232_vm0, %v3581_v19  ;;  %5356 = vst.msk [vmem:[%s5662_s15 + $0x348] sm:$0xff] %vm232_vm0, %v3574_v20  ;;  %v4278_v20 = vrot.slane %v5441_v9, %v5580_v4 }
 0x3d0   : > { %4045 = vbcast.lane.b32.xlu1 %v4043_v14, 256  ;;  %4038 = vbcast.lane.b32.xlu0 %v4036_v17, 256  ;;  %v4264_v14 = vrot.slane %v5441_v9, %v5582_v5  ;;  %v4257_v17 = vrot.slane %v5441_v9, %v5573_v3 }
 0x3d2   : > { %v3595_v23 = vpop.permute.xlu1 %3594  ;;  %v3588_v24 = vpop.permute.xlu0 %3587 }
 0x3d3   : > { %5359 = vst.msk [vmem:[%s5662_s15 + $0x378] sm:$0xff] %vm232_vm0, %v3595_v23  ;;  %5358 = vst.msk [vmem:[%s5662_s15 + $0x368] sm:$0xff] %vm232_vm0, %v3588_v24  ;;  %v4292_v24 = vrot.slane %v5441_v9, %v5589_v11 }
 0x3d4   : > { %4078 = vbcast.lane.b32.xlu1 %v4076_v21, 256  ;;  %4071 = vbcast.lane.b32.xlu0 %v4069_v22, 256  ;;  %v4271_v21 = vrot.slane %v5441_v9, %v5571_v2 }
 0x3d6   : > { %v3609_v27 = vpop.permute.xlu1 %3608  ;;  %v3602_v28 = vpop.permute.xlu0 %3601 }
 0x3d7   : > { %5361 = vst.msk [vmem:[%s5662_s15 + $0x798] sm:$0xff] %vm232_vm0, %v3609_v27  ;;  %5360 = vst.msk [vmem:[%s5662_s15 + $0x788] sm:$0xff] %vm232_vm0, %v3602_v28  ;;  %v4306_v28 = vrot.slane %v5441_v9, %v5595_v15 }
 0x3d8   : > { %4092 = vbcast.lane.b32.xlu1 %v4090_v25, 256  ;;  %4085 = vbcast.lane.b32.xlu0 %v4083_v26, 256  ;;  %v4285_v25 = vrot.slane %v5441_v9, %v5591_v12 }
 0x3da   : > { %v3623_v31 = vpop.permute.xlu1 %3622  ;;  %v3616_v32 = vpop.permute.xlu0 %3615 }
 0x3db   : > { %5363 = vst.msk [vmem:[%s5662_s15 + $0x7b8] sm:$0xff] %vm232_vm0, %v3623_v31  ;;  %5362 = vst.msk [vmem:[%s5662_s15 + $0x7a8] sm:$0xff] %vm232_vm0, %v3616_v32 }
 0x3dc   : > { %4106 = vbcast.lane.b32.xlu1 %v4104_v29, 256  ;;  %4099 = vbcast.lane.b32.xlu0 %v4097_v30, 256  ;;  %v4299_v29 = vrot.slane %v5441_v9, %v5597_v16  ;;  %v5458_v30 = vld [vmem:[%s5578_s11 + $0x160] sm:$0xff] }
 0x3de   : > { %v3637_v36 = vpop.permute.xlu1 %3636  ;;  %v3630_v37 = vpop.permute.xlu0 %3629 }
 0x3df   : > { %5365 = vst.msk [vmem:[%s5662_s15 + $0x7d8] sm:$0xff] %vm232_vm0, %v3637_v36  ;;  %5364 = vst.msk [vmem:[%s5662_s15 + $0x7c8] sm:$0xff] %vm232_vm0, %v3630_v37  ;;  %v4353_v37 = vrot.slane %v5458_v30, %v5580_v4 }
 0x3e0   : > { %4120 = vbcast.lane.b32.xlu1 %v4118_v33, 256  ;;  %4113 = vbcast.lane.b32.xlu0 %v4111_v34, 256  ;;  %v4339_v33 = vrot.slane %v5458_v30, %v5582_v5  ;;  %v4332_v34 = vrot.slane %v5458_v30, %v5573_v3 }
 0x3e2   : > { %v3651_v40 = vpop.permute.xlu1 %3650  ;;  %v3644_v41 = vpop.permute.xlu0 %3643 }
 0x3e3   : > { %5367 = vst.msk [vmem:[%s5662_s15 + $0x7f8] sm:$0xff] %vm232_vm0, %v3651_v40  ;;  %5366 = vst.msk [vmem:[%s5662_s15 + $0x7e8] sm:$0xff] %vm232_vm0, %v3644_v41  ;;  %v4367_v41 = vrot.slane %v5458_v30, %v5589_v11 }
 0x3e4   : > { %4134 = vbcast.lane.b32.xlu1 %v4132_v38, 256  ;;  %4127 = vbcast.lane.b32.xlu0 %v4125_v39, 256  ;;  %v4346_v38 = vrot.slane %v5458_v30, %v5571_v2 }
 0x3e6   : > { %v3685_v44 = vpop.permute.xlu1 %3684  ;;  %v3678_v45 = vpop.permute.xlu0 %3677 }
 0x3e7   : > { %5371 = vst.msk [vmem:[%s5662_s15 + $0x318] sm:$0xff] %vm364_vm1, %v3685_v44  ;;  %5370 = vst.msk [vmem:[%s5662_s15 + $0x308] sm:$0xff] %vm364_vm1, %v3678_v45  ;;  %v4381_v45 = vrot.slane %v5458_v30, %v5595_v15 }
 0x3e8   : > { %4148 = vbcast.lane.b32.xlu1 %v4146_v42, 256  ;;  %4141 = vbcast.lane.b32.xlu0 %v4139_v43, 256  ;;  %v4360_v42 = vrot.slane %v5458_v30, %v5591_v12 }
 0x3ea   : > { %v3699_v48 = vpop.permute.xlu1 %3698  ;;  %v3692_v49 = vpop.permute.xlu0 %3691 }
 0x3eb   : > { %5373 = vst.msk [vmem:[%s5662_s15 + $0x338] sm:$0xff] %vm364_vm1, %v3699_v48  ;;  %5372 = vst.msk [vmem:[%s5662_s15 + $0x328] sm:$0xff] %vm364_vm1, %v3692_v49 }
 0x3ec   : > { %4162 = vbcast.lane.b32.xlu1 %v4160_v46, 256  ;;  %4155 = vbcast.lane.b32.xlu0 %v4153_v47, 256  ;;  %v4374_v46 = vrot.slane %v5458_v30, %v5597_v16  ;;  %v5459_v47 = vld [vmem:[%s5578_s11 + $0x188] sm:$0xff] }
 0x3ee   : > { %v3713_v53 = vpop.permute.xlu1 %3712  ;;  %v3706_v54 = vpop.permute.xlu0 %3705 }
 0x3ef   : > { %5375 = vst.msk [vmem:[%s5662_s15 + $0x358] sm:$0xff] %vm364_vm1, %v3713_v53  ;;  %5374 = vst.msk [vmem:[%s5662_s15 + $0x348] sm:$0xff] %vm364_vm1, %v3706_v54  ;;  %v4409_v54 = vrot.slane %v5459_v47, %v5580_v4 }
 0x3f0   : > { %4176 = vbcast.lane.b32.xlu1 %v4174_v50, 256  ;;  %4169 = vbcast.lane.b32.xlu0 %v4167_v51, 256  ;;  %v4395_v50 = vrot.slane %v5459_v47, %v5582_v5  ;;  %v4388_v51 = vrot.slane %v5459_v47, %v5573_v3 }
 0x3f2   : > { %v3727_v57 = vpop.permute.xlu1 %3726  ;;  %v3720_v58 = vpop.permute.xlu0 %3719 }
 0x3f3   : > { %5377 = vst.msk [vmem:[%s5662_s15 + $0x378] sm:$0xff] %vm364_vm1, %v3727_v57  ;;  %5376 = vst.msk [vmem:[%s5662_s15 + $0x368] sm:$0xff] %vm364_vm1, %v3720_v58  ;;  %v4423_v58 = vrot.slane %v5459_v47, %v5589_v11 }
 0x3f4   : > { %4210 = vbcast.lane.b32.xlu1 %v4208_v55, 256  ;;  %4203 = vbcast.lane.b32.xlu0 %v4201_v56, 256  ;;  %v4402_v55 = vrot.slane %v5459_v47, %v5571_v2 }
 0x3f6   : > { %v3741_v61 = vpop.permute.xlu1 %3740  ;;  %v3734_v62 = vpop.permute.xlu0 %3733 }
 0x3f7   : > { %5379 = vst.msk [vmem:[%s5662_s15 + $0x798] sm:$0xff] %vm364_vm1, %v3741_v61  ;;  %5378 = vst.msk [vmem:[%s5662_s15 + $0x788] sm:$0xff] %vm364_vm1, %v3734_v62  ;;  %v4437_v62 = vrot.slane %v5459_v47, %v5595_v15 }
 0x3f8   : > { %4224 = vbcast.lane.b32.xlu1 %v4222_v59, 256  ;;  %4217 = vbcast.lane.b32.xlu0 %v4215_v60, 256  ;;  %v4416_v59 = vrot.slane %v5459_v47, %v5591_v12 }
 0x3fa   : > { %v3755_v1 = vpop.permute.xlu1 %3754  ;;  %v3748_v6 = vpop.permute.xlu0 %3747 }
 0x3fb   : > { %5381 = vst.msk [vmem:[%s5662_s15 + $0x7b8] sm:$0xff] %vm364_vm1, %v3755_v1  ;;  %5380 = vst.msk [vmem:[%s5662_s15 + $0x7a8] sm:$0xff] %vm364_vm1, %v3748_v6 }
 0x3fc   : > { %4238 = vbcast.lane.b32.xlu1 %v4236_v63, 256  ;;  %4231 = vbcast.lane.b32.xlu0 %v4229_v0, 256  ;;  %v4430_v63 = vrot.slane %v5459_v47, %v5597_v16  ;;  %v5476_v0 = vld [vmem:[%s5578_s11 + $0x1b0] sm:$0xff] }
 0x3fe   : > { %v3769_v10 = vpop.permute.xlu1 %3768  ;;  %v3762_v13 = vpop.permute.xlu0 %3761 }
 0x3ff   : > { %5383 = vst.msk [vmem:[%s5662_s15 + $0x7d8] sm:$0xff] %vm364_vm1, %v3769_v10  ;;  %5382 = vst.msk [vmem:[%s5662_s15 + $0x7c8] sm:$0xff] %vm364_vm1, %v3762_v13  ;;  %v4485_v13 = vrot.slane %v5476_v0, %v5580_v4 }
 0x400   : > { %4252 = vbcast.lane.b32.xlu1 %v4250_v7, 256  ;;  %4245 = vbcast.lane.b32.xlu0 %v4243_v8, 256  ;;  %v4471_v7 = vrot.slane %v5476_v0, %v5582_v5  ;;  %v4464_v8 = vrot.slane %v5476_v0, %v5573_v3 }
 0x402   : > { %v3783_v18 = vpop.permute.xlu1 %3782  ;;  %v3776_v19 = vpop.permute.xlu0 %3775 }
 0x403   : > { %5385 = vst.msk [vmem:[%s5662_s15 + $0x7f8] sm:$0xff] %vm364_vm1, %v3783_v18  ;;  %5384 = vst.msk [vmem:[%s5662_s15 + $0x7e8] sm:$0xff] %vm364_vm1, %v3776_v19  ;;  %v4499_v19 = vrot.slane %v5476_v0, %v5589_v11 }
 0x404   : > { %4266 = vbcast.lane.b32.xlu1 %v4264_v14, 256  ;;  %4259 = vbcast.lane.b32.xlu0 %v4257_v17, 256  ;;  %v4478_v14 = vrot.slane %v5476_v0, %v5571_v2 }
 0x406   : > { %v3816_v22 = vpop.permute.xlu1 %3815  ;;  %v3809_v23 = vpop.permute.xlu0 %3808 }
 0x407   : > { %5389 = vst.msk [vmem:[%s5662_s15 + $0x390] sm:$0xff] %vm232_vm0, %v3816_v22  ;;  %5388 = vst.msk [vmem:[%s5662_s15 + $0x380] sm:$0xff] %vm232_vm0, %v3809_v23  ;;  %v4513_v23 = vrot.slane %v5476_v0, %v5595_v15 }
 0x408   : > { %4280 = vbcast.lane.b32.xlu1 %v4278_v20, 256  ;;  %4273 = vbcast.lane.b32.xlu0 %v4271_v21, 256  ;;  %v4492_v20 = vrot.slane %v5476_v0, %v5591_v12 }
 0x40a   : > { %v3830_v26 = vpop.permute.xlu1 %3829  ;;  %v3823_v27 = vpop.permute.xlu0 %3822 }
 0x40b   : > { %5391 = vst.msk [vmem:[%s5662_s15 + $0x3b0] sm:$0xff] %vm232_vm0, %v3830_v26  ;;  %5390 = vst.msk [vmem:[%s5662_s15 + $0x3a0] sm:$0xff] %vm232_vm0, %v3823_v27 }
 0x40c   : > { %4294 = vbcast.lane.b32.xlu1 %v4292_v24, 256  ;;  %4287 = vbcast.lane.b32.xlu0 %v4285_v25, 256  ;;  %v4506_v24 = vrot.slane %v5476_v0, %v5597_v16  ;;  %v5477_v25 = vld [vmem:[%s5578_s11 + $0x1d8] sm:$0xff] }
 0x40e   : > { %v3844_v31 = vpop.permute.xlu1 %3843  ;;  %v3837_v32 = vpop.permute.xlu0 %3836 }
 0x40f   : > { %5393 = vst.msk [vmem:[%s5662_s15 + $0x3d0] sm:$0xff] %vm232_vm0, %v3844_v31  ;;  %5392 = vst.msk [vmem:[%s5662_s15 + $0x3c0] sm:$0xff] %vm232_vm0, %v3837_v32  ;;  %v4541_v32 = vrot.slane %v5477_v25, %v5580_v4 }
 0x410   : > { %4308 = vbcast.lane.b32.xlu1 %v4306_v28, 256  ;;  %4301 = vbcast.lane.b32.xlu0 %v4299_v29, 256  ;;  %v4527_v28 = vrot.slane %v5477_v25, %v5582_v5  ;;  %v4520_v29 = vrot.slane %v5477_v25, %v5573_v3 }
 0x412   : > { %v3858_v35 = vpop.permute.xlu1 %3857  ;;  %v3851_v36 = vpop.permute.xlu0 %3850 }
 0x413   : > { %5395 = vst.msk [vmem:[%s5662_s15 + $0x3f0] sm:$0xff] %vm232_vm0, %v3858_v35  ;;  %5394 = vst.msk [vmem:[%s5662_s15 + $0x3e0] sm:$0xff] %vm232_vm0, %v3851_v36  ;;  %v4555_v36 = vrot.slane %v5477_v25, %v5589_v11 }
 0x414   : > { %4341 = vbcast.lane.b32.xlu1 %v4339_v33, 256  ;;  %4334 = vbcast.lane.b32.xlu0 %v4332_v34, 256  ;;  %v4534_v33 = vrot.slane %v5477_v25, %v5571_v2 }
 0x416   : > { %v3872_v39 = vpop.permute.xlu1 %3871  ;;  %v3865_v40 = vpop.permute.xlu0 %3864 }
 0x417   : > { %5397 = vst.msk [vmem:[%s5662_s15 + $0x810] sm:$0xff] %vm232_vm0, %v3872_v39  ;;  %5396 = vst.msk [vmem:[%s5662_s15 + $0x800] sm:$0xff] %vm232_vm0, %v3865_v40  ;;  %v4569_v40 = vrot.slane %v5477_v25, %v5595_v15 }
 0x418   : > { %4355 = vbcast.lane.b32.xlu1 %v4353_v37, 256  ;;  %4348 = vbcast.lane.b32.xlu0 %v4346_v38, 256  ;;  %v4548_v37 = vrot.slane %v5477_v25, %v5591_v12 }
 0x41a   : > { %v3886_v43 = vpop.permute.xlu1 %3885  ;;  %v3879_v44 = vpop.permute.xlu0 %3878 }
 0x41b   : > { %5399 = vst.msk [vmem:[%s5662_s15 + $0x830] sm:$0xff] %vm232_vm0, %v3886_v43  ;;  %5398 = vst.msk [vmem:[%s5662_s15 + $0x820] sm:$0xff] %vm232_vm0, %v3879_v44 }
 0x41c   : > { %4369 = vbcast.lane.b32.xlu1 %v4367_v41, 256  ;;  %4362 = vbcast.lane.b32.xlu0 %v4360_v42, 256  ;;  %v4562_v41 = vrot.slane %v5477_v25, %v5597_v16  ;;  %v5494_v42 = vld [vmem:[%s5578_s11 + $0x200] sm:$0xff] }
 0x41e   : > { %v3900_v48 = vpop.permute.xlu1 %3899  ;;  %v3893_v49 = vpop.permute.xlu0 %3892 }
 0x41f   : > { %5401 = vst.msk [vmem:[%s5662_s15 + $0x850] sm:$0xff] %vm232_vm0, %v3900_v48  ;;  %5400 = vst.msk [vmem:[%s5662_s15 + $0x840] sm:$0xff] %vm232_vm0, %v3893_v49  ;;  %v4616_v49 = vrot.slane %v5494_v42, %v5580_v4 }
 0x420   : > { %4383 = vbcast.lane.b32.xlu1 %v4381_v45, 256  ;;  %4376 = vbcast.lane.b32.xlu0 %v4374_v46, 256  ;;  %v4602_v45 = vrot.slane %v5494_v42, %v5582_v5  ;;  %v4595_v46 = vrot.slane %v5494_v42, %v5573_v3 }
 0x422   : > { %v3914_v52 = vpop.permute.xlu1 %3913  ;;  %v3907_v53 = vpop.permute.xlu0 %3906 }
 0x423   : > { %5403 = vst.msk [vmem:[%s5662_s15 + $0x870] sm:$0xff] %vm232_vm0, %v3914_v52  ;;  %5402 = vst.msk [vmem:[%s5662_s15 + $0x860] sm:$0xff] %vm232_vm0, %v3907_v53  ;;  %v4630_v53 = vrot.slane %v5494_v42, %v5589_v11 }
 0x424   : > { %4397 = vbcast.lane.b32.xlu1 %v4395_v50, 256  ;;  %4390 = vbcast.lane.b32.xlu0 %v4388_v51, 256  ;;  %v4609_v50 = vrot.slane %v5494_v42, %v5571_v2 }
 0x426   : > { %v3948_v56 = vpop.permute.xlu1 %3947  ;;  %v3941_v57 = vpop.permute.xlu0 %3940 }
 0x427   : > { %5407 = vst.msk [vmem:[%s5662_s15 + $0x390] sm:$0xff] %vm364_vm1, %v3948_v56  ;;  %5406 = vst.msk [vmem:[%s5662_s15 + $0x380] sm:$0xff] %vm364_vm1, %v3941_v57  ;;  %v4644_v57 = vrot.slane %v5494_v42, %v5595_v15 }
 0x428   : > { %4411 = vbcast.lane.b32.xlu1 %v4409_v54, 256  ;;  %4404 = vbcast.lane.b32.xlu0 %v4402_v55, 256  ;;  %v4623_v54 = vrot.slane %v5494_v42, %v5591_v12 }
 0x42a   : > { %v3962_v60 = vpop.permute.xlu1 %3961  ;;  %v3955_v61 = vpop.permute.xlu0 %3954 }
 0x42b   : > { %5409 = vst.msk [vmem:[%s5662_s15 + $0x3b0] sm:$0xff] %vm364_vm1, %v3962_v60  ;;  %5408 = vst.msk [vmem:[%s5662_s15 + $0x3a0] sm:$0xff] %vm364_vm1, %v3955_v61 }
 0x42c   : > { %4425 = vbcast.lane.b32.xlu1 %v4423_v58, 256  ;;  %4418 = vbcast.lane.b32.xlu0 %v4416_v59, 256  ;;  %v4637_v58 = vrot.slane %v5494_v42, %v5597_v16  ;;  %v5495_v59 = vld [vmem:[%s5578_s11 + $0x228] sm:$0xff] }
 0x42e   : > { %v3976_v1 = vpop.permute.xlu1 %3975  ;;  %v3969_v6 = vpop.permute.xlu0 %3968 }
 0x42f   : > { %5411 = vst.msk [vmem:[%s5662_s15 + $0x3d0] sm:$0xff] %vm364_vm1, %v3976_v1  ;;  %5410 = vst.msk [vmem:[%s5662_s15 + $0x3c0] sm:$0xff] %vm364_vm1, %v3969_v6  ;;  %v4672_v6 = vrot.slane %v5495_v59, %v5580_v4 }
 0x430   : > { %4439 = vbcast.lane.b32.xlu1 %v4437_v62, 256  ;;  %4432 = vbcast.lane.b32.xlu0 %v4430_v63, 256  ;;  %v4658_v62 = vrot.slane %v5495_v59, %v5582_v5  ;;  %v4651_v63 = vrot.slane %v5495_v59, %v5573_v3 }
 0x432   : > { %v3990_v9 = vpop.permute.xlu1 %3989  ;;  %v3983_v10 = vpop.permute.xlu0 %3982 }
 0x433   : > { %5413 = vst.msk [vmem:[%s5662_s15 + $0x3f0] sm:$0xff] %vm364_vm1, %v3990_v9  ;;  %5412 = vst.msk [vmem:[%s5662_s15 + $0x3e0] sm:$0xff] %vm364_vm1, %v3983_v10  ;;  %v4686_v10 = vrot.slane %v5495_v59, %v5589_v11 }
 0x434   : > { %4473 = vbcast.lane.b32.xlu1 %v4471_v7, 256  ;;  %4466 = vbcast.lane.b32.xlu0 %v4464_v8, 256  ;;  %v4665_v7 = vrot.slane %v5495_v59, %v5571_v2 }
 0x436   : > { %v4004_v17 = vpop.permute.xlu1 %4003  ;;  %v3997_v18 = vpop.permute.xlu0 %3996 }
 0x437   : > { %5415 = vst.msk [vmem:[%s5662_s15 + $0x810] sm:$0xff] %vm364_vm1, %v4004_v17  ;;  %5414 = vst.msk [vmem:[%s5662_s15 + $0x800] sm:$0xff] %vm364_vm1, %v3997_v18  ;;  %v4700_v18 = vrot.slane %v5495_v59, %v5595_v15 }
 0x438   : > { %4487 = vbcast.lane.b32.xlu1 %v4485_v13, 256  ;;  %4480 = vbcast.lane.b32.xlu0 %v4478_v14, 256  ;;  %v4679_v13 = vrot.slane %v5495_v59, %v5591_v12 }
 0x43a   : > { %v4018_v21 = vpop.permute.xlu1 %4017  ;;  %v4011_v22 = vpop.permute.xlu0 %4010 }
 0x43b   : > { %5417 = vst.msk [vmem:[%s5662_s15 + $0x830] sm:$0xff] %vm364_vm1, %v4018_v21  ;;  %5416 = vst.msk [vmem:[%s5662_s15 + $0x820] sm:$0xff] %vm364_vm1, %v4011_v22 }
 0x43c   : > { %4501 = vbcast.lane.b32.xlu1 %v4499_v19, 256  ;;  %4494 = vbcast.lane.b32.xlu0 %v4492_v20, 256  ;;  %v4693_v19 = vrot.slane %v5495_v59, %v5597_v16  ;;  %v5512_v20 = vld [vmem:[%s5578_s11 + $0x250] sm:$0xff] }
 0x43e   : > { %v4032_v26 = vpop.permute.xlu1 %4031  ;;  %v4025_v27 = vpop.permute.xlu0 %4024 }
 0x43f   : > { %5419 = vst.msk [vmem:[%s5662_s15 + $0x850] sm:$0xff] %vm364_vm1, %v4032_v26  ;;  %5418 = vst.msk [vmem:[%s5662_s15 + $0x840] sm:$0xff] %vm364_vm1, %v4025_v27  ;;  %v4748_v27 = vrot.slane %v5512_v20, %v5580_v4 }
 0x440   : > { %4515 = vbcast.lane.b32.xlu1 %v4513_v23, 256  ;;  %4508 = vbcast.lane.b32.xlu0 %v4506_v24, 256  ;;  %v4734_v23 = vrot.slane %v5512_v20, %v5582_v5  ;;  %v4727_v24 = vrot.slane %v5512_v20, %v5573_v3 }
 0x442   : > { %v4046_v30 = vpop.permute.xlu1 %4045  ;;  %v4039_v31 = vpop.permute.xlu0 %4038 }
 0x443   : > { %5421 = vst.msk [vmem:[%s5662_s15 + $0x870] sm:$0xff] %vm364_vm1, %v4046_v30  ;;  %5420 = vst.msk [vmem:[%s5662_s15 + $0x860] sm:$0xff] %vm364_vm1, %v4039_v31  ;;  %v4762_v31 = vrot.slane %v5512_v20, %v5589_v11 }
 0x444   : > { %4529 = vbcast.lane.b32.xlu1 %v4527_v28, 256  ;;  %4522 = vbcast.lane.b32.xlu0 %v4520_v29, 256  ;;  %v4741_v28 = vrot.slane %v5512_v20, %v5571_v2 }
 0x446   : > { %v4079_v34 = vpop.permute.xlu1 %4078  ;;  %v4072_v35 = vpop.permute.xlu0 %4071 }
 0x447   : > { %5425 = vst.msk [vmem:[%s5662_s15 + $0x398] sm:$0xff] %vm232_vm0, %v4079_v34  ;;  %5424 = vst.msk [vmem:[%s5662_s15 + $0x388] sm:$0xff] %vm232_vm0, %v4072_v35  ;;  %v4776_v35 = vrot.slane %v5512_v20, %v5595_v15 }
 0x448   : > { %4543 = vbcast.lane.b32.xlu1 %v4541_v32, 256  ;;  %4536 = vbcast.lane.b32.xlu0 %v4534_v33, 256  ;;  %v4755_v32 = vrot.slane %v5512_v20, %v5591_v12 }
 0x44a   : > { %v4093_v38 = vpop.permute.xlu1 %4092  ;;  %v4086_v39 = vpop.permute.xlu0 %4085 }
 0x44b   : > { %5427 = vst.msk [vmem:[%s5662_s15 + $0x3b8] sm:$0xff] %vm232_vm0, %v4093_v38  ;;  %5426 = vst.msk [vmem:[%s5662_s15 + $0x3a8] sm:$0xff] %vm232_vm0, %v4086_v39 }
 0x44c   : > { %4557 = vbcast.lane.b32.xlu1 %v4555_v36, 256  ;;  %4550 = vbcast.lane.b32.xlu0 %v4548_v37, 256  ;;  %v4769_v36 = vrot.slane %v5512_v20, %v5597_v16  ;;  %v5513_v37 = vld [vmem:[%s5578_s11 + $0x278] sm:$0xff] }
 0x44e   : > { %v4107_v43 = vpop.permute.xlu1 %4106  ;;  %v4100_v44 = vpop.permute.xlu0 %4099 }
 0x44f   : > { %5429 = vst.msk [vmem:[%s5662_s15 + $0x3d8] sm:$0xff] %vm232_vm0, %v4107_v43  ;;  %5428 = vst.msk [vmem:[%s5662_s15 + $0x3c8] sm:$0xff] %vm232_vm0, %v4100_v44  ;;  %v4804_v44 = vrot.slane %v5513_v37, %v5580_v4  ;;  %v4825_v4 = vrot.slane %v5513_v37, %v5597_v16 }
 0x450   : > { %4571 = vbcast.lane.b32.xlu1 %v4569_v40, 256  ;;  %4564 = vbcast.lane.b32.xlu0 %v4562_v41, 256  ;;  %v4790_v40 = vrot.slane %v5513_v37, %v5582_v5  ;;  %v4783_v41 = vrot.slane %v5513_v37, %v5573_v3  ;;  %v4818_v3 = vrot.slane %v5513_v37, %v5589_v11 }
 0x451   : > { %v4811_v5 = vrot.slane %v5513_v37, %v5591_v12 }
 0x452   : > { %v4121_v47 = vpop.permute.xlu1 %4120  ;;  %v4114_v48 = vpop.permute.xlu0 %4113 }
 0x453   : > { %5431 = vst.msk [vmem:[%s5662_s15 + $0x3f8] sm:$0xff] %vm232_vm0, %v4121_v47  ;;  %5430 = vst.msk [vmem:[%s5662_s15 + $0x3e8] sm:$0xff] %vm232_vm0, %v4114_v48 }
 0x454   : > { %4604 = vbcast.lane.b32.xlu1 %v4602_v45, 256  ;;  %4597 = vbcast.lane.b32.xlu0 %v4595_v46, 256  ;;  %v4797_v45 = vrot.slane %v5513_v37, %v5571_v2  ;;  %v4832_v2 = vrot.slane %v5513_v37, %v5595_v15 }
 0x456   : > { %v4135_v51 = vpop.permute.xlu1 %4134  ;;  %v4128_v52 = vpop.permute.xlu0 %4127 }
 0x457   : > { %5433 = vst.msk [vmem:[%s5662_s15 + $0x818] sm:$0xff] %vm232_vm0, %v4135_v51  ;;  %5432 = vst.msk [vmem:[%s5662_s15 + $0x808] sm:$0xff] %vm232_vm0, %v4128_v52 }
 0x458   : > { %4618 = vbcast.lane.b32.xlu1 %v4616_v49, 256  ;;  %4611 = vbcast.lane.b32.xlu0 %v4609_v50, 256 }
 0x45a   : > { %v4149_v55 = vpop.permute.xlu1 %4148  ;;  %v4142_v56 = vpop.permute.xlu0 %4141 }
 0x45b   : > { %5435 = vst.msk [vmem:[%s5662_s15 + $0x838] sm:$0xff] %vm232_vm0, %v4149_v55  ;;  %5434 = vst.msk [vmem:[%s5662_s15 + $0x828] sm:$0xff] %vm232_vm0, %v4142_v56 }
 0x45c   : > { %4632 = vbcast.lane.b32.xlu1 %v4630_v53, 256  ;;  %4625 = vbcast.lane.b32.xlu0 %v4623_v54, 256 }
 0x45e   : > { %v4163_v60 = vpop.permute.xlu1 %4162  ;;  %v4156_v61 = vpop.permute.xlu0 %4155 }
 0x45f   : > { %5437 = vst.msk [vmem:[%s5662_s15 + $0x858] sm:$0xff] %vm232_vm0, %v4163_v60  ;;  %5436 = vst.msk [vmem:[%s5662_s15 + $0x848] sm:$0xff] %vm232_vm0, %v4156_v61 }
 0x460   : > { %4646 = vbcast.lane.b32.xlu1 %v4644_v57, 256  ;;  %4639 = vbcast.lane.b32.xlu0 %v4637_v58, 256 }
 0x462   : > { %v4177_v0 = vpop.permute.xlu1 %4176  ;;  %v4170_v1 = vpop.permute.xlu0 %4169 }
 0x463   : > { %5439 = vst.msk [vmem:[%s5662_s15 + $0x878] sm:$0xff] %vm232_vm0, %v4177_v0  ;;  %5438 = vst.msk [vmem:[%s5662_s15 + $0x868] sm:$0xff] %vm232_vm0, %v4170_v1 }
 0x464   : > { %4660 = vbcast.lane.b32.xlu1 %v4658_v62, 256  ;;  %4653 = vbcast.lane.b32.xlu0 %v4651_v63, 256 }
 0x466   : > { %v4211_v8 = vpop.permute.xlu1 %4210  ;;  %v4204_v9 = vpop.permute.xlu0 %4203 }
 0x467   : > { %5443 = vst.msk [vmem:[%s5662_s15 + $0x398] sm:$0xff] %vm364_vm1, %v4211_v8  ;;  %5442 = vst.msk [vmem:[%s5662_s15 + $0x388] sm:$0xff] %vm364_vm1, %v4204_v9 }
 0x468   : > { %4674 = vbcast.lane.b32.xlu1 %v4672_v6, 256  ;;  %4667 = vbcast.lane.b32.xlu0 %v4665_v7, 256 }
 0x46a   : > { %v4225_v14 = vpop.permute.xlu1 %4224  ;;  %v4218_v17 = vpop.permute.xlu0 %4217 }
 0x46b   : > { %5445 = vst.msk [vmem:[%s5662_s15 + $0x3b8] sm:$0xff] %vm364_vm1, %v4225_v14  ;;  %5444 = vst.msk [vmem:[%s5662_s15 + $0x3a8] sm:$0xff] %vm364_vm1, %v4218_v17 }
 0x46c   : > { %4688 = vbcast.lane.b32.xlu1 %v4686_v10, 256  ;;  %4681 = vbcast.lane.b32.xlu0 %v4679_v13, 256 }
 0x46e   : > { %v4239_v21 = vpop.permute.xlu1 %4238  ;;  %v4232_v22 = vpop.permute.xlu0 %4231 }
 0x46f   : > { %5447 = vst.msk [vmem:[%s5662_s15 + $0x3d8] sm:$0xff] %vm364_vm1, %v4239_v21  ;;  %5446 = vst.msk [vmem:[%s5662_s15 + $0x3c8] sm:$0xff] %vm364_vm1, %v4232_v22 }
 0x470   : > { %4702 = vbcast.lane.b32.xlu1 %v4700_v18, 256  ;;  %4695 = vbcast.lane.b32.xlu0 %v4693_v19, 256 }
 0x472   : > { %v4253_v25 = vpop.permute.xlu1 %4252  ;;  %v4246_v26 = vpop.permute.xlu0 %4245 }
 0x473   : > { %5449 = vst.msk [vmem:[%s5662_s15 + $0x3f8] sm:$0xff] %vm364_vm1, %v4253_v25  ;;  %5448 = vst.msk [vmem:[%s5662_s15 + $0x3e8] sm:$0xff] %vm364_vm1, %v4246_v26 }
 0x474   : > { %4736 = vbcast.lane.b32.xlu1 %v4734_v23, 256  ;;  %4729 = vbcast.lane.b32.xlu0 %v4727_v24, 256 }
 0x476   : > { %v4267_v29 = vpop.permute.xlu1 %4266  ;;  %v4260_v30 = vpop.permute.xlu0 %4259 }
 0x477   : > { %5451 = vst.msk [vmem:[%s5662_s15 + $0x818] sm:$0xff] %vm364_vm1, %v4267_v29  ;;  %5450 = vst.msk [vmem:[%s5662_s15 + $0x808] sm:$0xff] %vm364_vm1, %v4260_v30 }
 0x478   : > { %4750 = vbcast.lane.b32.xlu1 %v4748_v27, 256  ;;  %4743 = vbcast.lane.b32.xlu0 %v4741_v28, 256 }
 0x47a   : > { %v4281_v33 = vpop.permute.xlu1 %4280  ;;  %v4274_v34 = vpop.permute.xlu0 %4273 }
 0x47b   : > { %5453 = vst.msk [vmem:[%s5662_s15 + $0x838] sm:$0xff] %vm364_vm1, %v4281_v33  ;;  %5452 = vst.msk [vmem:[%s5662_s15 + $0x828] sm:$0xff] %vm364_vm1, %v4274_v34 }
 0x47c   : > { %4764 = vbcast.lane.b32.xlu1 %v4762_v31, 256  ;;  %4757 = vbcast.lane.b32.xlu0 %v4755_v32, 256 }
 0x47e   : > { %v4295_v38 = vpop.permute.xlu1 %4294  ;;  %v4288_v39 = vpop.permute.xlu0 %4287 }
 0x47f   : > { %5455 = vst.msk [vmem:[%s5662_s15 + $0x858] sm:$0xff] %vm364_vm1, %v4295_v38  ;;  %5454 = vst.msk [vmem:[%s5662_s15 + $0x848] sm:$0xff] %vm364_vm1, %v4288_v39 }
 0x480   : > { %4778 = vbcast.lane.b32.xlu1 %v4776_v35, 256  ;;  %4771 = vbcast.lane.b32.xlu0 %v4769_v36, 256 }
 0x482   : > { %v4309_v42 = vpop.permute.xlu1 %4308  ;;  %v4302_v43 = vpop.permute.xlu0 %4301 }
 0x483   : > { %5457 = vst.msk [vmem:[%s5662_s15 + $0x878] sm:$0xff] %vm364_vm1, %v4309_v42  ;;  %5456 = vst.msk [vmem:[%s5662_s15 + $0x868] sm:$0xff] %vm364_vm1, %v4302_v43 }
 0x484   : > { %4792 = vbcast.lane.b32.xlu1 %v4790_v40, 256  ;;  %4785 = vbcast.lane.b32.xlu0 %v4783_v41, 256 }
 0x486   : > { %v4342_v46 = vpop.permute.xlu1 %4341  ;;  %v4335_v47 = vpop.permute.xlu0 %4334 }
 0x487   : > { %5461 = vst.msk [vmem:[%s5662_s15 + $0x410] sm:$0xff] %vm232_vm0, %v4342_v46  ;;  %5460 = vst.msk [vmem:[%s5662_s15 + $0x400] sm:$0xff] %vm232_vm0, %v4335_v47 }
 0x488   : > { %4806 = vbcast.lane.b32.xlu1 %v4804_v44, 256  ;;  %4799 = vbcast.lane.b32.xlu0 %v4797_v45, 256 }
 0x48a   : > { %v4356_v48 = vpop.permute.xlu1 %4355  ;;  %v4349_v49 = vpop.permute.xlu0 %4348 }
 0x48b   : > { %5463 = vst.msk [vmem:[%s5662_s15 + $0x430] sm:$0xff] %vm232_vm0, %v4356_v48  ;;  %5462 = vst.msk [vmem:[%s5662_s15 + $0x420] sm:$0xff] %vm232_vm0, %v4349_v49 }
 0x48c   : > { %4820 = vbcast.lane.b32.xlu1 %v4818_v3, 256  ;;  %4813 = vbcast.lane.b32.xlu0 %v4811_v5, 256 }
 0x48e   : > { %v4370_v50 = vpop.permute.xlu1 %4369  ;;  %v4363_v11 = vpop.permute.xlu0 %4362 }
 0x48f   : > { %5465 = vst.msk [vmem:[%s5662_s15 + $0x450] sm:$0xff] %vm232_vm0, %v4370_v50  ;;  %5464 = vst.msk [vmem:[%s5662_s15 + $0x440] sm:$0xff] %vm232_vm0, %v4363_v11 }
 0x490   : > { %4834 = vbcast.lane.b32.xlu1 %v4832_v2, 256  ;;  %4827 = vbcast.lane.b32.xlu0 %v4825_v4, 256 }
 0x492   : > { %v4384_v12 = vpop.permute.xlu1 %4383  ;;  %v4377_v51 = vpop.permute.xlu0 %4376 }
 0x493   : > { %5467 = vst.msk [vmem:[%s5662_s15 + $0x470] sm:$0xff] %vm232_vm0, %v4384_v12  ;;  %5466 = vst.msk [vmem:[%s5662_s15 + $0x460] sm:$0xff] %vm232_vm0, %v4377_v51 }
 0x496   : > { %v4398_v15 = vpop.permute.xlu1 %4397  ;;  %v4391_v16 = vpop.permute.xlu0 %4390 }
 0x497   : > { %5469 = vst.msk [vmem:[%s5662_s15 + $0x890] sm:$0xff] %vm232_vm0, %v4398_v15  ;;  %5468 = vst.msk [vmem:[%s5662_s15 + $0x880] sm:$0xff] %vm232_vm0, %v4391_v16 }
 0x49a   : > { %v4412_v52 = vpop.permute.xlu1 %4411  ;;  %v4405_v53 = vpop.permute.xlu0 %4404 }
 0x49b   : > { %5471 = vst.msk [vmem:[%s5662_s15 + $0x8b0] sm:$0xff] %vm232_vm0, %v4412_v52  ;;  %5470 = vst.msk [vmem:[%s5662_s15 + $0x8a0] sm:$0xff] %vm232_vm0, %v4405_v53 }
 0x49e   : > { %v4426_v54 = vpop.permute.xlu1 %4425  ;;  %v4419_v55 = vpop.permute.xlu0 %4418 }
 0x49f   : > { %5473 = vst.msk [vmem:[%s5662_s15 + $0x8d0] sm:$0xff] %vm232_vm0, %v4426_v54  ;;  %5472 = vst.msk [vmem:[%s5662_s15 + $0x8c0] sm:$0xff] %vm232_vm0, %v4419_v55 }
 0x4a2   : > { %v4440_v56 = vpop.permute.xlu1 %4439  ;;  %v4433_v57 = vpop.permute.xlu0 %4432 }
 0x4a3   : > { %5475 = vst.msk [vmem:[%s5662_s15 + $0x8f0] sm:$0xff] %vm232_vm0, %v4440_v56  ;;  %5474 = vst.msk [vmem:[%s5662_s15 + $0x8e0] sm:$0xff] %vm232_vm0, %v4433_v57 }
 0x4a6   : > { %v4474_v58 = vpop.permute.xlu1 %4473  ;;  %v4467_v59 = vpop.permute.xlu0 %4466 }
 0x4a7   : > { %5479 = vst.msk [vmem:[%s5662_s15 + $0x410] sm:$0xff] %vm364_vm1, %v4474_v58  ;;  %5478 = vst.msk [vmem:[%s5662_s15 + $0x400] sm:$0xff] %vm364_vm1, %v4467_v59 }
 0x4aa   : > { %v4488_v60 = vpop.permute.xlu1 %4487  ;;  %v4481_v61 = vpop.permute.xlu0 %4480 }
 0x4ab   : > { %5481 = vst.msk [vmem:[%s5662_s15 + $0x430] sm:$0xff] %vm364_vm1, %v4488_v60  ;;  %5480 = vst.msk [vmem:[%s5662_s15 + $0x420] sm:$0xff] %vm364_vm1, %v4481_v61 }
 0x4ae   : > { %v4502_v62 = vpop.permute.xlu1 %4501  ;;  %v4495_v63 = vpop.permute.xlu0 %4494 }
 0x4af   : > { %5483 = vst.msk [vmem:[%s5662_s15 + $0x450] sm:$0xff] %vm364_vm1, %v4502_v62  ;;  %5482 = vst.msk [vmem:[%s5662_s15 + $0x440] sm:$0xff] %vm364_vm1, %v4495_v63 }
 0x4b2   : > { %v4516_v0 = vpop.permute.xlu1 %4515  ;;  %v4509_v1 = vpop.permute.xlu0 %4508 }
 0x4b3   : > { %5485 = vst.msk [vmem:[%s5662_s15 + $0x470] sm:$0xff] %vm364_vm1, %v4516_v0  ;;  %5484 = vst.msk [vmem:[%s5662_s15 + $0x460] sm:$0xff] %vm364_vm1, %v4509_v1 }
 0x4b6   : > { %v4530_v6 = vpop.permute.xlu1 %4529  ;;  %v4523_v7 = vpop.permute.xlu0 %4522 }
 0x4b7   : > { %5487 = vst.msk [vmem:[%s5662_s15 + $0x890] sm:$0xff] %vm364_vm1, %v4530_v6  ;;  %5486 = vst.msk [vmem:[%s5662_s15 + $0x880] sm:$0xff] %vm364_vm1, %v4523_v7 }
 0x4ba   : > { %v4544_v8 = vpop.permute.xlu1 %4543  ;;  %v4537_v9 = vpop.permute.xlu0 %4536 }
 0x4bb   : > { %5489 = vst.msk [vmem:[%s5662_s15 + $0x8b0] sm:$0xff] %vm364_vm1, %v4544_v8  ;;  %5488 = vst.msk [vmem:[%s5662_s15 + $0x8a0] sm:$0xff] %vm364_vm1, %v4537_v9 }
 0x4be   : > { %v4558_v10 = vpop.permute.xlu1 %4557  ;;  %v4551_v13 = vpop.permute.xlu0 %4550 }
 0x4bf   : > { %5491 = vst.msk [vmem:[%s5662_s15 + $0x8d0] sm:$0xff] %vm364_vm1, %v4558_v10  ;;  %5490 = vst.msk [vmem:[%s5662_s15 + $0x8c0] sm:$0xff] %vm364_vm1, %v4551_v13 }
 0x4c2   : > { %v4572_v14 = vpop.permute.xlu1 %4571  ;;  %v4565_v17 = vpop.permute.xlu0 %4564 }
 0x4c3   : > { %5493 = vst.msk [vmem:[%s5662_s15 + $0x8f0] sm:$0xff] %vm364_vm1, %v4572_v14  ;;  %5492 = vst.msk [vmem:[%s5662_s15 + $0x8e0] sm:$0xff] %vm364_vm1, %v4565_v17 }
 0x4c6   : > { %v4605_v18 = vpop.permute.xlu1 %4604  ;;  %v4598_v19 = vpop.permute.xlu0 %4597 }
 0x4c7   : > { %5497 = vst.msk [vmem:[%s5662_s15 + $0x418] sm:$0xff] %vm232_vm0, %v4605_v18  ;;  %5496 = vst.msk [vmem:[%s5662_s15 + $0x408] sm:$0xff] %vm232_vm0, %v4598_v19 }
 0x4ca   : > { %v4619_v20 = vpop.permute.xlu1 %4618  ;;  %v4612_v21 = vpop.permute.xlu0 %4611 }
 0x4cb   : > { %5499 = vst.msk [vmem:[%s5662_s15 + $0x438] sm:$0xff] %vm232_vm0, %v4619_v20  ;;  %5498 = vst.msk [vmem:[%s5662_s15 + $0x428] sm:$0xff] %vm232_vm0, %v4612_v21 }
 0x4ce   : > { %v4633_v22 = vpop.permute.xlu1 %4632  ;;  %v4626_v23 = vpop.permute.xlu0 %4625 }
 0x4cf   : > { %5501 = vst.msk [vmem:[%s5662_s15 + $0x458] sm:$0xff] %vm232_vm0, %v4633_v22  ;;  %5500 = vst.msk [vmem:[%s5662_s15 + $0x448] sm:$0xff] %vm232_vm0, %v4626_v23 }
 0x4d2   : > { %v4647_v24 = vpop.permute.xlu1 %4646  ;;  %v4640_v25 = vpop.permute.xlu0 %4639 }
 0x4d3   : > { %5503 = vst.msk [vmem:[%s5662_s15 + $0x478] sm:$0xff] %vm232_vm0, %v4647_v24  ;;  %5502 = vst.msk [vmem:[%s5662_s15 + $0x468] sm:$0xff] %vm232_vm0, %v4640_v25 }
 0x4d6   : > { %v4661_v26 = vpop.permute.xlu1 %4660  ;;  %v4654_v27 = vpop.permute.xlu0 %4653 }
 0x4d7   : > { %5505 = vst.msk [vmem:[%s5662_s15 + $0x898] sm:$0xff] %vm232_vm0, %v4661_v26  ;;  %5504 = vst.msk [vmem:[%s5662_s15 + $0x888] sm:$0xff] %vm232_vm0, %v4654_v27 }
 0x4da   : > { %v4675_v28 = vpop.permute.xlu1 %4674  ;;  %v4668_v29 = vpop.permute.xlu0 %4667 }
 0x4db   : > { %5507 = vst.msk [vmem:[%s5662_s15 + $0x8b8] sm:$0xff] %vm232_vm0, %v4675_v28  ;;  %5506 = vst.msk [vmem:[%s5662_s15 + $0x8a8] sm:$0xff] %vm232_vm0, %v4668_v29 }
 0x4de   : > { %v4689_v30 = vpop.permute.xlu1 %4688  ;;  %v4682_v31 = vpop.permute.xlu0 %4681 }
 0x4df   : > { %5509 = vst.msk [vmem:[%s5662_s15 + $0x8d8] sm:$0xff] %vm232_vm0, %v4689_v30  ;;  %5508 = vst.msk [vmem:[%s5662_s15 + $0x8c8] sm:$0xff] %vm232_vm0, %v4682_v31 }
 0x4e2   : > { %v4703_v32 = vpop.permute.xlu1 %4702  ;;  %v4696_v33 = vpop.permute.xlu0 %4695 }
 0x4e3   : > { %5511 = vst.msk [vmem:[%s5662_s15 + $0x8f8] sm:$0xff] %vm232_vm0, %v4703_v32  ;;  %5510 = vst.msk [vmem:[%s5662_s15 + $0x8e8] sm:$0xff] %vm232_vm0, %v4696_v33 }
 0x4e6   : > { %v4737_v34 = vpop.permute.xlu1 %4736  ;;  %v4730_v35 = vpop.permute.xlu0 %4729 }
 0x4e7   : > { %5515 = vst.msk [vmem:[%s5662_s15 + $0x418] sm:$0xff] %vm364_vm1, %v4737_v34  ;;  %5514 = vst.msk [vmem:[%s5662_s15 + $0x408] sm:$0xff] %vm364_vm1, %v4730_v35 }
 0x4ea   : > { %v4751_v36 = vpop.permute.xlu1 %4750  ;;  %v4744_v37 = vpop.permute.xlu0 %4743 }
 0x4eb   : > { %5517 = vst.msk [vmem:[%s5662_s15 + $0x438] sm:$0xff] %vm364_vm1, %v4751_v36  ;;  %5516 = vst.msk [vmem:[%s5662_s15 + $0x428] sm:$0xff] %vm364_vm1, %v4744_v37 }
 0x4ee   : > { %v4765_v38 = vpop.permute.xlu1 %4764  ;;  %v4758_v39 = vpop.permute.xlu0 %4757 }
 0x4ef   : > { %5519 = vst.msk [vmem:[%s5662_s15 + $0x458] sm:$0xff] %vm364_vm1, %v4765_v38  ;;  %5518 = vst.msk [vmem:[%s5662_s15 + $0x448] sm:$0xff] %vm364_vm1, %v4758_v39 }
 0x4f2   : > { %v4779_v40 = vpop.permute.xlu1 %4778  ;;  %v4772_v41 = vpop.permute.xlu0 %4771 }
 0x4f3   : > { %5521 = vst.msk [vmem:[%s5662_s15 + $0x478] sm:$0xff] %vm364_vm1, %v4779_v40  ;;  %5520 = vst.msk [vmem:[%s5662_s15 + $0x468] sm:$0xff] %vm364_vm1, %v4772_v41 }
 0x4f6   : > { %v4793_v42 = vpop.permute.xlu1 %4792  ;;  %v4786_v43 = vpop.permute.xlu0 %4785 }
 0x4f7   : > { %5523 = vst.msk [vmem:[%s5662_s15 + $0x898] sm:$0xff] %vm364_vm1, %v4793_v42  ;;  %5522 = vst.msk [vmem:[%s5662_s15 + $0x888] sm:$0xff] %vm364_vm1, %v4786_v43 }
 0x4fa   : > { %v4807_v44 = vpop.permute.xlu1 %4806  ;;  %v4800_v45 = vpop.permute.xlu0 %4799 }
 0x4fb   : > { %5525 = vst.msk [vmem:[%s5662_s15 + $0x8b8] sm:$0xff] %vm364_vm1, %v4807_v44  ;;  %5524 = vst.msk [vmem:[%s5662_s15 + $0x8a8] sm:$0xff] %vm364_vm1, %v4800_v45 }
 0x4fe   : > { %v4821_v46 = vpop.permute.xlu1 %4820  ;;  %v4814_v47 = vpop.permute.xlu0 %4813 }
 0x4ff   : > { %5527 = vst.msk [vmem:[%s5662_s15 + $0x8d8] sm:$0xff] %vm364_vm1, %v4821_v46  ;;  %5526 = vst.msk [vmem:[%s5662_s15 + $0x8c8] sm:$0xff] %vm364_vm1, %v4814_v47 }
 0x502   : > { %v4835_v3 = vpop.permute.xlu1 %4834  ;;  %v4828_v5 = vpop.permute.xlu0 %4827 }
 0x503   : > { %5529 = vst.msk [vmem:[%s5662_s15 + $0x8f8] sm:$0xff] %vm364_vm1, %v4835_v3  ;;  %5528 = vst.msk [vmem:[%s5662_s15 + $0x8e8] sm:$0xff] %vm364_vm1, %v4828_v5 }
 0x504 PF: > { %s11_s6 = sadd.s32 1, %s5548_s6  }
 0x505   : > { %p8_p4 = scmp.ge.s32.totalorder %s11_s6, 4  }
 0x507   :  { %10 = sbr.rel (!%p8_p4) target bundleno = 1 (0x1), region = 107 }

</bundles_post_ra>
